<compile_context>
chip_gen: v7x
topology: tpu7x:2x2x1
jax: 0.10.0
libtpu: 0.0.40
codegen_flags: <defaults>
</compile_context>

<pallas_src>
import functools
import math

import numpy as np
import jax
import jax.numpy as jnp
from jax.experimental import pallas as pl
from jax.experimental.pallas import tpu as pltpu

_EPS = 1e-5  # nn.InstanceNorm2d default eps

# first 16 entries of get_freq_indices('top16')
_TOP16_X = [0, 0, 6, 0, 0, 1, 1, 4, 5, 1, 3, 0, 0, 0, 3, 2]
_TOP16_Y = [0, 1, 0, 5, 2, 0, 2, 0, 0, 6, 0, 4, 6, 3, 5, 2]


# ---------------- fused Pallas kernel ----------------

def _resnet_block_kernel(xp_ref, w1_ref, w2_ref, weff_ref, fc1_ref, fc2_ref,
                         o_ref, pad_ref, *, H, W):
    """Whole ResnetBlock for one image, fully fused.

    xp_ref   : (1, H+2, W+2, C) f32   reflect-padded block input
    w1_ref   : (9*C, C)         bf16  conv1 weights, im2col (tap-major) layout
    w2_ref   : (9*C, C)         bf16  conv2 weights, im2col layout
    weff_ref : (H*W, C)         bf16  adaptive-pool(7,7) ∘ DCT filter, pre-folded
    fc1_ref  : (C, C//r)        f32
    fc2_ref  : (C//r, C)        f32
    o_ref    : (1, H*W, C)      f32   block output  x + att(conv_block(x))
    pad_ref  : (H+2, W+2, C)    f32   VMEM scratch: reflect-padded conv1 output
    """
    C = w1_ref.shape[-1]

    def conv3x3_in(get_slab, w_ref):
        # im2col fused in VMEM: 9 taps concatenated on the lane axis (each piece is a
        # full 128-lane multiple) -> one deep-K matmul on the MXU.
        cols = jnp.concatenate(
            [get_slab(t // 3, t % 3).reshape(H * W, C).astype(jnp.bfloat16)
             for t in range(9)], axis=-1)                              # (H*W, 9C) bf16
        acc = jnp.dot(cols, w_ref[...], preferred_element_type=jnp.float32)
        # InstanceNorm(affine=False). Conv bias omitted: it cancels exactly here.
        mean = jnp.mean(acc, axis=0, keepdims=True)
        centered = acc - mean
        var = jnp.mean(centered * centered, axis=0, keepdims=True)
        return centered * jax.lax.rsqrt(var + _EPS)                    # (H*W, C) f32

    # ---- conv1 + InstanceNorm + ReLU ----
    h1 = jnp.maximum(
        conv3x3_in(lambda di, dj: xp_ref[0, di:di + H, dj:dj + W, :], w1_ref), 0.0)

    # ---- in-kernel 1-pixel reflect halo for conv2 (into the VMEM scratch) ----
    h1_img = h1.reshape(H, W, C)
    pad_ref[1:H + 1, 1:W + 1, :] = h1_img                      # interior
    pad_ref[0:1, 1:W + 1, :] = h1_img[1:2]                     # top row    = image row 1
    pad_ref[H + 1:H + 2, 1:W + 1, :] = h1_img[H - 2:H - 1]     # bottom row = image row H-2
    pad_ref[:, 0:1, :] = pad_ref[:, 2:3, :]                    # left col  (+ corners)
    pad_ref[:, W + 1:W + 2, :] = pad_ref[:, W - 1:W, :]        # right col (+ corners)

    # ---- conv2 + InstanceNorm ----
    out2 = conv3x3_in(lambda di, dj: pad_ref[di:di + H, dj:dj + W, :], w2_ref)

    # ---- FCA attention: DCT squeeze -> Linear -> ReLU -> Linear -> Sigmoid ----
    y = jnp.sum(out2 * weff_ref[...].astype(jnp.float32), axis=0, keepdims=True)  # (1, C)
    hid = jnp.maximum(
        jnp.dot(y, fc1_ref[...], preferred_element_type=jnp.float32), 0.0)
    scale = jax.nn.sigmoid(
        jnp.dot(hid, fc2_ref[...], preferred_element_type=jnp.float32))           # (1, C)

    # ---- residual add: exact f32 skip path, reused from the padded input interior ----
    xres = xp_ref[0, 1:H + 1, 1:W + 1, :].reshape(H * W, C)
    o_ref[0] = (xres + out2 * scale).astype(o_ref.dtype)


# ---------------- pallas_call wrapper ----------------

def resnet_block_fused(xp, w1, w2, weff, fc1, fc2, H, W):
    N, Hp, Wp, C = xp.shape
    R = fc1.shape[-1]
    kernel = functools.partial(_resnet_block_kernel, H=H, W=W)
    return pl.pallas_call(
        kernel,
        out_shape=jax.ShapeDtypeStruct((N, H * W, C), jnp.float32),
        grid=(N,),
        in_specs=[
            pl.BlockSpec((1, Hp, Wp, C), lambda n: (n, 0, 0, 0)),
            # constant index maps -> never re-DMA'd across grid steps
            pl.BlockSpec((9 * C, C), lambda n: (0, 0)),
            pl.BlockSpec((9 * C, C), lambda n: (0, 0)),
            pl.BlockSpec((H * W, C), lambda n: (0, 0)),
            pl.BlockSpec((C, R), lambda n: (0, 0)),
            pl.BlockSpec((R, C), lambda n: (0, 0)),
        ],
        out_specs=pl.BlockSpec((1, H * W, C), lambda n: (n, 0, 0)),
        scratch_shapes=[pltpu.VMEM((Hp, Wp, C), jnp.float32)],
        compiler_params=pltpu.CompilerParams(
            dimension_semantics=("parallel",),
            vmem_limit_bytes=32 * 1024 * 1024),   # per-step residency is ~3 MiB here
    )(xp, w1, w2, weff, fc1, fc2)


# ---------------- FCA constant precompute (init-time, numpy) ----------------

def _build_filter(pos, freq, POS):
    r = math.cos(math.pi * freq * (pos + 0.5) / POS) / math.sqrt(POS)
    return r if freq == 0 else r * math.sqrt(2)


def _dct_filter(h, w, mapper_x, mapper_y, channel):
    f = np.zeros((channel, h, w), np.float32)
    c_part = channel // len(mapper_x)
    for i, (ux, vy) in enumerate(zip(mapper_x, mapper_y)):
        for tx in range(h):
            for ty in range(w):
                f[i * c_part:(i + 1) * c_part, tx, ty] = (
                    _build_filter(tx, ux, h) * _build_filter(ty, vy, w))
    return f


def _adaptive_pool_matrix(in_size, out_size):
    # matches F.adaptive_avg_pool2d bin edges: [floor(i*in/out), ceil((i+1)*in/out))
    P = np.zeros((out_size, in_size), np.float32)
    for i in range(out_size):
        s = (i * in_size) // out_size
        e = ((i + 1) * in_size + out_size - 1) // out_size
        P[i, s:e] = 1.0 / (e - s)
    return P


def _fca_effective_weight(H, W, channel, dct_h=7, dct_w=7):
    dct = _dct_filter(dct_h, dct_w, _TOP16_X, _TOP16_Y, channel)   # (C, 7, 7)
    Ph = _adaptive_pool_matrix(H, dct_h)                           # (7, H)
    Pw = _adaptive_pool_matrix(W, dct_w)                           # (7, W)
    weff = np.einsum('ih,jw,cij->hwc', Ph, Pw, dct)                # (H, W, C)
    return jnp.asarray(weff.reshape(H * W, channel), jnp.float32)


# ---------------- params + forward ----------------

def init_resnet_block(key, dim, H, W, reduction=16):
    assert dim % 16 == 0 and dim % reduction == 0, "dim must be divisible by 16"
    ks = jax.random.split(key, 4)
    bc = 1.0 / math.sqrt(dim * 9)

    def conv_w(k):
        w = jax.random.uniform(k, (dim, dim, 3, 3), jnp.float32, -bc, bc)
        # (Cout,Cin,KH,KW) -> (KH,KW,Cin,Cout) -> (9*Cin, Cout); bf16 for the MXU.
        return jnp.transpose(w, (2, 3, 1, 0)).reshape(9 * dim, dim).astype(jnp.bfloat16)

    hid = dim // reduction
    # NOTE: conv biases intentionally omitted — bias followed by
    # InstanceNorm2d(affine=False) cancels exactly, so the forward is unchanged.
    return {
        'w1': conv_w(ks[0]),
        'w2': conv_w(ks[1]),
        'fc1': jax.random.uniform(ks[2], (dim, hid), jnp.float32,
                                  -1.0 / math.sqrt(dim), 1.0 / math.sqrt(dim)),
        'fc2': jax.random.uniform(ks[3], (hid, dim), jnp.float32,
                                  -1.0 / math.sqrt(hid), 1.0 / math.sqrt(hid)),
        'weff': _fca_effective_weight(H, W, dim).astype(jnp.bfloat16),
    }


def resnet_block_forward(x_nchw, params):
    x = jnp.transpose(x_nchw, (0, 2, 3, 1)).astype(jnp.float32)        # NHWC
    N, H, W, C = x.shape
    # Only remaining XLA glue: layout transposes + one reflect pad of the block input.
    xp = jnp.pad(x, ((0, 0), (1, 1), (1, 1), (0, 0)), mode='reflect')  # f32, keeps skip exact
    out = resnet_block_fused(xp, params['w1'], params['w2'], params['weff'],
                             params['fc1'], params['fc2'], H, W)       # (N, H*W, C)
    return jnp.transpose(out.reshape(N, H, W, C), (0, 3, 1, 2))        # back to NCHW


if __name__ == "__main__":
    key = jax.random.PRNGKey(0)
    kx, kp = jax.random.split(key)

    # dim must be divisible by 16 (num_freq) and reduction=16; 128 keeps the channel
    # (lane) dim dense.
    N, C, H, W = 2, 128, 16, 16
    x = jax.random.normal(kx, (N, C, H, W), jnp.float32)
    params = init_resnet_block(kp, C, H, W)

    fwd = jax.jit(resnet_block_forward)
    out = fwd(x, params)
    jax.block_until_ready(out)

    assert out.shape == (N, C, H, W)
    assert bool(jnp.all(jnp.isfinite(out)))
    print("KERNEL_OK")
</pallas_src>

<mosaic_0001>
module attributes {stable_mosaic.version = 11 : i64} {
  func.func @_resnet_block_kernel(%arg0: i32, %arg1: memref<1x18x18x128xf32, #tpu.memory_space<vmem>>, %arg2: memref<1152x128xbf16, #tpu.memory_space<vmem>>, %arg3: memref<1152x128xbf16, #tpu.memory_space<vmem>>, %arg4: memref<256x128xbf16, #tpu.memory_space<vmem>>, %arg5: memref<128x8xf32, #tpu.memory_space<vmem>>, %arg6: memref<8x128xf32, #tpu.memory_space<vmem>>, %arg7: memref<1x256x128xf32, #tpu.memory_space<vmem>>, %arg8: memref<18x18x128xf32, #tpu.memory_space<vmem>>) attributes {dimension_semantics = [#tpu.dimension_semantics<parallel>], iteration_bounds = array<i64: 2>, scalar_prefetch = 0 : i64, scratch_operands = 1 : i64, tpu.core_type = #tpu.core_type<tc>, window_params = [{transform_indices = @transform_0, window_bounds = array<i64: 1, 18, 18, 128>}, {pipeline_mode = #tpu.pipeline_mode<synchronous>, transform_indices = @transform_1, window_bounds = array<i64: 1152, 128>}, {pipeline_mode = #tpu.pipeline_mode<synchronous>, transform_indices = @transform_2, window_bounds = array<i64: 1152, 128>}, {pipeline_mode = #tpu.pipeline_mode<synchronous>, transform_indices = @transform_3, window_bounds = array<i64: 256, 128>}, {pipeline_mode = #tpu.pipeline_mode<synchronous>, transform_indices = @transform_4, window_bounds = array<i64: 128, 8>}, {pipeline_mode = #tpu.pipeline_mode<synchronous>, transform_indices = @transform_5, window_bounds = array<i64: 8, 128>}, {transform_indices = @transform_6, window_bounds = array<i64: 1, 256, 128>}]} {
    %c0 = arith.constant 0 : index
    %c0_0 = arith.constant 0 : index
    %c0_1 = arith.constant 0 : index
    %c0_2 = arith.constant 0 : index
    %0 = vector.load %arg1[%c0, %c0_0, %c0_1, %c0_2] : memref<1x18x18x128xf32, #tpu.memory_space<vmem>>, vector<1x16x16x128xf32>
    %1 = vector.shape_cast %0 : vector<1x16x16x128xf32> to vector<16x16x128xf32>
    %2 = vector.shape_cast %1 : vector<16x16x128xf32> to vector<256x128xf32>
    %3 = arith.truncf %2 : vector<256x128xf32> to vector<256x128xbf16>
    %c0_3 = arith.constant 0 : index
    %c0_4 = arith.constant 0 : index
    %c1 = arith.constant 1 : index
    %c0_5 = arith.constant 0 : index
    %4 = vector.load %arg1[%c0_3, %c0_4, %c1, %c0_5] : memref<1x18x18x128xf32, #tpu.memory_space<vmem>>, vector<1x16x16x128xf32>
    %5 = vector.shape_cast %4 : vector<1x16x16x128xf32> to vector<16x16x128xf32>
    %6 = vector.shape_cast %5 : vector<16x16x128xf32> to vector<256x128xf32>
    %7 = arith.truncf %6 : vector<256x128xf32> to vector<256x128xbf16>
    %c0_6 = arith.constant 0 : index
    %c0_7 = arith.constant 0 : index
    %c2 = arith.constant 2 : index
    %c0_8 = arith.constant 0 : index
    %8 = vector.load %arg1[%c0_6, %c0_7, %c2, %c0_8] : memref<1x18x18x128xf32, #tpu.memory_space<vmem>>, vector<1x16x16x128xf32>
    %9 = vector.shape_cast %8 : vector<1x16x16x128xf32> to vector<16x16x128xf32>
    %10 = vector.shape_cast %9 : vector<16x16x128xf32> to vector<256x128xf32>
    %11 = arith.truncf %10 : vector<256x128xf32> to vector<256x128xbf16>
    %c0_9 = arith.constant 0 : index
    %c1_10 = arith.constant 1 : index
    %c0_11 = arith.constant 0 : index
    %c0_12 = arith.constant 0 : index
    %12 = vector.load %arg1[%c0_9, %c1_10, %c0_11, %c0_12] : memref<1x18x18x128xf32, #tpu.memory_space<vmem>>, vector<1x16x16x128xf32>
    %13 = vector.shape_cast %12 : vector<1x16x16x128xf32> to vector<16x16x128xf32>
    %14 = vector.shape_cast %13 : vector<16x16x128xf32> to vector<256x128xf32>
    %15 = arith.truncf %14 : vector<256x128xf32> to vector<256x128xbf16>
    %c0_13 = arith.constant 0 : index
    %c1_14 = arith.constant 1 : index
    %c1_15 = arith.constant 1 : index
    %c0_16 = arith.constant 0 : index
    %16 = vector.load %arg1[%c0_13, %c1_14, %c1_15, %c0_16] : memref<1x18x18x128xf32, #tpu.memory_space<vmem>>, vector<1x16x16x128xf32>
    %17 = vector.shape_cast %16 : vector<1x16x16x128xf32> to vector<16x16x128xf32>
    %18 = vector.shape_cast %17 : vector<16x16x128xf32> to vector<256x128xf32>
    %19 = arith.truncf %18 : vector<256x128xf32> to vector<256x128xbf16>
    %c0_17 = arith.constant 0 : index
    %c1_18 = arith.constant 1 : index
    %c2_19 = arith.constant 2 : index
    %c0_20 = arith.constant 0 : index
    %20 = vector.load %arg1[%c0_17, %c1_18, %c2_19, %c0_20] : memref<1x18x18x128xf32, #tpu.memory_space<vmem>>, vector<1x16x16x128xf32>
    %21 = vector.shape_cast %20 : vector<1x16x16x128xf32> to vector<16x16x128xf32>
    %22 = vector.shape_cast %21 : vector<16x16x128xf32> to vector<256x128xf32>
    %23 = arith.truncf %22 : vector<256x128xf32> to vector<256x128xbf16>
    %c0_21 = arith.constant 0 : index
    %c2_22 = arith.constant 2 : index
    %c0_23 = arith.constant 0 : index
    %c0_24 = arith.constant 0 : index
    %24 = vector.load %arg1[%c0_21, %c2_22, %c0_23, %c0_24] : memref<1x18x18x128xf32, #tpu.memory_space<vmem>>, vector<1x16x16x128xf32>
    %25 = vector.shape_cast %24 : vector<1x16x16x128xf32> to vector<16x16x128xf32>
    %26 = vector.shape_cast %25 : vector<16x16x128xf32> to vector<256x128xf32>
    %27 = arith.truncf %26 : vector<256x128xf32> to vector<256x128xbf16>
    %c0_25 = arith.constant 0 : index
    %c2_26 = arith.constant 2 : index
    %c1_27 = arith.constant 1 : index
    %c0_28 = arith.constant 0 : index
    %28 = vector.load %arg1[%c0_25, %c2_26, %c1_27, %c0_28] : memref<1x18x18x128xf32, #tpu.memory_space<vmem>>, vector<1x16x16x128xf32>
    %29 = vector.shape_cast %28 : vector<1x16x16x128xf32> to vector<16x16x128xf32>
    %30 = vector.shape_cast %29 : vector<16x16x128xf32> to vector<256x128xf32>
    %31 = arith.truncf %30 : vector<256x128xf32> to vector<256x128xbf16>
    %c0_29 = arith.constant 0 : index
    %c2_30 = arith.constant 2 : index
    %c2_31 = arith.constant 2 : index
    %c0_32 = arith.constant 0 : index
    %32 = vector.load %arg1[%c0_29, %c2_30, %c2_31, %c0_32] : memref<1x18x18x128xf32, #tpu.memory_space<vmem>>, vector<1x16x16x128xf32>
    %33 = vector.shape_cast %32 : vector<1x16x16x128xf32> to vector<16x16x128xf32>
    %34 = vector.shape_cast %33 : vector<16x16x128xf32> to vector<256x128xf32>
    %35 = arith.truncf %34 : vector<256x128xf32> to vector<256x128xbf16>
    %36 = tpu.concatenate %3, %7, %11, %15, %19, %23, %27, %31, %35 in 1 : vector<256x128xbf16>, vector<256x128xbf16>, vector<256x128xbf16>, vector<256x128xbf16>, vector<256x128xbf16>, vector<256x128xbf16>, vector<256x128xbf16>, vector<256x128xbf16>, vector<256x128xbf16> -> vector<256x1152xbf16>
    %c0_33 = arith.constant 0 : index
    %c0_34 = arith.constant 0 : index
    %37 = vector.load %arg2[%c0_33, %c0_34] : memref<1152x128xbf16, #tpu.memory_space<vmem>>, vector<1152x128xbf16>
    %cst = arith.constant dense<0.000000e+00> : vector<256x128xf32>
    %38 = tpu.matmul %36, %37, %cst {dimension_numbers = #tpu.dot_dimension_numbers<[1], [0], [0], [1], [0, 0, 1, 1], [], []>} : vector<256x1152xbf16>, vector<1152x128xbf16>, vector<256x128xf32> -> vector<256x128xf32>
    %cst_35 = arith.constant dense<0.000000e+00> : vector<128xf32>
    %39 = vector.multi_reduction <add>, %38, %cst_35 [0] : vector<256x128xf32> to vector<128xf32>
    %40 = vector.shape_cast %39 : vector<128xf32> to vector<1x128xf32>
    %cst_36 = arith.constant 2.560000e+02 : f32
    %41 = vector.broadcast %cst_36 : f32 to vector<1x128xf32>
    %42 = arith.divf %40, %41 : vector<1x128xf32>
    %43 = vector.broadcast %42 : vector<1x128xf32> to vector<256x128xf32>
    %44 = arith.subf %38, %43 : vector<256x128xf32>
    %45 = arith.mulf %44, %44 : vector<256x128xf32>
    %cst_37 = arith.constant dense<0.000000e+00> : vector<128xf32>
    %46 = vector.multi_reduction <add>, %45, %cst_37 [0] : vector<256x128xf32> to vector<128xf32>
    %47 = vector.shape_cast %46 : vector<128xf32> to vector<1x128xf32>
    %cst_38 = arith.constant 2.560000e+02 : f32
    %48 = vector.broadcast %cst_38 : f32 to vector<1x128xf32>
    %49 = arith.divf %47, %48 : vector<1x128xf32>
    %cst_39 = arith.constant 9.99999974E-6 : f32
    %50 = vector.broadcast %cst_39 : f32 to vector<1x128xf32>
    %51 = arith.addf %49, %50 : vector<1x128xf32>
    %52 = math.rsqrt %51 : vector<1x128xf32>
    %53 = vector.broadcast %52 : vector<1x128xf32> to vector<256x128xf32>
    %54 = arith.mulf %44, %53 : vector<256x128xf32>
    %cst_40 = arith.constant 0.000000e+00 : f32
    %55 = vector.broadcast %cst_40 : f32 to vector<256x128xf32>
    %56 = arith.maximumf %54, %55 : vector<256x128xf32>
    %57 = vector.shape_cast %56 : vector<256x128xf32> to vector<16x16x128xf32>
    %c1_41 = arith.constant 1 : index
    %c1_42 = arith.constant 1 : index
    %c0_43 = arith.constant 0 : index
    %58 = vector.load %arg8[%c1_41, %c1_42, %c0_43] : memref<18x18x128xf32, #tpu.memory_space<vmem>>, vector<16x16x128xf32>
    tpu.vector_store %arg8[%c1_41, %c1_42, %c0_43], %57 {strides = array<i32>} : memref<18x18x128xf32, #tpu.memory_space<vmem>>, vector<16x16x128xf32>,
    %59 = vector.extract_strided_slice %57 {offsets = [1, 0, 0], sizes = [1, 16, 128], strides = [1, 1, 1]} : vector<16x16x128xf32> to vector<1x16x128xf32>
    %c0_44 = arith.constant 0 : index
    %c1_45 = arith.constant 1 : index
    %c0_46 = arith.constant 0 : index
    %60 = vector.load %arg8[%c0_44, %c1_45, %c0_46] : memref<18x18x128xf32, #tpu.memory_space<vmem>>, vector<1x16x128xf32>
    tpu.vector_store %arg8[%c0_44, %c1_45, %c0_46], %59 {strides = array<i32>} : memref<18x18x128xf32, #tpu.memory_space<vmem>>, vector<1x16x128xf32>,
    %61 = vector.extract_strided_slice %57 {offsets = [14, 0, 0], sizes = [1, 16, 128], strides = [1, 1, 1]} : vector<16x16x128xf32> to vector<1x16x128xf32>
    %c17 = arith.constant 17 : index
    %c1_47 = arith.constant 1 : index
    %c0_48 = arith.constant 0 : index
    %62 = vector.load %arg8[%c17, %c1_47, %c0_48] : memref<18x18x128xf32, #tpu.memory_space<vmem>>, vector<1x16x128xf32>
    tpu.vector_store %arg8[%c17, %c1_47, %c0_48], %61 {strides = array<i32>} : memref<18x18x128xf32, #tpu.memory_space<vmem>>, vector<1x16x128xf32>,
    %c0_49 = arith.constant 0 : index
    %c2_50 = arith.constant 2 : index
    %c0_51 = arith.constant 0 : index
    %63 = vector.load %arg8[%c0_49, %c2_50, %c0_51] : memref<18x18x128xf32, #tpu.memory_space<vmem>>, vector<18x1x128xf32>
    %c0_52 = arith.constant 0 : index
    %c0_53 = arith.constant 0 : index
    %c0_54 = arith.constant 0 : index
    %64 = vector.load %arg8[%c0_52, %c0_53, %c0_54] : memref<18x18x128xf32, #tpu.memory_space<vmem>>, vector<18x1x128xf32>
    tpu.vector_store %arg8[%c0_52, %c0_53, %c0_54], %63 {strides = array<i32>} : memref<18x18x128xf32, #tpu.memory_space<vmem>>, vector<18x1x128xf32>,
    %c0_55 = arith.constant 0 : index
    %c15 = arith.constant 15 : index
    %c0_56 = arith.constant 0 : index
    %65 = vector.load %arg8[%c0_55, %c15, %c0_56] : memref<18x18x128xf32, #tpu.memory_space<vmem>>, vector<18x1x128xf32>
    %c0_57 = arith.constant 0 : index
    %c17_58 = arith.constant 17 : index
    %c0_59 = arith.constant 0 : index
    %66 = vector.load %arg8[%c0_57, %c17_58, %c0_59] : memref<18x18x128xf32, #tpu.memory_space<vmem>>, vector<18x1x128xf32>
    tpu.vector_store %arg8[%c0_57, %c17_58, %c0_59], %65 {strides = array<i32>} : memref<18x18x128xf32, #tpu.memory_space<vmem>>, vector<18x1x128xf32>,
    %c0_60 = arith.constant 0 : index
    %c0_61 = arith.constant 0 : index
    %c0_62 = arith.constant 0 : index
    %67 = vector.load %arg8[%c0_60, %c0_61, %c0_62] : memref<18x18x128xf32, #tpu.memory_space<vmem>>, vector<16x16x128xf32>
    %68 = vector.shape_cast %67 : vector<16x16x128xf32> to vector<256x128xf32>
    %69 = arith.truncf %68 : vector<256x128xf32> to vector<256x128xbf16>
    %c0_63 = arith.constant 0 : index
    %c1_64 = arith.constant 1 : index
    %c0_65 = arith.constant 0 : index
    %70 = vector.load %arg8[%c0_63, %c1_64, %c0_65] : memref<18x18x128xf32, #tpu.memory_space<vmem>>, vector<16x16x128xf32>
    %71 = vector.shape_cast %70 : vector<16x16x128xf32> to vector<256x128xf32>
    %72 = arith.truncf %71 : vector<256x128xf32> to vector<256x128xbf16>
    %c0_66 = arith.constant 0 : index
    %c2_67 = arith.constant 2 : index
    %c0_68 = arith.constant 0 : index
    %73 = vector.load %arg8[%c0_66, %c2_67, %c0_68] : memref<18x18x128xf32, #tpu.memory_space<vmem>>, vector<16x16x128xf32>
    %74 = vector.shape_cast %73 : vector<16x16x128xf32> to vector<256x128xf32>
    %75 = arith.truncf %74 : vector<256x128xf32> to vector<256x128xbf16>
    %c1_69 = arith.constant 1 : index
    %c0_70 = arith.constant 0 : index
    %c0_71 = arith.constant 0 : index
    %76 = vector.load %arg8[%c1_69, %c0_70, %c0_71] : memref<18x18x128xf32, #tpu.memory_space<vmem>>, vector<16x16x128xf32>
    %77 = vector.shape_cast %76 : vector<16x16x128xf32> to vector<256x128xf32>
    %78 = arith.truncf %77 : vector<256x128xf32> to vector<256x128xbf16>
    %c1_72 = arith.constant 1 : index
    %c1_73 = arith.constant 1 : index
    %c0_74 = arith.constant 0 : index
    %79 = vector.load %arg8[%c1_72, %c1_73, %c0_74] : memref<18x18x128xf32, #tpu.memory_space<vmem>>, vector<16x16x128xf32>
    %80 = vector.shape_cast %79 : vector<16x16x128xf32> to vector<256x128xf32>
    %81 = arith.truncf %80 : vector<256x128xf32> to vector<256x128xbf16>
    %c1_75 = arith.constant 1 : index
    %c2_76 = arith.constant 2 : index
    %c0_77 = arith.constant 0 : index
    %82 = vector.load %arg8[%c1_75, %c2_76, %c0_77] : memref<18x18x128xf32, #tpu.memory_space<vmem>>, vector<16x16x128xf32>
    %83 = vector.shape_cast %82 : vector<16x16x128xf32> to vector<256x128xf32>
    %84 = arith.truncf %83 : vector<256x128xf32> to vector<256x128xbf16>
    %c2_78 = arith.constant 2 : index
    %c0_79 = arith.constant 0 : index
    %c0_80 = arith.constant 0 : index
    %85 = vector.load %arg8[%c2_78, %c0_79, %c0_80] : memref<18x18x128xf32, #tpu.memory_space<vmem>>, vector<16x16x128xf32>
    %86 = vector.shape_cast %85 : vector<16x16x128xf32> to vector<256x128xf32>
    %87 = arith.truncf %86 : vector<256x128xf32> to vector<256x128xbf16>
    %c2_81 = arith.constant 2 : index
    %c1_82 = arith.constant 1 : index
    %c0_83 = arith.constant 0 : index
    %88 = vector.load %arg8[%c2_81, %c1_82, %c0_83] : memref<18x18x128xf32, #tpu.memory_space<vmem>>, vector<16x16x128xf32>
    %89 = vector.shape_cast %88 : vector<16x16x128xf32> to vector<256x128xf32>
    %90 = arith.truncf %89 : vector<256x128xf32> to vector<256x128xbf16>
    %c2_84 = arith.constant 2 : index
    %c2_85 = arith.constant 2 : index
    %c0_86 = arith.constant 0 : index
    %91 = vector.load %arg8[%c2_84, %c2_85, %c0_86] : memref<18x18x128xf32, #tpu.memory_space<vmem>>, vector<16x16x128xf32>
    %92 = vector.shape_cast %91 : vector<16x16x128xf32> to vector<256x128xf32>
    %93 = arith.truncf %92 : vector<256x128xf32> to vector<256x128xbf16>
    %94 = tpu.concatenate %69, %72, %75, %78, %81, %84, %87, %90, %93 in 1 : vector<256x128xbf16>, vector<256x128xbf16>, vector<256x128xbf16>, vector<256x128xbf16>, vector<256x128xbf16>, vector<256x128xbf16>, vector<256x128xbf16>, vector<256x128xbf16>, vector<256x128xbf16> -> vector<256x1152xbf16>
    %c0_87 = arith.constant 0 : index
    %c0_88 = arith.constant 0 : index
    %95 = vector.load %arg3[%c0_87, %c0_88] : memref<1152x128xbf16, #tpu.memory_space<vmem>>, vector<1152x128xbf16>
    %cst_89 = arith.constant dense<0.000000e+00> : vector<256x128xf32>
    %96 = tpu.matmul %94, %95, %cst_89 {dimension_numbers = #tpu.dot_dimension_numbers<[1], [0], [0], [1], [0, 0, 1, 1], [], []>} : vector<256x1152xbf16>, vector<1152x128xbf16>, vector<256x128xf32> -> vector<256x128xf32>
    %cst_90 = arith.constant dense<0.000000e+00> : vector<128xf32>
    %97 = vector.multi_reduction <add>, %96, %cst_90 [0] : vector<256x128xf32> to vector<128xf32>
    %98 = vector.shape_cast %97 : vector<128xf32> to vector<1x128xf32>
    %cst_91 = arith.constant 2.560000e+02 : f32
    %99 = vector.broadcast %cst_91 : f32 to vector<1x128xf32>
    %100 = arith.divf %98, %99 : vector<1x128xf32>
    %101 = vector.broadcast %100 : vector<1x128xf32> to vector<256x128xf32>
    %102 = arith.subf %96, %101 : vector<256x128xf32>
    %103 = arith.mulf %102, %102 : vector<256x128xf32>
    %cst_92 = arith.constant dense<0.000000e+00> : vector<128xf32>
    %104 = vector.multi_reduction <add>, %103, %cst_92 [0] : vector<256x128xf32> to vector<128xf32>
    %105 = vector.shape_cast %104 : vector<128xf32> to vector<1x128xf32>
    %cst_93 = arith.constant 2.560000e+02 : f32
    %106 = vector.broadcast %cst_93 : f32 to vector<1x128xf32>
    %107 = arith.divf %105, %106 : vector<1x128xf32>
    %cst_94 = arith.constant 9.99999974E-6 : f32
    %108 = vector.broadcast %cst_94 : f32 to vector<1x128xf32>
    %109 = arith.addf %107, %108 : vector<1x128xf32>
    %110 = math.rsqrt %109 : vector<1x128xf32>
    %111 = vector.broadcast %110 : vector<1x128xf32> to vector<256x128xf32>
    %112 = arith.mulf %102, %111 : vector<256x128xf32>
    %c0_95 = arith.constant 0 : index
    %c0_96 = arith.constant 0 : index
    %113 = vector.load %arg4[%c0_95, %c0_96] : memref<256x128xbf16, #tpu.memory_space<vmem>>, vector<256x128xbf16>
    %114 = arith.extf %113 : vector<256x128xbf16> to vector<256x128xf32>
    %115 = arith.mulf %112, %114 : vector<256x128xf32>
    %cst_97 = arith.constant dense<0.000000e+00> : vector<128xf32>
    %116 = vector.multi_reduction <add>, %115, %cst_97 [0] : vector<256x128xf32> to vector<128xf32>
    %117 = vector.shape_cast %116 : vector<128xf32> to vector<1x128xf32>
    %c0_98 = arith.constant 0 : index
    %c0_99 = arith.constant 0 : index
    %118 = vector.load %arg5[%c0_98, %c0_99] : memref<128x8xf32, #tpu.memory_space<vmem>>, vector<128x8xf32>
    %cst_100 = arith.constant dense<0.000000e+00> : vector<1x8xf32>
    %119 = tpu.matmul %117, %118, %cst_100 {dimension_numbers = #tpu.dot_dimension_numbers<[1], [0], [0], [1], [0, 0, 1, 1], [], []>} : vector<1x128xf32>, vector<128x8xf32>, vector<1x8xf32> -> vector<1x8xf32>
    %cst_101 = arith.constant 0.000000e+00 : f32
    %120 = vector.broadcast %cst_101 : f32 to vector<1x8xf32>
    %121 = arith.maximumf %119, %120 : vector<1x8xf32>
    %c0_102 = arith.constant 0 : index
    %c0_103 = arith.constant 0 : index
    %122 = vector.load %arg6[%c0_102, %c0_103] : memref<8x128xf32, #tpu.memory_space<vmem>>, vector<8x128xf32>
    %cst_104 = arith.constant dense<0.000000e+00> : vector<1x128xf32>
    %123 = tpu.matmul %121, %122, %cst_104 {dimension_numbers = #tpu.dot_dimension_numbers<[1], [0], [0], [1], [0, 0, 1, 1], [], []>} : vector<1x8xf32>, vector<8x128xf32>, vector<1x128xf32> -> vector<1x128xf32>
    %124 = arith.negf %123 : vector<1x128xf32>
    %125 = math.exp %124 : vector<1x128xf32>
    %cst_105 = arith.constant 1.000000e+00 : f32
    %126 = vector.broadcast %cst_105 : f32 to vector<1x128xf32>
    %127 = arith.addf %126, %125 : vector<1x128xf32>
    %128 = arith.divf %126, %127 : vector<1x128xf32>
    %c0_106 = arith.constant 0 : index
    %c1_107 = arith.constant 1 : index
    %c1_108 = arith.constant 1 : index
    %c0_109 = arith.constant 0 : index
    %129 = vector.load %arg1[%c0_106, %c1_107, %c1_108, %c0_109] : memref<1x18x18x128xf32, #tpu.memory_space<vmem>>, vector<1x16x16x128xf32>
    %130 = vector.shape_cast %129 : vector<1x16x16x128xf32> to vector<16x16x128xf32>
    %131 = vector.shape_cast %130 : vector<16x16x128xf32> to vector<256x128xf32>
    %132 = vector.broadcast %128 : vector<1x128xf32> to vector<256x128xf32>
    %133 = arith.mulf %112, %132 : vector<256x128xf32>
    %134 = arith.addf %131, %133 : vector<256x128xf32>
    %c0_110 = arith.constant 0 : index
    %c0_111 = arith.constant 0 : index
    %c0_112 = arith.constant 0 : index
    %135 = vector.load %arg7[%c0_110, %c0_111, %c0_112] : memref<1x256x128xf32, #tpu.memory_space<vmem>>, vector<1x256x128xf32>
    %136 = vector.shape_cast %135 : vector<1x256x128xf32> to vector<256x128xf32>
    %137 = vector.shape_cast %134 : vector<256x128xf32> to vector<1x256x128xf32>
    tpu.vector_store %arg7[%c0_110, %c0_111, %c0_112], %137 {strides = array<i32>} : memref<1x256x128xf32, #tpu.memory_space<vmem>>, vector<1x256x128xf32>,
    return
  }
  func.func @transform_0(%arg0: i32) -> (i32, i32, i32, i32) {
    %c0_i32 = arith.constant 0 : i32
    %c0_i32_0 = arith.constant 0 : i32
    %c0_i32_1 = arith.constant 0 : i32
    %c0_i32_2 = arith.constant 0 : i32
    return %arg0, %c0_i32, %c0_i32_0, %c0_i32_1 : i32, i32, i32, i32
  }
  func.func @transform_1(%arg0: i32) -> (i32, i32) {
    %c0_i32 = arith.constant 0 : i32
    %c0_i32_0 = arith.constant 0 : i32
    %c0_i32_1 = arith.constant 0 : i32
    return %c0_i32, %c0_i32_0 : i32, i32
  }
  func.func @transform_2(%arg0: i32) -> (i32, i32) {
    %c0_i32 = arith.constant 0 : i32
    %c0_i32_0 = arith.constant 0 : i32
    %c0_i32_1 = arith.constant 0 : i32
    return %c0_i32, %c0_i32_0 : i32, i32
  }
  func.func @transform_3(%arg0: i32) -> (i32, i32) {
    %c0_i32 = arith.constant 0 : i32
    %c0_i32_0 = arith.constant 0 : i32
    %c0_i32_1 = arith.constant 0 : i32
    return %c0_i32, %c0_i32_0 : i32, i32
  }
  func.func @transform_4(%arg0: i32) -> (i32, i32) {
    %c0_i32 = arith.constant 0 : i32
    %c0_i32_0 = arith.constant 0 : i32
    %c0_i32_1 = arith.constant 0 : i32
    return %c0_i32, %c0_i32_0 : i32, i32
  }
  func.func @transform_5(%arg0: i32) -> (i32, i32) {
    %c0_i32 = arith.constant 0 : i32
    %c0_i32_0 = arith.constant 0 : i32
    %c0_i32_1 = arith.constant 0 : i32
    return %c0_i32, %c0_i32_0 : i32, i32
  }
  func.func @transform_6(%arg0: i32) -> (i32, i32, i32) {
    %c0_i32 = arith.constant 0 : i32
    %c0_i32_0 = arith.constant 0 : i32
    %c0_i32_1 = arith.constant 0 : i32
    return %arg0, %c0_i32, %c0_i32_0 : i32, i32, i32
  }
}

</mosaic_0001>

<bundles_post_ra>
// kernel: resnet_block_forward.1
= control target key start
LH: loop header
LB: loop body
LE: loop exit
PB: predicated region body
PF: predicated region fallthrough
CT: control target
= control target key end

     0   :  { %11 = vsyncpa [#allocation4], 0  ;;  %s9299_s0 = inlined_call_operand.vmem [shape: f32[2,18,18,128], index: 0, kind: input, shape index: {}]   ;;  %s9300_s1 = inlined_call_operand.vmem [shape: bf16[1152,128], index: 1, kind: input, shape index: {}]   ;;  %s9301_s2 = inlined_call_operand.vmem [shape: bf16[1152,128], index: 2, kind: input, shape index: {}]   ;;  %s9302_s3 = inlined_call_operand.vmem [shape: bf16[256,128], index: 3, kind: input, shape index: {}]   ;;  %s9303_s4 = inlined_call_operand.vmem [shape: f32[128,8], index: 4, kind: input, shape index: {}]   ;;  %s9304_s5 = inlined_call_operand.vmem [shape: f32[8,128], index: 5, kind: input, shape index: {}]   ;;  %s9305_s6 = inlined_call_operand.hbm [shape: f32[2,256,128], index: 6, kind: output, shape index: {}]  }
   0x1   :  { %13 = vsyncpa [#allocation4 + $0x1], 0  ;;  %s6766_s21 = smov 0   ;;  %s6768_s22 = smov 0  }
   0x2   :  { %s6770_s23 = smov 0   ;;  %s6772_s24 = smov 0  }
   0x3 LB: > { %s6787_s25 = sadd.s32 4294967295, %s6723_s24   ;;  %s4880_s26 = sadd.s32 4294967294, %s6723_s24   ;;  %s6723_s24 = sphi %s6772_s24, %s9319_s24   ;;  %s6719_s23 = sphi %s6770_s23, %s9318_s23   ;;  %s6715_s22 = sphi %s6768_s22, %s9317_s22   ;;  %s6711_s21 = sphi %s6766_s21, %s9316_s21  }
   0x4   : > { %s6791_s27 = sadd.s32 1, %s6723_s24   ;;  %s157_s28 = sadd.s32 1, %s6719_s23 }
   0x5   : > { %s154_s29 = ssub.s32 %s6723_s24, %s6791_s27  ;;  %p167_p0 = scmp.ne.s32.totalorder %s6719_s23, %s6715_s22 }
   0x6   : > { %p155_p1 = scmp.eq.s32.totalorder %s154_s29, 0  ;;  %p168_p2 = scmp.eq.s32.totalorder %s6787_s25, 1 }
   0x7   : > { %p173_p3 = scmp.ne.s32.totalorder %s6715_s22, %s6711_s21  ;;  %p174_p4 = scmp.eq.s32.totalorder %s4880_s26, 1 }
   0x8   : > { %s6802_s30 = scalar_select %p155_p1, %s6719_s23, %s157_s28  }
   0x9   : > { %p6804_p5 = por %p168_p2, %p167_p0  ;;  %p6808_p6 = por %p174_p4, %p173_p3 }
   0xa   : > { %p4883_p7 = scmp.ge.s32.totalorder %s6723_s24, 1  ;;  %p215_p8 = scmp.lt.s32.totalorder %s6723_s24, 3 }
   0xc   : > { %p216_p9 = pnand %p4883_p7, %p215_p8 }
   0xe   : > { %219 = sbr.rel (%p216_p9) target bundleno = 1962 (0x7aa), region = 44 }
  0x15   : > { %v6509_v0 = vld [vmem:[%s9300_s1 + $0x40] sm:$0xff]   ;;  %v6513_v4 = vld [vmem:[%s9300_s1 + $0x48] sm:$0xff]   ;;  %v6517_v8 = vld [vmem:[%s9300_s1 + $0x50] sm:$0xff]   ;;  %p245_p10 = scmp.lt.s32.totalorder %s6787_s25, 1  ;;  %vm6726_vm0 = vmmov 0   ;;  %vm4592_vm1 = vcmask 64512  }
  0x16   : > { %v6510_v1 = vld [vmem:[%s9300_s1 + $0xc0] sm:$0xff]   ;;  %5341 = vmatprep.subr.bf16.mxu0 %v6509_v0  ;;  %v6514_v5 = vld [vmem:[%s9300_s1 + $0xc8] sm:$0xff]   ;;  %v6518_v9 = vld [vmem:[%s9300_s1 + $0xd0] sm:$0xff]   ;;  %s242_s14 = sand.u32 1, %s6715_s22   ;;  %s5261_s18 = sshll.u32 %s6787_s25, 12 }
  0x17   : > { %v6511_v2 = vld [vmem:[%s9300_s1] sm:$0xff]   ;;  %5453 = vmatprep.subr.bf16.mxu1 %v6510_v1  ;;  %v6515_v6 = vld [vmem:[%s9300_s1 + $0x8] sm:$0xff]   ;;  %v6519_v10 = vld [vmem:[%s9300_s1 + $0x10] sm:$0xff]   ;;  %s246_s29 = scalar_select %p245_p10, %s6787_s25, 1 }
  0x18   : > { %v6512_v3 = vld [vmem:[%s9300_s1 + $0x80] sm:$0xff]   ;;  %5342 = vmatpush3.bf16.msra.mxu0 %v6511_v2  ;;  %v6516_v7 = vld [vmem:[%s9300_s1 + $0x88] sm:$0xff]   ;;  %v6520_v11 = vld [vmem:[%s9300_s1 + $0x90] sm:$0xff]   ;;  %s9110_s15 = sshll.u32 %s242_s14, 8  ;;  %s9234_s20 = scalar_lea.hbm %s9305_s6, %s5261_s18 }
  0x19   : > { %5454 = vmatpush3.bf16.msra.mxu1 %v6512_v3  ;;  %5343 = vmatprep.subr.bf16.mxu0 %v6513_v4  ;;  %v6521_v12 = vld [vmem:[%s9300_s1 + $0x58] sm:$0xff]   ;;  %v6525_v16 = vld [vmem:[%s9300_s1 + $0x60] sm:$0xff]   ;;  %v6529_v20 = vld [vmem:[%s9300_s1 + $0x68] sm:$0xff]   ;;  %s6464_s17 = smul.u32 432, %s246_s29  ;;  %s9183_s16 = scalar_lea.vmem [#allocation3], %s9110_s15 }
  0x1a   : > { %5455 = vmatprep.subr.bf16.mxu1 %v6514_v5  ;;  %v6522_v13 = vld [vmem:[%s9300_s1 + $0xd8] sm:$0xff]   ;;  %v6526_v17 = vld [vmem:[%s9300_s1 + $0xe0] sm:$0xff]   ;;  %v6530_v21 = vld [vmem:[%s9300_s1 + $0xe8] sm:$0xff]   ;;  %s9258_s25 = scalar_lea.sflag [#allocation4], %s242_s14  ;;  %s6728_s28 = smov [#allocation3]  }
  0x1b   : > { %v6523_v14 = vld [vmem:[%s9300_s1 + $0x18] sm:$0xff]   ;;  %v6527_v18 = vld [vmem:[%s9300_s1 + $0x20] sm:$0xff]   ;;  %v6531_v22 = vld [vmem:[%s9300_s1 + $0x28] sm:$0xff]   ;;  %s6909_s13 = scalar_lea.vmem %s9299_s0, %s6464_s17  ;;  %s4818_s17 = sshll.u32 %s9183_s16, 4  ;;  %s9238_s17 = int_to_ptr.vmem [resolvable:$true] %s4818_s17 }
  0x1c   : > { %5344 = vmatpush3.bf16.msra.mxu0 %v6515_v6  ;;  %v6524_v15 = vld [vmem:[%s9300_s1 + $0x98] sm:$0xff]   ;;  %v6528_v19 = vld [vmem:[%s9300_s1 + $0xa0] sm:$0xff]   ;;  %v6532_v23 = vld [vmem:[%s9300_s1 + $0xa8] sm:$0xff]   ;;  %s6661_s26 = scalar_lea.vmem %s9238_s17, 4096  ;;  %s6665_s9 = sshll.u32 %s6728_s28, 4  ;;  %s6666_s9 = int_to_ptr.vmem [resolvable:$false] %s6665_s9 }
  0x1d   : > { %5456 = vmatpush3.bf16.msra.mxu1 %v6516_v7  ;;  %5345 = vmatprep.subr.bf16.mxu0 %v6517_v8  ;;  %v6533_v24 = vld [vmem:[%s9300_s1 + $0x70] sm:$0xff]   ;;  %v6537_v28 = vld [vmem:[%s9300_s1 + $0x78] sm:$0xff]   ;;  %v299_v32 = vld [vmem:[%s6909_s13 + $0x1] sm:$0xff]  ;;  %p6662_p11 = scmp.ne.s32.totalorder %s9238_s17, %s6661_s26  ;;  %s6667_s10 = scalar_lea.vmem %s6666_s9, 8192 }
  0x1e   : > { %5457 = vmatprep.subr.bf16.mxu1 %v6518_v9  ;;  %v6534_v25 = vld [vmem:[%s9300_s1 + $0xf0] sm:$0xff]   ;;  %v6538_v29 = vld [vmem:[%s9300_s1 + $0xf8] sm:$0xff]   ;;  %v4887_v36 = vld [vmem:[%s6909_s13 + $0x20] sm:$0xff]  ;;  %p6668_p0 = scmp.lt.s32.totalorder %s9238_s17, %s6666_s9  ;;  %p6669_p1 = scmp.lt.s32.totalorder %s6667_s10, %s6661_s26 }
  0x1f   : > { %v6535_v26 = vld [vmem:[%s9300_s1 + $0x30] sm:$0xff]   ;;  %v6539_v30 = vld [vmem:[%s9300_s1 + $0x38] sm:$0xff]   ;;  %v251_v37 = vld [vmem:[%s6909_s13] sm:$0xff]  ;;  %p6663_p12 = pnand %p6662_p11, %p6804_p5 }
  0x20   : > { %5346 = vmatpush3.bf16.msra.mxu0 %v6519_v10  ;;  %v6536_v27 = vld [vmem:[%s9300_s1 + $0xb0] sm:$0xff]   ;;  %v6540_v31 = vld [vmem:[%s9300_s1 + $0xb8] sm:$0xff]   ;;  %v252_v38 = vld [vmem:[%s6909_s13 + $0x8] sm:$0xff]  ;;  %p6670_p2 = por %p6669_p1, %p6668_p0 }
  0x21   : > { %5458 = vmatpush3.bf16.msra.mxu1 %v6520_v11  ;;  %5347 = vmatprep.subr.bf16.mxu0 %v6521_v12  ;;  %v300_v33 = vld [vmem:[%s6909_s13 + $0x9] sm:$0xff]  ;;  %v4886_v34 = vld [vmem:[%s6909_s13 + $0x18] sm:$0xff]  ;;  %v283_v40 = vpack.c.bf16 %v252_v38, %v251_v37  ;;  %v6541_v44 = vld [vmem:[%s9300_s1 + $0x140] sm:$0xff]   ;;  %p6664_p13 = pneg %p6663_p12 }
  0x22   : > { %5459 = vmatprep.subr.bf16.mxu1 %v6522_v13  ;;  %v331_v35 = vpack.c.bf16 %v300_v33, %v299_v32  ;;  %v428_v39 = vpack.c.bf16 %v4887_v36, %v4886_v34  ;;  %v347_v41 = vld [vmem:[%s6909_s13 + $0x2] sm:$0xff]  ;;  %v348_v42 = vld [vmem:[%s6909_s13 + $0xa] sm:$0xff]  ;;  %v301_v46 = vld [vmem:[%s6909_s13 + $0x19] sm:$0xff] }
  0x23   : > { %v379_v43 = vpack.c.bf16 %v348_v42, %v347_v41  ;;  %v6542_v45 = vld [vmem:[%s9300_s1 + $0x100] sm:$0xff]   ;;  %v4888_v48 = vld [vmem:[%s6909_s13 + $0x30] sm:$0xff]  ;;  %v4889_v49 = vld [vmem:[%s6909_s13 + $0x38] sm:$0xff]  ;;  %p6671_p3 = pnand %p6670_p2, %p6664_p13 }
  0x24   : > { %5348 = vmatpush3.bf16.msra.mxu0 %v6523_v14  ;;  %1293 = vmatprep.mubr.bf16.mxu0 %v331_v35  ;;  %v302_v47 = vld [vmem:[%s6909_s13 + $0x21] sm:$0xff]  ;;  %v6937_v51 = vpack.c.bf16 %v4889_v49, %v4888_v48  ;;  %v303_v54 = vld [vmem:[%s6909_s13 + $0x31] sm:$0xff]  ;;  %v304_v55 = vld [vmem:[%s6909_s13 + $0x39] sm:$0xff] }
  0x25   : > { %5460 = vmatpush3.bf16.msra.mxu1 %v6524_v15  ;;  %5349 = vmatprep.subr.bf16.mxu0 %v6525_v16  ;;  %v6935_v50 = vpack.c.bf16 %v302_v47, %v301_v46  ;;  %v349_v52 = vld [vmem:[%s6909_s13 + $0x1a] sm:$0xff]  ;;  %v350_v53 = vld [vmem:[%s6909_s13 + $0x22] sm:$0xff]  ;;  %v4891_v57 = vld [vmem:[%s6909_s13 + $0x50] sm:$0xff]  ;;  %v6949_v59 = vpack.c.bf16 %v304_v55, %v303_v54 }
  0x26   : > { %5461 = vmatprep.subr.bf16.mxu1 %v6526_v17  ;;  %1454 = vmatprep.mubr.bf16.mxu1 %v428_v39  ;;  %v4890_v56 = vld [vmem:[%s6909_s13 + $0x48] sm:$0xff]  ;;  %v6947_v58 = vpack.c.bf16 %v350_v53, %v349_v52  ;;  %v351_v63 = vld [vmem:[%s6909_s13 + $0x32] sm:$0xff]  ;;  %v352_v0 = vld [vmem:[%s6909_s13 + $0x3a] sm:$0xff] }
  0x27   : > { %v6543_v60 = vld [vmem:[%s9300_s1 + $0x148] sm:$0xff]   ;;  %v6954_v61 = vpack.c.bf16 %v4891_v57, %v4890_v56  ;;  %v306_v2 = vld [vmem:[%s6909_s13 + $0x51] sm:$0xff]  ;;  %v4892_v3 = vld [vmem:[%s6909_s13 + $0x60] sm:$0xff]  ;;  %v6974_v7 = vpack.c.bf16 %v352_v0, %v351_v63 }
  0x28   : > { %5350 = vmatpush3.bf16.msra.mxu0 %v6527_v18  ;;  %v6544_v62 = vld [vmem:[%s9300_s1 + $0x108] sm:$0xff]   ;;  %v6545_v5 = vld [vmem:[%s9300_s1 + $0x150] sm:$0xff]   ;;  %v6547_v13 = vld [vmem:[%s9300_s1 + $0x158] sm:$0xff]  }
  0x29   : > { %5462 = vmatpush3.bf16.msra.mxu1 %v6528_v19  ;;  %5351 = vmatprep.subr.bf16.mxu0 %v6529_v20  ;;  %v305_v1 = vld [vmem:[%s6909_s13 + $0x49] sm:$0xff]  ;;  %v354_v11 = vld [vmem:[%s6909_s13 + $0x52] sm:$0xff]  ;;  %v307_v12 = vld [vmem:[%s6909_s13 + $0x61] sm:$0xff] }
  0x2a   : > { %5463 = vmatprep.subr.bf16.mxu1 %v6530_v21  ;;  %v4893_v4 = vld [vmem:[%s6909_s13 + $0x68] sm:$0xff]  ;;  %v6546_v6 = vld [vmem:[%s9300_s1 + $0x110] sm:$0xff]   ;;  %v6976_v8 = vpack.c.bf16 %v306_v2, %v305_v1  ;;  %v6548_v15 = vld [vmem:[%s9300_s1 + $0x118] sm:$0xff]  }
  0x2b   : > { %v6978_v9 = vpack.c.bf16 %v4893_v4, %v4892_v3  ;;  %v353_v10 = vld [vmem:[%s6909_s13 + $0x4a] sm:$0xff]  ;;  %v4894_v16 = vld [vmem:[%s6909_s13 + $0x78] sm:$0xff]  ;;  %v4895_v17 = vld [vmem:[%s6909_s13 + $0x80] sm:$0xff] }
  0x2c   : > { %5352 = vmatpush3.bf16.msra.mxu0 %v6531_v22  ;;  %v308_v14 = vld [vmem:[%s6909_s13 + $0x69] sm:$0xff]  ;;  %v6996_v18 = vpack.c.bf16 %v354_v11, %v353_v10  ;;  %v7000_v20 = vpack.c.bf16 %v4895_v17, %v4894_v16  ;;  %v6549_v21 = vld [vmem:[%s9300_s1 + $0x160] sm:$0xff]   ;;  %v311_v37 = vld [vmem:[%s6909_s13 + $0x91] sm:$0xff] }
  0x2d   : > { %5464 = vmatpush3.bf16.msra.mxu1 %v6532_v23  ;;  %5353 = vmatprep.subr.bf16.mxu0 %v6533_v24  ;;  %v6998_v19 = vpack.c.bf16 %v308_v14, %v307_v12  ;;  %v355_v22 = vld [vmem:[%s6909_s13 + $0x62] sm:$0xff]  ;;  %v356_v23 = vld [vmem:[%s6909_s13 + $0x6a] sm:$0xff]  ;;  %v309_v24 = vld [vmem:[%s6909_s13 + $0x79] sm:$0xff] }
  0x2e   : > { %5465 = vmatprep.subr.bf16.mxu1 %v6534_v25  ;;  %v6550_v25 = vld [vmem:[%s9300_s1 + $0x1c0] sm:$0xff]   ;;  %v6553_v34 = vld [vmem:[%s9300_s1 + $0x168] sm:$0xff]   ;;  %v6557_v47 = vld [vmem:[%s9300_s1 + $0x170] sm:$0xff]  }
  0x2f   : > { %v357_v35 = vld [vmem:[%s6909_s13 + $0x7a] sm:$0xff]  ;;  %v358_v36 = vld [vmem:[%s6909_s13 + $0x82] sm:$0xff]  ;;  %v359_v48 = vld [vmem:[%s6909_s13 + $0x92] sm:$0xff] }
  0x30   : > { %5354 = vmatpush3.bf16.msra.mxu0 %v6535_v26  ;;  %v6551_v26 = vld [vmem:[%s9300_s1 + $0x120] sm:$0xff]   ;;  %v6554_v38 = vld [vmem:[%s9300_s1 + $0x1c8] sm:$0xff]   ;;  %v6558_v53 = vld [vmem:[%s9300_s1 + $0x1d0] sm:$0xff]  }
  0x31   : > { %5466 = vmatpush3.bf16.msra.mxu1 %v6536_v27  ;;  %5355 = vmatprep.subr.bf16.mxu0 %v6537_v28  ;;  %v310_v27 = vld [vmem:[%s6909_s13 + $0x81] sm:$0xff]  ;;  %v313_v52 = vld [vmem:[%s6909_s13 + $0xa9] sm:$0xff]  ;;  %v314_v55 = vld [vmem:[%s6909_s13 + $0xb1] sm:$0xff] }
  0x32   : > { %5467 = vmatprep.subr.bf16.mxu1 %v6538_v29  ;;  %v6552_v28 = vld [vmem:[%s9300_s1 + $0x180] sm:$0xff]   ;;  %v4896_v29 = vld [vmem:[%s6909_s13 + $0x90] sm:$0xff]  ;;  %v7026_v32 = vpack.c.bf16 %v310_v27, %v309_v24  ;;  %v6556_v41 = vld [vmem:[%s9300_s1 + $0x188] sm:$0xff]   ;;  %v7082_v63 = vpack.c.bf16 %v314_v55, %v313_v52 }
  0x33   : > { %v4898_v42 = vld [vmem:[%s6909_s13 + $0xa8] sm:$0xff]  ;;  %v360_v49 = vld [vmem:[%s6909_s13 + $0x9a] sm:$0xff]  ;;  %v6559_v54 = vld [vmem:[%s9300_s1 + $0x130] sm:$0xff]  }
  0x34   : > { %5356 = vmatpush3.bf16.msra.mxu0 %v6539_v30  ;;  %v4897_v30 = vld [vmem:[%s6909_s13 + $0x98] sm:$0xff]  ;;  %v6560_v56 = vld [vmem:[%s9300_s1 + $0x190] sm:$0xff]   ;;  %v4900_v57 = vld [vmem:[%s6909_s13 + $0xc0] sm:$0xff] }
  0x35   : > { %5468 = vmatpush3.bf16.msra.mxu1 %v6540_v31  ;;  %5565 = vmatprep.subr.bf16.mxu0 %v6541_v44  ;;  %v7024_v31 = vpack.c.bf16 %v356_v23, %v355_v22  ;;  %v7028_v33 = vpack.c.bf16 %v4897_v30, %v4896_v29  ;;  %v7052_v44 = vpack.c.bf16 %v358_v36, %v357_v35  ;;  %v6561_v0 = vld [vmem:[%s9300_s1 + $0x1d8] sm:$0xff]   ;;  %v361_v3 = vld [vmem:[%s6909_s13 + $0xaa] sm:$0xff]  ;;  %v4903_v11 = vld [vmem:[%s6909_s13 + $0xe0] sm:$0xff] }
  0x36   : > { %5677 = vmatprep.subr.bf16.mxu1 %v6550_v25  ;;  %v6562_v2 = vld [vmem:[%s9300_s1 + $0x198] sm:$0xff]   ;;  %v6565_v14 = vld [vmem:[%s9300_s1 + $0x1e0] sm:$0xff]   ;;  %v6568_v23 = vld [vmem:[%s9300_s1 + $0x1a8] sm:$0xff]  }
  0x37   : > { %1294 = vmatmul.mubr.bf16.vlgmr.msra.gmra.mrb[0].mxu0 %v283_v40  ;;  %v312_v40 = vld [vmem:[%s6909_s13 + $0x99] sm:$0xff]  ;;  %v363_v24 = vld [vmem:[%s6909_s13 + $0xc2] sm:$0xff]  ;;  %v364_v25 = vld [vmem:[%s6909_s13 + $0xca] sm:$0xff] }
  0x38   : > { %1455 = vmatmul.mubr.bf16.vlgmr.msra.gmra.mrb[0].mxu1 %v379_v43  ;;  %5566 = vmatpush3.bf16.msra.mxu0 %v6542_v45  ;;  %v4899_v43 = vld [vmem:[%s6909_s13 + $0xb0] sm:$0xff]  ;;  %v7054_v45 = vpack.c.bf16 %v312_v40, %v311_v37  ;;  %v4902_v10 = vld [vmem:[%s6909_s13 + $0xd8] sm:$0xff]  ;;  %v318_v27 = vld [vmem:[%s6909_s13 + $0xe1] sm:$0xff]  ;;  %v7145_v36 = vpack.c.bf16 %v364_v25, %v363_v24 }
  0x39   : > { %1301 = vmatprep.mubr.bf16.mxu0 %v6935_v50  ;;  %1462 = vmatprep.mubr.bf16.mxu1 %v6937_v51  ;;  %v7056_v46 = vpack.c.bf16 %v4899_v43, %v4898_v42  ;;  %v362_v4 = vld [vmem:[%s6909_s13 + $0xb2] sm:$0xff]  ;;  %v7121_v22 = vpack.c.bf16 %v4903_v11, %v4902_v10  ;;  %v366_v42 = vld [vmem:[%s6909_s13 + $0xe2] sm:$0xff]  ;;  %v372_v25 = vld [vmem:[%s6909_s13 + $0x12a] sm:$0xff] }
  0x3a   : > { %5567 = vmatprep.subr.bf16.mxu0 %v6543_v60  ;;  %5678 = vmatpush3.bf16.msra.mxu1 %v6552_v28  ;;  %v4901_v60 = vld [vmem:[%s6909_s13 + $0xc8] sm:$0xff]  ;;  %v6563_v12 = vld [vmem:[%s9300_s1 + $0x178] sm:$0xff]   ;;  %v7114_v16 = vpack.c.bf16 %v362_v4, %v361_v3  ;;  %v4904_v28 = vld [vmem:[%s6909_s13 + $0xf0] sm:$0xff] }
  0x3b   : > { %5679 = vmatprep.subr.bf16.mxu1 %v6554_v38  ;;  %v7087_v1 = vpack.c.bf16 %v4901_v60, %v4900_v57  ;;  %v4905_v29 = vld [vmem:[%s6909_s13 + $0xf8] sm:$0xff]  ;;  %v6569_v30 = vld [vmem:[%s9300_s1 + $0x1f0] sm:$0xff]   ;;  %v7152_v38 = vld [vmem:[%s9300_s1 + $0x200] sm:$0xff]  }
  0x3c   : > { %5568 = vmatpush3.bf16.msra.mxu0 %v6544_v62  ;;  %v7080_v62 = vpack.c.bf16 %v360_v49, %v359_v48  ;;  %v6571_v35 = vld [vmem:[%s9300_s1 + $0x1f8] sm:$0xff]   ;;  %v4906_v48 = vld [vmem:[%s6909_s13 + $0x108] sm:$0xff]  ;;  %v4907_v49 = vld [vmem:[%s6909_s13 + $0x110] sm:$0xff] }
  0x3d   : > { %5569 = vmatprep.subr.bf16.mxu0 %v6545_v5  ;;  %v315_v5 = vld [vmem:[%s6909_s13 + $0xc1] sm:$0xff]  ;;  %v6572_v40 = vld [vmem:[%s9300_s1 + $0x1b8] sm:$0xff]   ;;  %v321_v57 = vld [vmem:[%s6909_s13 + $0x109] sm:$0xff] }
  0x3e   : > { %5680 = vmatpush3.bf16.msra.mxu1 %v6556_v41  ;;  %v365_v41 = vld [vmem:[%s6909_s13 + $0xda] sm:$0xff]  ;;  %v319_v43 = vld [vmem:[%s6909_s13 + $0xf1] sm:$0xff]  ;;  %v371_v24 = vld [vmem:[%s6909_s13 + $0x122] sm:$0xff] }
  0x3f   : > { %1302 = vmatmul.mubr.bf16.gmra.mrb[4].mxu0 %v428_v39  ;;  %v6555_v39 = vld [vmem:[%s9300_s1 + $0x128] sm:$0xff]   ;;  %5681 = vmatprep.subr.bf16.mxu1 %v6558_v53  ;;  %v7170_v52 = vpack.c.bf16 %v366_v42, %v365_v41  ;;  %v367_v55 = vld [vmem:[%s6909_s13 + $0xf2] sm:$0xff] }
  0x40   : > { %1463 = vmatmul.mubr.bf16.gmra.mrb[4].mxu1 %v6947_v58  ;;  %1309 = vmatprep.mubr.bf16.mxu0 %v6949_v59  ;;  %v322_v60 = vld [vmem:[%s6909_s13 + $0x111] sm:$0xff]  ;;  %v323_v11 = vld [vmem:[%s6909_s13 + $0x121] sm:$0xff] }
  0x41   : > { %1470 = vmatprep.mubr.bf16.mxu1 %v6954_v61  ;;  %5570 = vmatpush3.bf16.msra.mxu0 %v6546_v6  ;;  %v316_v6 = vld [vmem:[%s6909_s13 + $0xc9] sm:$0xff]  ;;  %v7188_v4 = vpack.c.bf16 %v322_v60, %v321_v57  ;;  %v370_v10 = vld [vmem:[%s6909_s13 + $0x112] sm:$0xff]  ;;  %v376_v60 = vld [vmem:[%s6909_s13 + $0x15a] sm:$0xff] }
  0x42   : > { %5571 = vmatprep.subr.bf16.mxu0 %v6547_v13  ;;  %5682 = vmatpush3.bf16.msra.mxu1 %v6560_v56  ;;  %v6564_v13 = vld [vmem:[%s9300_s1 + $0x138] sm:$0xff]   ;;  %v7116_v17 = vpack.c.bf16 %v316_v6, %v315_v5  ;;  %v369_v6 = vld [vmem:[%s6909_s13 + $0x10a] sm:$0xff]  ;;  %v374_v41 = vld [vmem:[%s6909_s13 + $0x142] sm:$0xff] }
  0x43   : > { %5683 = vmatprep.subr.bf16.mxu1 %v6561_v0  ;;  %v368_v56 = vld [vmem:[%s6909_s13 + $0xfa] sm:$0xff]  ;;  %v327_v42 = vld [vmem:[%s6909_s13 + $0x151] sm:$0xff] }
  0x44   : > { %v4908_v0 = vld [vmem:[%s6909_s13 + $0x120] sm:$0xff]  ;;  %v7186_v3 = vpack.c.bf16 %v368_v56, %v367_v55  ;;  %v375_v57 = vld [vmem:[%s6909_s13 + $0x152] sm:$0xff] }
  0x45   : > { %5572 = vmatpush3.bf16.msra.mxu0 %v6548_v15  ;;  %v6566_v15 = vld [vmem:[%s9300_s1 + $0x1a0] sm:$0xff]  }
  0x46   : > { %5573 = vmatprep.subr.bf16.mxu0 %v6549_v21  ;;  %5684 = vmatpush3.bf16.msra.mxu1 %v6562_v2  ;;  %v6567_v21 = vld [vmem:[%s9300_s1 + $0x1e8] sm:$0xff]  }
  0x47   : > { %1310 = vmatmul.mubr.bf16.gmra.mrb[8].mxu0 %v6937_v51  ;;  %5685 = vmatprep.subr.bf16.mxu1 %v6565_v14  ;;  %v4909_v2 = vld [vmem:[%s6909_s13 + $0x128] sm:$0xff]  ;;  %v4911_v14 = vld [vmem:[%s6909_s13 + $0x140] sm:$0xff] }
  0x48   : > { %1471 = vmatmul.mubr.bf16.gmra.mrb[8].mxu1 %v6974_v7  ;;  %1317 = vmatprep.mubr.bf16.mxu0 %v6976_v8  ;;  %v7190_v5 = vpack.c.bf16 %v4909_v2, %v4908_v0  ;;  %v329_v0 = vld [vmem:[%s6909_s13 + $0x169] sm:$0xff]  ;;  %v330_v2 = vld [vmem:[%s6909_s13 + $0x171] sm:$0xff] }
  0x49   : > { %1478 = vmatprep.mubr.bf16.mxu1 %v6978_v9  ;;  %5574 = vmatpush3.bf16.msra.mxu0 %v6551_v26  ;;  %v317_v26 = vld [vmem:[%s6909_s13 + $0xd9] sm:$0xff] }
  0x4a   : > { %5575 = vmatprep.subr.bf16.mxu0 %v6553_v34  ;;  %5686 = vmatpush3.bf16.msra.mxu1 %v6566_v15  ;;  %v6570_v34 = vld [vmem:[%s9300_s1 + $0x1b0] sm:$0xff]   ;;  %v7147_v37 = vpack.c.bf16 %v318_v27, %v317_v26  ;;  %v7202_v15 = vpack.c.bf16 %v370_v10, %v369_v6  ;;  %v325_v26 = vld [vmem:[%s6909_s13 + $0x139] sm:$0xff]  ;;  %v326_v27 = vld [vmem:[%s6909_s13 + $0x141] sm:$0xff] }
  0x4b   : > { %5687 = vmatprep.subr.bf16.mxu1 %v6567_v21  ;;  %v4916_v6 = vld [vmem:[%s6909_s13 + $0x180] sm:$0xff]  ;;  %v4917_v10 = vld [vmem:[%s6909_s13 + $0x188] sm:$0xff] }
  0x4d   : > { %5576 = vmatpush3.bf16.msra.mxu0 %v6555_v39  ;;  %v7154_v39 = vpack.c.bf16 %v4905_v29, %v4904_v28  ;;  %v4912_v28 = vld [vmem:[%s6909_s13 + $0x150] sm:$0xff]  ;;  %v4913_v29 = vld [vmem:[%s6909_s13 + $0x158] sm:$0xff] }
  0x4e   : > { %5577 = vmatprep.subr.bf16.mxu0 %v6557_v47  ;;  %5688 = vmatpush3.bf16.msra.mxu1 %v6568_v23  ;;  %v320_v47 = vld [vmem:[%s6909_s13 + $0xf9] sm:$0xff] }
  0x4f   : > { %1318 = vmatmul.mubr.bf16.gmra.mrb[12].mxu0 %v6954_v61  ;;  %5689 = vmatprep.subr.bf16.mxu1 %v6569_v30  ;;  %v7172_v53 = vpack.c.bf16 %v320_v47, %v319_v43  ;;  %v7218_v30 = vpack.c.bf16 %v372_v25, %v371_v24  ;;  %v328_v43 = vld [vmem:[%s6909_s13 + $0x159] sm:$0xff]  ;;  %v4914_v47 = vld [vmem:[%s6909_s13 + $0x168] sm:$0xff] }
  0x50   : > { %1479 = vmatmul.mubr.bf16.gmra.mrb[12].mxu1 %v6996_v18  ;;  %1325 = vmatprep.mubr.bf16.mxu0 %v6998_v19  ;;  %v7236_v55 = vpack.c.bf16 %v328_v43, %v327_v42  ;;  %v378_v24 = vld [vmem:[%s6909_s13 + $0x172] sm:$0xff] }
  0x51   : > { %1486 = vmatprep.mubr.bf16.mxu1 %v7000_v20  ;;  %5578 = vmatpush3.bf16.msra.mxu0 %v6559_v54  ;;  %v7174_v54 = vpack.c.bf16 %v4907_v49, %v4906_v48  ;;  %v4915_v48 = vld [vmem:[%s6909_s13 + $0x170] sm:$0xff] }
  0x52   : > { %5579 = vmatprep.subr.bf16.mxu0 %v6563_v12  ;;  %5690 = vmatpush3.bf16.msra.mxu1 %v6570_v34  ;;  %v324_v12 = vld [vmem:[%s6909_s13 + $0x129] sm:$0xff]  ;;  %v7220_v34 = vpack.c.bf16 %v326_v27, %v325_v26  ;;  %v7238_v56 = vpack.c.bf16 %v4915_v48, %v4914_v47  ;;  %v6576_v27 = vld [vmem:[%s9300_s1 + $0x218] sm:$0xff]  }
  0x53   : > { %5691 = vmatprep.subr.bf16.mxu1 %v6571_v35  ;;  %v7204_v21 = vpack.c.bf16 %v324_v12, %v323_v11  ;;  %v7222_v35 = vpack.c.bf16 %v4913_v29, %v4912_v28  ;;  %v7250_v11 = vpack.c.bf16 %v376_v60, %v375_v57  ;;  %v7252_v12 = vpack.c.bf16 %v330_v2, %v329_v0  ;;  %v6574_v26 = vld [vmem:[%s9300_s1 + $0x208] sm:$0xff]  }
  0x54   : > { %v4980_v60 = vld [vmem:[%s6909_s13 + $0x182] sm:$0xff]  ;;  %v4981_v0 = vld [vmem:[%s6909_s13 + $0x18a] sm:$0xff] }
  0x55   : > { %5580 = vmatpush3.bf16.msra.mxu0 %v6564_v13  ;;  %v4910_v13 = vld [vmem:[%s6909_s13 + $0x138] sm:$0xff] }
  0x56   : > { %6304 = vmatprep.subr.bf16.mxu0 %v7152_v38  ;;  %5692 = vmatpush3.bf16.msra.mxu1 %v6572_v40  ;;  %v7206_v23 = vpack.c.bf16 %v4911_v14, %v4910_v13  ;;  %v373_v40 = vld [vmem:[%s6909_s13 + $0x13a] sm:$0xff]  ;;  %v7254_v13 = vpack.c.bf16 %v4917_v10, %v4916_v6  ;;  %v377_v14 = vld [vmem:[%s6909_s13 + $0x16a] sm:$0xff] }
  0x57   : > { %1326 = vmatmul.mubr.bf16.gmra.mrb[16].mxu0 %v6978_v9  ;;  %v7234_v49 = vpack.c.bf16 %v374_v41, %v373_v40  ;;  %v7262_v25 = vpack.c.bf16 %v378_v24, %v377_v14  ;;  %v5044_v10 = vld [vmem:[%s6909_s13 + $0x199] sm:$0xff] }
  0x58   : > { %1487 = vmatmul.mubr.bf16.gmra.mrb[16].mxu1 %v7024_v31  ;;  %1333 = vmatprep.mubr.bf16.mxu0 %v7026_v32 }
  0x59   : > { %1494 = vmatprep.mubr.bf16.mxu1 %v7028_v33 }
  0x5f   : > { %1334 = vmatmul.mubr.bf16.gmra.mrb[20].mxu0 %v7000_v20 }
  0x60   : > { %1495 = vmatmul.mubr.bf16.gmra.mrb[20].mxu1 %v7052_v44  ;;  %1341 = vmatprep.mubr.bf16.mxu0 %v7054_v45 }
  0x61   : > { %1502 = vmatprep.mubr.bf16.mxu1 %v7056_v46 }
  0x67   : > { %1342 = vmatmul.mubr.bf16.gmra.mrb[24].mxu0 %v7028_v33 }
  0x68   : > { %1503 = vmatmul.mubr.bf16.gmra.mrb[24].mxu1 %v7080_v62  ;;  %1349 = vmatprep.mubr.bf16.mxu0 %v7082_v63 }
  0x69   : > { %1510 = vmatprep.mubr.bf16.mxu1 %v7087_v1 }
  0x6f   : > { %1350 = vmatmul.mubr.bf16.gmra.mrb[28].mxu0 %v7056_v46 }
  0x70   : > { %1511 = vmatmul.mubr.bf16.gmra.mrb[28].mxu1 %v7114_v16  ;;  %1357 = vmatprep.mubr.bf16.mxu0 %v7116_v17 }
  0x71   : > { %1518 = vmatprep.mubr.bf16.mxu1 %v7121_v22 }
  0x77   : > { %1358 = vmatmul.mubr.bf16.gmra.mrb[32].mxu0 %v7087_v1 }
  0x78   : > { %1519 = vmatmul.mubr.bf16.gmra.mrb[32].mxu1 %v7145_v36  ;;  %1365 = vmatprep.mubr.bf16.mxu0 %v7147_v37 }
  0x79   : > { %1526 = vmatprep.mubr.bf16.mxu1 %v7154_v39 }
  0x7f   : > { %1366 = vmatmul.mubr.bf16.gmra.mrb[36].mxu0 %v7121_v22 }
  0x80   : > { %1527 = vmatmul.mubr.bf16.gmra.mrb[36].mxu1 %v7170_v52  ;;  %1373 = vmatprep.mubr.bf16.mxu0 %v7172_v53 }
  0x81   : > { %1534 = vmatprep.mubr.bf16.mxu1 %v7174_v54 }
  0x87   : > { %1374 = vmatmul.mubr.bf16.gmra.mrb[40].mxu0 %v7154_v39 }
  0x88   : > { %1535 = vmatmul.mubr.bf16.gmra.mrb[40].mxu1 %v7186_v3  ;;  %1381 = vmatprep.mubr.bf16.mxu0 %v7188_v4 }
  0x89   : > { %1542 = vmatprep.mubr.bf16.mxu1 %v7190_v5 }
  0x8f   : > { %1382 = vmatmul.mubr.bf16.gmra.mrb[44].mxu0 %v7174_v54 }
  0x90   : > { %1543 = vmatmul.mubr.bf16.gmra.mrb[44].mxu1 %v7202_v15  ;;  %1389 = vmatprep.mubr.bf16.mxu0 %v7204_v21 }
  0x91   : > { %1550 = vmatprep.mubr.bf16.mxu1 %v7206_v23 }
  0x97   : > { %1390 = vmatmul.mubr.bf16.gmra.mrb[48].mxu0 %v7190_v5 }
  0x98   : > { %1551 = vmatmul.mubr.bf16.gmra.mrb[48].mxu1 %v7218_v30  ;;  %1397 = vmatprep.mubr.bf16.mxu0 %v7220_v34 }
  0x99   : > { %1558 = vmatprep.mubr.bf16.mxu1 %v7222_v35 }
  0x9f   : > { %1398 = vmatmul.mubr.bf16.gmra.mrb[52].mxu0 %v7206_v23 }
  0xa0   : > { %1559 = vmatmul.mubr.bf16.gmra.mrb[52].mxu1 %v7234_v49  ;;  %1405 = vmatprep.mubr.bf16.mxu0 %v7236_v55 }
  0xa1   : > { %1566 = vmatprep.mubr.bf16.mxu1 %v7238_v56 }
  0xa7   : > { %1406 = vmatmul.mubr.bf16.gmra.mrb[56].mxu0 %v7222_v35 }
  0xa8   : > { %1567 = vmatmul.mubr.bf16.gmra.mrb[56].mxu1 %v7250_v11  ;;  %1413 = vmatprep.mubr.bf16.mxu0 %v7252_v12 }
  0xa9   : > { %1574 = vmatprep.mubr.bf16.mxu1 %v7254_v13 }
  0xaf   : > { %1414 = vmatmul.mubr.bf16.gmra.mrb[60].mxu0 %v7238_v56 }
  0xb0   : > { %1575 = vmatmul.mubr.bf16.gmra.mrb[60].mxu1 %v7262_v25  ;;  %1615 = vmatprep.mubr.bf16.mxu0 %v6947_v58  ;;  %v6575_v58 = vld [vmem:[%s9300_s1 + $0x210] sm:$0xff]  }
  0xb1   : > { %1776 = vmatprep.mubr.bf16.mxu1 %v6949_v59 }
  0xb7   : > { %1616 = vmatmul.mubr.bf16.vlgmr.msra.gmra.mrb[64].mxu0 %v6935_v50  ;;  %v6577_v50 = vld [vmem:[%s9300_s1 + $0x220] sm:$0xff]  }
  0xb8   : > { %6305 = vmatpush3.bf16.msra.mxu0 %v7152_v38  ;;  %1777 = vmatmul.mubr.bf16.vlgmr.msra.gmra.mrb[64].mxu1 %v6937_v51  ;;  %v6578_v51 = vld [vmem:[%s9300_s1 + $0x228] sm:$0xff]  }
  0xb9   : > { %1623 = vmatprep.mubr.bf16.mxu0 %v6974_v7  ;;  %1784 = vmatprep.mubr.bf16.mxu1 %v6976_v8 }
  0xba   : > { %6306 = vmatprep.subr.bf16.mxu0 %v6574_v26 }
  0xbc   : > { %6307 = vmatpush3.bf16.msra.mxu0 %v6574_v26 }
  0xbd   : > { %6308 = vmatprep.subr.bf16.mxu0 %v6575_v58 }
  0xbf   : > { %1624 = vmatmul.mubr.bf16.gmra.mrb[68].mxu0 %v6949_v59  ;;  %v6579_v59 = vld [vmem:[%s9300_s1 + $0x230] sm:$0xff]  }
  0xc0   : > { %1785 = vmatmul.mubr.bf16.gmra.mrb[68].mxu1 %v6954_v61  ;;  %1631 = vmatprep.mubr.bf16.mxu0 %v6996_v18  ;;  %v6580_v61 = vld [vmem:[%s9300_s1 + $0x238] sm:$0xff]  }
  0xc1   : > { %1792 = vmatprep.mubr.bf16.mxu1 %v6998_v19  ;;  %6309 = vmatpush3.bf16.msra.mxu0 %v6575_v58 }
  0xc2   : > { %6310 = vmatprep.subr.bf16.mxu0 %v6576_v27 }
  0xc5   : > { %6311 = vmatpush3.bf16.msra.mxu0 %v6576_v27  ;;  %v7363_v27 = vpack.c.bf16 %v4981_v0, %v4980_v60  ;;  %v5052_v0 = vld [vmem:[%s6909_s13 + $0x7a] sm:$0xff] }
  0xc6   : > { %6312 = vmatprep.subr.bf16.mxu0 %v6577_v50 }
  0xc7   : > { %1632 = vmatmul.mubr.bf16.gmra.mrb[72].mxu0 %v6976_v8 }
  0xc8   : > { %1793 = vmatmul.mubr.bf16.gmra.mrb[72].mxu1 %v6978_v9  ;;  %1639 = vmatprep.mubr.bf16.mxu0 %v7024_v31 }
  0xc9   : > { %1800 = vmatprep.mubr.bf16.mxu1 %v7026_v32  ;;  %6313 = vmatpush3.bf16.msra.mxu0 %v6577_v50 }
  0xca   : > { %6314 = vmatprep.subr.bf16.mxu0 %v6578_v51 }
  0xcd   : > { %6315 = vmatpush3.bf16.msra.mxu0 %v6578_v51 }
  0xce   : > { %6316 = vmatprep.subr.bf16.mxu0 %v6579_v59 }
  0xcf   : > { %1640 = vmatmul.mubr.bf16.gmra.mrb[76].mxu0 %v6998_v19 }
  0xd0   : > { %1801 = vmatmul.mubr.bf16.gmra.mrb[76].mxu1 %v7000_v20  ;;  %1647 = vmatprep.mubr.bf16.mxu0 %v7052_v44 }
  0xd1   : > { %1808 = vmatprep.mubr.bf16.mxu1 %v7054_v45  ;;  %6317 = vmatpush3.bf16.msra.mxu0 %v6579_v59 }
  0xd2   : > { %6318 = vmatprep.subr.bf16.mxu0 %v6580_v61 }
  0xd5   : > { %6319 = vmatpush3.bf16.msra.mxu0 %v6580_v61 }
  0xd7   : > { %1648 = vmatmul.mubr.bf16.gmra.mrb[80].mxu0 %v7026_v32 }
  0xd8   : > { %1809 = vmatmul.mubr.bf16.gmra.mrb[80].mxu1 %v7028_v33  ;;  %1655 = vmatprep.mubr.bf16.mxu0 %v7080_v62 }
  0xd9   : > { %1816 = vmatprep.mubr.bf16.mxu1 %v7082_v63 }
  0xdf   : > { %1656 = vmatmul.mubr.bf16.gmra.mrb[84].mxu0 %v7054_v45 }
  0xe0   : > { %1817 = vmatmul.mubr.bf16.gmra.mrb[84].mxu1 %v7056_v46  ;;  %1663 = vmatprep.mubr.bf16.mxu0 %v7114_v16 }
  0xe1   : > { %1824 = vmatprep.mubr.bf16.mxu1 %v7116_v17 }
  0xe7   : > { %1664 = vmatmul.mubr.bf16.gmra.mrb[88].mxu0 %v7082_v63 }
  0xe8   : > { %1825 = vmatmul.mubr.bf16.gmra.mrb[88].mxu1 %v7087_v1  ;;  %1671 = vmatprep.mubr.bf16.mxu0 %v7145_v36 }
  0xe9   : > { %1832 = vmatprep.mubr.bf16.mxu1 %v7147_v37 }
  0xef   : > { %1672 = vmatmul.mubr.bf16.gmra.mrb[92].mxu0 %v7116_v17 }
  0xf0   : > { %1833 = vmatmul.mubr.bf16.gmra.mrb[92].mxu1 %v7121_v22  ;;  %1679 = vmatprep.mubr.bf16.mxu0 %v7170_v52 }
  0xf1   : > { %1840 = vmatprep.mubr.bf16.mxu1 %v7172_v53 }
  0xf7   : > { %1680 = vmatmul.mubr.bf16.gmra.mrb[96].mxu0 %v7147_v37 }
  0xf8   : > { %1841 = vmatmul.mubr.bf16.gmra.mrb[96].mxu1 %v7154_v39  ;;  %1687 = vmatprep.mubr.bf16.mxu0 %v7186_v3 }
  0xf9   : > { %1848 = vmatprep.mubr.bf16.mxu1 %v7188_v4 }
  0xff   : > { %1688 = vmatmul.mubr.bf16.gmra.mrb[100].mxu0 %v7172_v53 }
 0x100   : > { %1849 = vmatmul.mubr.bf16.gmra.mrb[100].mxu1 %v7174_v54  ;;  %1695 = vmatprep.mubr.bf16.mxu0 %v7202_v15 }
 0x101   : > { %1856 = vmatprep.mubr.bf16.mxu1 %v7204_v21 }
 0x107   : > { %1696 = vmatmul.mubr.bf16.gmra.mrb[104].mxu0 %v7188_v4 }
 0x108   : > { %1857 = vmatmul.mubr.bf16.gmra.mrb[104].mxu1 %v7190_v5  ;;  %1703 = vmatprep.mubr.bf16.mxu0 %v7218_v30 }
 0x109   : > { %1864 = vmatprep.mubr.bf16.mxu1 %v7220_v34 }
 0x10a   : > { %v5357_v7 = vpop.f32.mrb[0].mxu0 }
 0x10b   : > { %v5469_v8 = vpop.f32.mrb[0].mxu1  ;;  %v5358_v9 = vpop.f32.mrb[1].mxu0 }
 0x10c   : > { %v5359_v18 = vadd.f32 %v5358_v9, %v5357_v7  ;;  %v5470_v19 = vpop.f32.mrb[1].mxu1  ;;  %v5360_v20 = vpop.f32.mrb[2].mxu0  ;;  %v5012_v9 = vld [vmem:[%s6909_s13 + $0x198] sm:$0xff] }
 0x10d   : > { %v5471_v31 = vadd.f32 %v5470_v19, %v5469_v8  ;;  %v5472_v32 = vpop.f32.mrb[2].mxu1  ;;  %v5361_v33 = vpop.f32.mrb[3].mxu0  ;;  %v5046_v19 = vld [vmem:[%s6909_s13 + $0x32] sm:$0xff] }
 0x10e   : > { %v5362_v44 = vadd.f32 %v5361_v33, %v5360_v20  ;;  %v5473_v45 = vpop.f32.mrb[3].mxu1  ;;  %v5047_v20 = vld [vmem:[%s6909_s13 + $0x3a] sm:$0xff] }
 0x10f   : > { %v5474_v46 = vadd.f32 %v5473_v45, %v5472_v32  ;;  %1704 = vmatmul.mubr.bf16.gmra.mrb[108].mxu0 %v7204_v21  ;;  %v7335_v62 = vadd.f32 %v5471_v31, %v5359_v18  ;;  %v5042_v21 = vld [vmem:[%s6909_s13 + $0x181] sm:$0xff] }
 0x110   : > { %1865 = vmatmul.mubr.bf16.gmra.mrb[108].mxu1 %v7206_v23  ;;  %1711 = vmatprep.mubr.bf16.mxu0 %v7234_v49  ;;  %v5043_v23 = vld [vmem:[%s6909_s13 + $0x189] sm:$0xff]  ;;  %v5013_v18 = vld [vmem:[%s6909_s13 + $0x1a0] sm:$0xff] }
 0x111   : > { %1872 = vmatprep.mubr.bf16.mxu1 %v7236_v55  ;;  %v7340_v63 = vadd.f32 %v5474_v46, %v5362_v44  ;;  %v635_v43 = vpack.c.bf16 %v5043_v23, %v5042_v21 }
 0x112   : > { %v5363_v1 = vpop.f32.mrb[4].mxu0 }
 0x113   : > { %v5475_v16 = vpop.f32.mrb[4].mxu1  ;;  %v5364_v17 = vpop.f32.mrb[5].mxu0 }
 0x114   : > { %v5365_v22 = vadd.f32 %v5364_v17, %v5363_v1  ;;  %v5476_v36 = vpop.f32.mrb[5].mxu1  ;;  %v5366_v37 = vpop.f32.mrb[6].mxu0  ;;  %v669_v1 = vpack.c.bf16 %v5047_v20, %v5046_v19 }
 0x115   : > { %v5477_v38 = vadd.f32 %v5476_v36, %v5475_v16  ;;  %v5478_v39 = vpop.f32.mrb[6].mxu1  ;;  %v5367_v52 = vpop.f32.mrb[7].mxu0 }
 0x116   : > { %v5368_v53 = vadd.f32 %v5367_v52, %v5366_v37  ;;  %v5479_v54 = vpop.f32.mrb[7].mxu1  ;;  %v5048_v52 = vld [vmem:[%s6909_s13 + $0x4a] sm:$0xff] }
 0x117   : > { %v5480_v3 = vadd.f32 %v5479_v54, %v5478_v39  ;;  %1712 = vmatmul.mubr.bf16.gmra.mrb[112].mxu0 %v7220_v34  ;;  %v7343_v4 = vadd.f32 %v5477_v38, %v5365_v22  ;;  %v5050_v54 = vld [vmem:[%s6909_s13 + $0x62] sm:$0xff] }
 0x118   : > { %1873 = vmatmul.mubr.bf16.gmra.mrb[112].mxu1 %v7222_v35  ;;  %1719 = vmatprep.mubr.bf16.mxu0 %v7250_v11  ;;  %v5045_v11 = vld [vmem:[%s6909_s13 + $0x1a1] sm:$0xff] }
 0x119   : > { %1880 = vmatprep.mubr.bf16.mxu1 %v7252_v12  ;;  %v7348_v5 = vadd.f32 %v5480_v3, %v5368_v53  ;;  %v636_v51 = vpack.c.bf16 %v5045_v11, %v5044_v10  ;;  %v5049_v53 = vld [vmem:[%s6909_s13 + $0x52] sm:$0xff]  ;;  %v5051_v3 = vld [vmem:[%s6909_s13 + $0x6a] sm:$0xff]  ;;  %v5055_v11 = vld [vmem:[%s6909_s13 + $0x9a] sm:$0xff] }
 0x11a   : > { %v5369_v15 = vpop.f32.mrb[8].mxu0  ;;  %v5054_v10 = vld [vmem:[%s6909_s13 + $0x92] sm:$0xff] }
 0x11b   : > { %v5481_v28 = vpop.f32.mrb[8].mxu1  ;;  %v5370_v29 = vpop.f32.mrb[9].mxu0 }
 0x11c   : > { %v5371_v30 = vadd.f32 %v5370_v29, %v5369_v15  ;;  %v5482_v40 = vpop.f32.mrb[9].mxu1  ;;  %v5372_v34 = vpop.f32.mrb[10].mxu0  ;;  %v670_v29 = vpack.c.bf16 %v5049_v53, %v5048_v52 }
 0x11d   : > { %v5483_v41 = vadd.f32 %v5482_v40, %v5481_v28  ;;  %v5484_v42 = vpop.f32.mrb[10].mxu1  ;;  %v5373_v35 = vpop.f32.mrb[11].mxu0 }
 0x11e   : > { %v5374_v47 = vadd.f32 %v5373_v35, %v5372_v34  ;;  %v5485_v48 = vpop.f32.mrb[11].mxu1 }
 0x11f   : > { %v5486_v49 = vadd.f32 %v5485_v48, %v5484_v42  ;;  %1720 = vmatmul.mubr.bf16.gmra.mrb[116].mxu0 %v7236_v55  ;;  %v7353_v57 = vadd.f32 %v5483_v41, %v5371_v30  ;;  %v671_v41 = vpack.c.bf16 %v5051_v3, %v5050_v54 }
 0x120   : > { %1881 = vmatmul.mubr.bf16.gmra.mrb[116].mxu1 %v7238_v56  ;;  %1727 = vmatprep.mubr.bf16.mxu0 %v7262_v25 }
 0x121   : > { %1888 = vmatprep.mubr.bf16.mxu1 %v635_v43  ;;  %v7359_v2 = vadd.f32 %v5486_v49, %v5374_v47 }
 0x122   : > { %v5375_v6 = vpop.f32.mrb[12].mxu0 }
 0x123   : > { %v5487_v14 = vpop.f32.mrb[12].mxu1  ;;  %v5376_v24 = vpop.f32.mrb[13].mxu0 }
 0x124   : > { %v5377_v26 = vadd.f32 %v5376_v24, %v5375_v6  ;;  %v5488_v58 = vpop.f32.mrb[13].mxu1  ;;  %v5378_v55 = vpop.f32.mrb[14].mxu0  ;;  %v5053_v6 = vld [vmem:[%s6909_s13 + $0x82] sm:$0xff] }
 0x125   : > { %v5489_v56 = vadd.f32 %v5488_v58, %v5487_v14  ;;  %v5490_v25 = vpop.f32.mrb[14].mxu1  ;;  %v5379_v50 = vpop.f32.mrb[15].mxu0 }
 0x126   : > { %v5380_v59 = vadd.f32 %v5379_v50, %v5378_v55  ;;  %v5491_v61 = vpop.f32.mrb[15].mxu1  ;;  %v672_v55 = vpack.c.bf16 %v5053_v6, %v5052_v0 }
 0x127   : > { %v5492_v7 = vadd.f32 %v5491_v61, %v5490_v25  ;;  %1728 = vmatmul.mubr.bf16.gmra.mrb[120].mxu0 %v7252_v12  ;;  %v7366_v8 = vadd.f32 %v5489_v56, %v5377_v26 }
 0x128   : > { %1889 = vmatmul.mubr.bf16.gmra.mrb[120].mxu1 %v7254_v13  ;;  %1735 = vmatprep.mubr.bf16.mxu0 %v7363_v27  ;;  %v588_v13 = vpack.c.bf16 %v5013_v18, %v5012_v9 }
 0x129   : > { %1896 = vmatprep.mubr.bf16.mxu1 %v636_v51  ;;  %v7374_v31 = vadd.f32 %v5492_v7, %v5380_v59  ;;  %v673_v51 = vpack.c.bf16 %v5055_v11, %v5054_v10 }
 0x12a   : > { %v5381_v32 = vpop.f32.mrb[16].mxu0 }
 0x12b   : > { %v5493_v33 = vpop.f32.mrb[16].mxu1  ;;  %v5382_v44 = vpop.f32.mrb[17].mxu0 }
 0x12c   : > { %v5383_v45 = vadd.f32 %v5382_v44, %v5381_v32  ;;  %v5494_v12 = vpop.f32.mrb[17].mxu1  ;;  %v5384_v46 = vpop.f32.mrb[18].mxu0  ;;  %v5056_v32 = vld [vmem:[%s6909_s13 + $0xaa] sm:$0xff]  ;;  %v5058_v44 = vld [vmem:[%s6909_s13 + $0xc2] sm:$0xff] }
 0x12d   : > { %v5495_v16 = vadd.f32 %v5494_v12, %v5493_v33  ;;  %v5496_v17 = vpop.f32.mrb[18].mxu1  ;;  %v5385_v22 = vpop.f32.mrb[19].mxu0  ;;  %v5057_v33 = vld [vmem:[%s6909_s13 + $0xb2] sm:$0xff] }
 0x12e   : > { %v5386_v36 = vadd.f32 %v5385_v22, %v5384_v46  ;;  %v5497_v37 = vpop.f32.mrb[19].mxu1 }
 0x12f   : > { %v5498_v38 = vadd.f32 %v5497_v37, %v5496_v17  ;;  %1736 = vmatmul.mubr.bf16.gmra.mrb[124].mxu0 %v635_v43  ;;  %v7376_v39 = vadd.f32 %v5495_v16, %v5383_v45  ;;  %v5059_v45 = vld [vmem:[%s6909_s13 + $0xca] sm:$0xff]  ;;  %v674_v16 = vpack.c.bf16 %v5057_v33, %v5056_v32 }
 0x130   : > { %1897 = vmatmul.mubr.bf16.gmra.mrb[124].mxu1 %v588_v13  ;;  %6320 = vmatprep.mubr.bf16.mxu0 %v669_v1  ;;  %v675_v37 = vpack.c.bf16 %v5059_v45, %v5058_v44 }
 0x131   : > { %v7382_v15 = vadd.f32 %v5498_v38, %v5386_v36 }
 0x132   : > { %v5387_v21 = vpop.f32.mrb[20].mxu0 }
 0x133   : > { %v5499_v23 = vpop.f32.mrb[20].mxu1  ;;  %v5388_v28 = vpop.f32.mrb[21].mxu0 }
 0x134   : > { %v5389_v30 = vadd.f32 %v5388_v28, %v5387_v21  ;;  %v5500_v40 = vpop.f32.mrb[21].mxu1  ;;  %v5390_v34 = vpop.f32.mrb[22].mxu0  ;;  %v5060_v28 = vld [vmem:[%s6909_s13 + $0xda] sm:$0xff] }
 0x135   : > { %v5501_v42 = vadd.f32 %v5500_v40, %v5499_v23  ;;  %v5502_v35 = vpop.f32.mrb[22].mxu1  ;;  %v5391_v43 = vpop.f32.mrb[23].mxu0  ;;  %v5063_v40 = vld [vmem:[%s6909_s13 + $0xfa] sm:$0xff] }
 0x136   : > { %v5392_v47 = vadd.f32 %v5391_v43, %v5390_v34  ;;  %v5503_v48 = vpop.f32.mrb[23].mxu1 }
 0x137   : > { %v5504_v49 = vadd.f32 %v5503_v48, %v5502_v35  ;;  %6321 = vmatmul.mubr.bf16.vlgmr.msra.gmra.mrb[128].mxu0 %v670_v29  ;;  %v7384_v60 = vadd.f32 %v5501_v42, %v5389_v30  ;;  %v5061_v29 = vld [vmem:[%s6909_s13 + $0xe2] sm:$0xff]  ;;  %v5062_v30 = vld [vmem:[%s6909_s13 + $0xf2] sm:$0xff] }
 0x138   : > { %6324 = vmatprep.mubr.bf16.mxu0 %v671_v41  ;;  %v676_v43 = vpack.c.bf16 %v5061_v29, %v5060_v28  ;;  %v677_v0 = vpack.c.bf16 %v5063_v40, %v5062_v30 }
 0x139   : > { %v7390_v14 = vadd.f32 %v5504_v49, %v5392_v47 }
 0x13a   : > { %v5393_v24 = vpop.f32.mrb[24].mxu0 }
 0x13b   : > { %v5505_v26 = vpop.f32.mrb[24].mxu1  ;;  %v5394_v58 = vpop.f32.mrb[25].mxu0 }
 0x13c   : > { %v5395_v56 = vadd.f32 %v5394_v58, %v5393_v24  ;;  %v5506_v25 = vpop.f32.mrb[25].mxu1  ;;  %v5396_v50 = vpop.f32.mrb[26].mxu0 }
 0x13d   : > { %v5507_v59 = vadd.f32 %v5506_v25, %v5505_v26  ;;  %v5508_v61 = vpop.f32.mrb[26].mxu1  ;;  %v5397_v7 = vpop.f32.mrb[27].mxu0  ;;  %v5065_v25 = vld [vmem:[%s6909_s13 + $0x112] sm:$0xff] }
 0x13e   : > { %v5398_v9 = vadd.f32 %v5397_v7, %v5396_v50  ;;  %v5509_v18 = vpop.f32.mrb[27].mxu1 }
 0x13f   : > { %v5510_v19 = vadd.f32 %v5509_v18, %v5508_v61  ;;  %6325 = vmatmul.mubr.bf16.gmra.mrb[132].mxu0 %v672_v55  ;;  %v7392_v20 = vadd.f32 %v5507_v59, %v5395_v56  ;;  %v5064_v56 = vld [vmem:[%s6909_s13 + $0x10a] sm:$0xff] }
 0x140   : > { %6328 = vmatprep.mubr.bf16.mxu0 %v673_v51  ;;  %v5066_v51 = vld [vmem:[%s6909_s13 + $0x122] sm:$0xff]  ;;  %v5067_v59 = vld [vmem:[%s6909_s13 + $0x12a] sm:$0xff]  ;;  %v678_v18 = vpack.c.bf16 %v5065_v25, %v5064_v56 }
 0x141   : > { %v7398_v12 = vadd.f32 %v5510_v19, %v5398_v9  ;;  %v679_v44 = vpack.c.bf16 %v5067_v59, %v5066_v51 }
 0x142   : > { %v5399_v46 = vpop.f32.mrb[28].mxu0 }
 0x143   : > { %v5511_v13 = vpop.f32.mrb[28].mxu1  ;;  %v5400_v1 = vpop.f32.mrb[29].mxu0 }
 0x144   : > { %v5401_v17 = vadd.f32 %v5400_v1, %v5399_v46  ;;  %v5512_v22 = vpop.f32.mrb[29].mxu1  ;;  %v5402_v36 = vpop.f32.mrb[30].mxu0 }
 0x145   : > { %v5513_v38 = vadd.f32 %v5512_v22, %v5511_v13  ;;  %v5514_v52 = vpop.f32.mrb[30].mxu1  ;;  %v5403_v53 = vpop.f32.mrb[31].mxu0 }
 0x146   : > { %v5404_v54 = vadd.f32 %v5403_v53, %v5402_v36  ;;  %v5515_v3 = vpop.f32.mrb[31].mxu1  ;;  %v5068_v36 = vld [vmem:[%s6909_s13 + $0x13a] sm:$0xff] }
 0x147   : > { %v5516_v21 = vadd.f32 %v5515_v3, %v5514_v52  ;;  %6329 = vmatmul.mubr.bf16.gmra.mrb[136].mxu0 %v674_v16  ;;  %v7400_v23 = vadd.f32 %v5513_v38, %v5401_v17  ;;  %v5070_v52 = vld [vmem:[%s6909_s13 + $0x152] sm:$0xff]  ;;  %v5071_v53 = vld [vmem:[%s6909_s13 + $0x15a] sm:$0xff] }
 0x148   : > { %6332 = vmatprep.mubr.bf16.mxu0 %v675_v37  ;;  %v5069_v37 = vld [vmem:[%s6909_s13 + $0x142] sm:$0xff] }
 0x149   : > { %v7406_v34 = vadd.f32 %v5516_v21, %v5404_v54  ;;  %v680_v28 = vpack.c.bf16 %v5069_v37, %v5068_v36 }
 0x14a   : > { %v5405_v41 = vpop.f32.mrb[32].mxu0 }
 0x14b   : > { %v5517_v42 = vpop.f32.mrb[32].mxu1  ;;  %v5406_v35 = vpop.f32.mrb[33].mxu0 }
 0x14c   : > { %v5407_v47 = vadd.f32 %v5406_v35, %v5405_v41  ;;  %v5518_v48 = vpop.f32.mrb[33].mxu1  ;;  %v5408_v49 = vpop.f32.mrb[34].mxu0  ;;  %v681_v41 = vpack.c.bf16 %v5071_v53, %v5070_v52 }
 0x14d   : > { %v5519_v6 = vadd.f32 %v5518_v48, %v5517_v42  ;;  %v5520_v10 = vpop.f32.mrb[34].mxu1  ;;  %v5409_v11 = vpop.f32.mrb[35].mxu0 }
 0x14e   : > { %v5410_v24 = vadd.f32 %v5409_v11, %v5408_v49  ;;  %v5521_v26 = vpop.f32.mrb[35].mxu1 }
 0x14f   : > { %v5522_v58 = vadd.f32 %v5521_v26, %v5520_v10  ;;  %6333 = vmatmul.mubr.bf16.gmra.mrb[140].mxu0 %v676_v43  ;;  %v7408_v55 = vadd.f32 %v5519_v6, %v5407_v47  ;;  %v5072_v6 = vld [vmem:[%s6909_s13 + $0x16a] sm:$0xff]  ;;  %v5073_v10 = vld [vmem:[%s6909_s13 + $0x172] sm:$0xff] }
 0x150   : > { %6336 = vmatprep.mubr.bf16.mxu0 %v677_v0  ;;  %v682_v56 = vpack.c.bf16 %v5073_v10, %v5072_v6 }
 0x151   : > { %v7412_v50 = vadd.f32 %v5522_v58, %v5410_v24 }
 0x152   : > { %v5411_v61 = vpop.f32.mrb[36].mxu0 }
 0x153   : > { %v5523_v7 = vpop.f32.mrb[36].mxu1  ;;  %v5412_v9 = vpop.f32.mrb[37].mxu0 }
 0x154   : > { %v5413_v19 = vadd.f32 %v5412_v9, %v5411_v61  ;;  %v5524_v32 = vpop.f32.mrb[37].mxu1  ;;  %v5414_v33 = vpop.f32.mrb[38].mxu0 }
 0x155   : > { %v5525_v45 = vadd.f32 %v5524_v32, %v5523_v7  ;;  %v5526_v46 = vpop.f32.mrb[38].mxu1  ;;  %v5415_v13 = vpop.f32.mrb[39].mxu0 }
 0x156   : > { %v5416_v1 = vadd.f32 %v5415_v13, %v5414_v33  ;;  %v5527_v16 = vpop.f32.mrb[39].mxu1 }
 0x157   : > { %v7416_v17 = vadd.f32 %v5525_v45, %v5413_v19  ;;  %v5528_v22 = vadd.f32 %v5527_v16, %v5526_v46  ;;  %6337 = vmatmul.mubr.bf16.gmra.mrb[144].mxu0 %v678_v18  ;;  %v5077_v45 = vld [vmem:[%s6909_s13 + $0x1a2] sm:$0xff] }
 0x158   : > { %6340 = vmatprep.mubr.bf16.mxu0 %v679_v44  ;;  %v5076_v44 = vld [vmem:[%s6909_s13 + $0x19a] sm:$0xff] }
 0x159   : > { %v7420_v38 = vadd.f32 %v5528_v22, %v5416_v1  ;;  %v684_v22 = vpack.c.bf16 %v5077_v45, %v5076_v44 }
 0x15a   : > { %v5417_v54 = vpop.f32.mrb[40].mxu0 }
 0x15b   : > { %v5529_v3 = vpop.f32.mrb[40].mxu1  ;;  %v5418_v21 = vpop.f32.mrb[41].mxu0 }
 0x15c   : > { %v5419_v29 = vadd.f32 %v5418_v21, %v5417_v54  ;;  %v5530_v30 = vpop.f32.mrb[41].mxu1  ;;  %v5420_v40 = vpop.f32.mrb[42].mxu0 }
 0x15d   : > { %v5531_v42 = vadd.f32 %v5530_v30, %v5529_v3  ;;  %v5532_v35 = vpop.f32.mrb[42].mxu1  ;;  %v5421_v43 = vpop.f32.mrb[43].mxu0 }
 0x15e   : > { %v5422_v47 = vadd.f32 %v5421_v43, %v5420_v40  ;;  %v5533_v48 = vpop.f32.mrb[43].mxu1 }
 0x15f   : > { %v7424_v49 = vadd.f32 %v5531_v42, %v5419_v29  ;;  %v5534_v0 = vadd.f32 %v5533_v48, %v5532_v35  ;;  %6341 = vmatmul.mubr.bf16.gmra.mrb[148].mxu0 %v680_v28 }
 0x160   : > { %6344 = vmatprep.mubr.bf16.mxu0 %v681_v41 }
 0x161   : > { %v7428_v11 = vadd.f32 %v5534_v0, %v5422_v47 }
 0x162   : > { %v5423_v24 = vpop.f32.mrb[44].mxu0 }
 0x163   : > { %v5535_v26 = vpop.f32.mrb[44].mxu1  ;;  %v5424_v58 = vpop.f32.mrb[45].mxu0 }
 0x164   : > { %v5425_v25 = vadd.f32 %v5424_v58, %v5423_v24  ;;  %v5536_v51 = vpop.f32.mrb[45].mxu1  ;;  %v5426_v59 = vpop.f32.mrb[46].mxu0 }
 0x165   : > { %v5537_v61 = vadd.f32 %v5536_v51, %v5535_v26  ;;  %v5538_v7 = vpop.f32.mrb[46].mxu1  ;;  %v5427_v9 = vpop.f32.mrb[47].mxu0 }
 0x166   : > { %v5428_v18 = vadd.f32 %v5427_v9, %v5426_v59  ;;  %v5539_v19 = vpop.f32.mrb[47].mxu1 }
 0x167   : > { %v7430_v32 = vadd.f32 %v5537_v61, %v5425_v25  ;;  %v5540_v33 = vadd.f32 %v5539_v19, %v5538_v7  ;;  %6345 = vmatmul.mubr.bf16.gmra.mrb[152].mxu0 %v682_v56 }
 0x168   : > { %6348 = vmatprep.mubr.bf16.mxu0 %v7363_v27 }
 0x169   : > { %v7435_v46 = vadd.f32 %v5540_v33, %v5428_v18 }
 0x16a   : > { %v5429_v13 = vpop.f32.mrb[48].mxu0 }
 0x16b   : > { %v5541_v1 = vpop.f32.mrb[48].mxu1  ;;  %v5430_v16 = vpop.f32.mrb[49].mxu0 }
 0x16c   : > { %v5431_v36 = vadd.f32 %v5430_v16, %v5429_v13  ;;  %v5542_v37 = vpop.f32.mrb[49].mxu1  ;;  %v5432_v52 = vpop.f32.mrb[50].mxu0 }
 0x16d   : > { %v5543_v53 = vadd.f32 %v5542_v37, %v5541_v1  ;;  %v5544_v54 = vpop.f32.mrb[50].mxu1  ;;  %v5433_v3 = vpop.f32.mrb[51].mxu0 }
 0x16e   : > { %v5434_v21 = vadd.f32 %v5433_v3, %v5432_v52  ;;  %v5545_v28 = vpop.f32.mrb[51].mxu1 }
 0x16f   : > { %v7437_v29 = vadd.f32 %v5543_v53, %v5431_v36  ;;  %v5546_v30 = vadd.f32 %v5545_v28, %v5544_v54  ;;  %6349 = vmatmul.mubr.bf16.gmra.mrb[156].mxu0 %v684_v22 }
 0x171   : > { %v7439_v27 = vadd.f32 %v5546_v30, %v5434_v21 }
 0x172   : > { %v5435_v40 = vpop.f32.mrb[52].mxu0 }
 0x173   : > { %v5547_v41 = vpop.f32.mrb[52].mxu1  ;;  %v5436_v42 = vpop.f32.mrb[53].mxu0 }
 0x174   : > { %v5437_v35 = vadd.f32 %v5436_v42, %v5435_v40  ;;  %v5548_v43 = vpop.f32.mrb[53].mxu1  ;;  %v5438_v47 = vpop.f32.mrb[54].mxu0 }
 0x175   : > { %v5549_v48 = vadd.f32 %v5548_v43, %v5547_v41  ;;  %v5550_v0 = vpop.f32.mrb[54].mxu1  ;;  %v5439_v6 = vpop.f32.mrb[55].mxu0 }
 0x176   : > { %v5440_v10 = vadd.f32 %v5439_v6, %v5438_v47  ;;  %v5551_v24 = vpop.f32.mrb[55].mxu1 }
 0x177   : > { %v7441_v26 = vadd.f32 %v5549_v48, %v5437_v35  ;;  %v5552_v58 = vadd.f32 %v5551_v24, %v5550_v0 }
 0x179   : > { %v7443_v56 = vadd.f32 %v5552_v58, %v5440_v10 }
 0x17a   : > { %v5441_v25 = vpop.f32.mrb[56].mxu0 }
 0x17b   : > { %v5553_v51 = vpop.f32.mrb[56].mxu1  ;;  %v5442_v59 = vpop.f32.mrb[57].mxu0 }
 0x17c   : > { %v5443_v61 = vadd.f32 %v5442_v59, %v5441_v25  ;;  %v5554_v7 = vpop.f32.mrb[57].mxu1  ;;  %v5444_v9 = vpop.f32.mrb[58].mxu0 }
 0x17d   : > { %v5555_v18 = vadd.f32 %v5554_v7, %v5553_v51  ;;  %v5556_v19 = vpop.f32.mrb[58].mxu1  ;;  %v5445_v33 = vpop.f32.mrb[59].mxu0 }
 0x17e   : > { %v5446_v44 = vadd.f32 %v5445_v33, %v5444_v9  ;;  %v5557_v45 = vpop.f32.mrb[59].mxu1 }
 0x17f   : > { %v7445_v13 = vadd.f32 %v5555_v18, %v5443_v61  ;;  %v5558_v1 = vadd.f32 %v5557_v45, %v5556_v19 }
 0x181   : > { %v7447_v16 = vadd.f32 %v5558_v1, %v5446_v44 }
 0x182   : > { %v5447_v22 = vpop.f32.mrb[60].mxu0 }
 0x183   : > { %v5559_v36 = vpop.f32.mrb[60].mxu1  ;;  %v5448_v37 = vpop.f32.mrb[61].mxu0 }
 0x184   : > { %v5449_v52 = vadd.f32 %v5448_v37, %v5447_v22  ;;  %v5560_v53 = vpop.f32.mrb[61].mxu1  ;;  %v5450_v54 = vpop.f32.mrb[62].mxu0 }
 0x185   : > { %v5561_v3 = vadd.f32 %v5560_v53, %v5559_v36  ;;  %v5562_v21 = vpop.f32.mrb[62].mxu1  ;;  %v5451_v28 = vpop.f32.mrb[63].mxu0 }
 0x186   : > { %v5452_v30 = vadd.f32 %v5451_v28, %v5450_v54  ;;  %v5563_v40 = vpop.f32.mrb[63].mxu1 }
 0x187   : > { %v7449_v41 = vadd.f32 %v5561_v3, %v5449_v52  ;;  %v5564_v42 = vadd.f32 %v5563_v40, %v5562_v21 }
 0x189   : > { %v7451_v35 = vadd.f32 %v5564_v42, %v5452_v30 }
 0x18a   : > { %v5581_v43 = vpop.f32.mrb[64].mxu0 }
 0x18b   : > { %v5582_v47 = vpop.f32.mrb[65].mxu0  ;;  %v5693_v48 = vpop.f32.mrb[64].mxu1 }
 0x18c   : > { %v5583_v0 = vadd.f32 %v5582_v47, %v5581_v43  ;;  %v5584_v6 = vpop.f32.mrb[66].mxu0  ;;  %v5694_v10 = vpop.f32.mrb[65].mxu1 }
 0x18d   : > { %v5585_v24 = vpop.f32.mrb[67].mxu0  ;;  %v5695_v58 = vadd.f32 %v5694_v10, %v5693_v48  ;;  %v5696_v25 = vpop.f32.mrb[66].mxu1 }
 0x18e   : > { %v1618_v51 = vadd.f32 %v5583_v0, %v7335_v62  ;;  %v5586_v59 = vadd.f32 %v5585_v24, %v5584_v6  ;;  %v5697_v61 = vpop.f32.mrb[67].mxu1 }
 0x18f   : > { %v5698_v7 = vadd.f32 %v5697_v61, %v5696_v25 }
 0x190   : > { %v1621_v9 = vadd.f32 %v5586_v59, %v7340_v63  ;;  %v7455_v18 = vadd.f32 %v5695_v58, %v1618_v51 }
 0x192   : > { %v5587_v19 = vpop.f32.mrb[68].mxu0  ;;  %v7457_v33 = vadd.f32 %v5698_v7, %v1621_v9 }
 0x193   : > { %v5588_v44 = vpop.f32.mrb[69].mxu0  ;;  %v5699_v45 = vpop.f32.mrb[68].mxu1 }
 0x194   : > { %v5589_v1 = vadd.f32 %v5588_v44, %v5587_v19  ;;  %v5590_v22 = vpop.f32.mrb[70].mxu0  ;;  %v5700_v36 = vpop.f32.mrb[69].mxu1 }
 0x195   : > { %v5591_v37 = vpop.f32.mrb[71].mxu0  ;;  %v5701_v52 = vadd.f32 %v5700_v36, %v5699_v45  ;;  %v5702_v53 = vpop.f32.mrb[70].mxu1 }
 0x196   : > { %v1626_v62 = vadd.f32 %v5589_v1, %v7343_v4  ;;  %v5592_v54 = vadd.f32 %v5591_v37, %v5590_v22  ;;  %v5703_v3 = vpop.f32.mrb[71].mxu1 }
 0x197   : > { %v5704_v21 = vadd.f32 %v5703_v3, %v5702_v53 }
 0x198   : > { %v1629_v63 = vadd.f32 %v5592_v54, %v7348_v5  ;;  %v7461_v28 = vadd.f32 %v5701_v52, %v1626_v62 }
 0x19a   : > { %v5593_v30 = vpop.f32.mrb[72].mxu0  ;;  %v7463_v40 = vadd.f32 %v5704_v21, %v1629_v63 }
 0x19b   : > { %v5594_v42 = vpop.f32.mrb[73].mxu0  ;;  %v5705_v43 = vpop.f32.mrb[72].mxu1 }
 0x19c   : > { %v5595_v47 = vadd.f32 %v5594_v42, %v5593_v30  ;;  %v5596_v48 = vpop.f32.mrb[74].mxu0  ;;  %v5706_v0 = vpop.f32.mrb[73].mxu1 }
 0x19d   : > { %v5597_v6 = vpop.f32.mrb[75].mxu0  ;;  %v5707_v10 = vadd.f32 %v5706_v0, %v5705_v43  ;;  %v5708_v24 = vpop.f32.mrb[74].mxu1 }
 0x19e   : > { %v1634_v4 = vadd.f32 %v5595_v47, %v7353_v57  ;;  %v5598_v58 = vadd.f32 %v5597_v6, %v5596_v48  ;;  %v5709_v25 = vpop.f32.mrb[75].mxu1 }
 0x19f   : > { %v5710_v51 = vadd.f32 %v5709_v25, %v5708_v24 }
 0x1a0   : > { %v1637_v5 = vadd.f32 %v5598_v58, %v7359_v2  ;;  %v7467_v59 = vadd.f32 %v5707_v10, %v1634_v4 }
 0x1a2   : > { %v5599_v61 = vpop.f32.mrb[76].mxu0  ;;  %v7469_v7 = vadd.f32 %v5710_v51, %v1637_v5 }
 0x1a3   : > { %v5600_v9 = vpop.f32.mrb[77].mxu0  ;;  %v5711_v19 = vpop.f32.mrb[76].mxu1 }
 0x1a4   : > { %v5601_v44 = vadd.f32 %v5600_v9, %v5599_v61  ;;  %v5602_v45 = vpop.f32.mrb[78].mxu0  ;;  %v5712_v1 = vpop.f32.mrb[77].mxu1 }
 0x1a5   : > { %v5603_v22 = vpop.f32.mrb[79].mxu0  ;;  %v5713_v36 = vadd.f32 %v5712_v1, %v5711_v19  ;;  %v5714_v37 = vpop.f32.mrb[78].mxu1 }
 0x1a6   : > { %v1642_v57 = vadd.f32 %v5601_v44, %v7366_v8  ;;  %v5604_v52 = vadd.f32 %v5603_v22, %v5602_v45  ;;  %v5715_v53 = vpop.f32.mrb[79].mxu1 }
 0x1a7   : > { %v5716_v62 = vadd.f32 %v5715_v53, %v5714_v37 }
 0x1a8   : > { %v1645_v2 = vadd.f32 %v5604_v52, %v7374_v31  ;;  %v7473_v54 = vadd.f32 %v5713_v36, %v1642_v57 }
 0x1aa   : > { %v5605_v3 = vpop.f32.mrb[80].mxu0  ;;  %v7475_v21 = vadd.f32 %v5716_v62, %v1645_v2 }
 0x1ab   : > { %v5606_v63 = vpop.f32.mrb[81].mxu0  ;;  %v5717_v30 = vpop.f32.mrb[80].mxu1 }
 0x1ac   : > { %v5607_v42 = vadd.f32 %v5606_v63, %v5605_v3  ;;  %v5608_v43 = vpop.f32.mrb[82].mxu0  ;;  %v5718_v47 = vpop.f32.mrb[81].mxu1 }
 0x1ad   : > { %v5609_v48 = vpop.f32.mrb[83].mxu0  ;;  %v5719_v0 = vadd.f32 %v5718_v47, %v5717_v30  ;;  %v5720_v6 = vpop.f32.mrb[82].mxu1 }
 0x1ae   : > { %v1650_v8 = vadd.f32 %v5607_v42, %v7376_v39  ;;  %v5610_v10 = vadd.f32 %v5609_v48, %v5608_v43  ;;  %v5721_v24 = vpop.f32.mrb[83].mxu1 }
 0x1af   : > { %v5722_v4 = vadd.f32 %v5721_v24, %v5720_v6 }
 0x1b0   : > { %v1653_v31 = vadd.f32 %v5610_v10, %v7382_v15  ;;  %v7479_v58 = vadd.f32 %v5719_v0, %v1650_v8 }
 0x1b2   : > { %v5611_v25 = vpop.f32.mrb[84].mxu0  ;;  %v7481_v51 = vadd.f32 %v5722_v4, %v1653_v31 }
 0x1b3   : > { %v5612_v5 = vpop.f32.mrb[85].mxu0  ;;  %v5723_v61 = vpop.f32.mrb[84].mxu1 }
 0x1b4   : > { %v5613_v9 = vadd.f32 %v5612_v5, %v5611_v25  ;;  %v5614_v19 = vpop.f32.mrb[86].mxu0  ;;  %v5724_v44 = vpop.f32.mrb[85].mxu1 }
 0x1b5   : > { %v5615_v45 = vpop.f32.mrb[87].mxu0  ;;  %v5725_v1 = vadd.f32 %v5724_v44, %v5723_v61  ;;  %v5726_v22 = vpop.f32.mrb[86].mxu1 }
 0x1b6   : > { %v1658_v39 = vadd.f32 %v5613_v9, %v7384_v60  ;;  %v5616_v36 = vadd.f32 %v5615_v45, %v5614_v19  ;;  %v5727_v37 = vpop.f32.mrb[87].mxu1 }
 0x1b7   : > { %v5728_v57 = vadd.f32 %v5727_v37, %v5726_v22 }
 0x1b8   : > { %v1661_v15 = vadd.f32 %v5616_v36, %v7390_v14  ;;  %v7485_v52 = vadd.f32 %v5725_v1, %v1658_v39 }
 0x1ba   : > { %v5617_v53 = vpop.f32.mrb[88].mxu0  ;;  %v7487_v62 = vadd.f32 %v5728_v57, %v1661_v15 }
 0x1bb   : > { %v5618_v2 = vpop.f32.mrb[89].mxu0  ;;  %v5729_v3 = vpop.f32.mrb[88].mxu1 }
 0x1bc   : > { %v5619_v63 = vadd.f32 %v5618_v2, %v5617_v53  ;;  %v5620_v30 = vpop.f32.mrb[90].mxu0  ;;  %v5730_v42 = vpop.f32.mrb[89].mxu1 }
 0x1bd   : > { %v5621_v43 = vpop.f32.mrb[91].mxu0  ;;  %v5731_v47 = vadd.f32 %v5730_v42, %v5729_v3  ;;  %v5732_v48 = vpop.f32.mrb[90].mxu1 }
 0x1be   : > { %v1666_v60 = vadd.f32 %v5619_v63, %v7392_v20  ;;  %v5622_v0 = vadd.f32 %v5621_v43, %v5620_v30  ;;  %v5733_v6 = vpop.f32.mrb[91].mxu1 }
 0x1bf   : > { %v5734_v8 = vadd.f32 %v5733_v6, %v5732_v48 }
 0x1c0   : > { %v1669_v14 = vadd.f32 %v5622_v0, %v7398_v12  ;;  %v7491_v10 = vadd.f32 %v5731_v47, %v1666_v60 }
 0x1c2   : > { %v5623_v24 = vpop.f32.mrb[92].mxu0  ;;  %v7493_v4 = vadd.f32 %v5734_v8, %v1669_v14 }
 0x1c3   : > { %v5624_v31 = vpop.f32.mrb[93].mxu0  ;;  %v5735_v25 = vpop.f32.mrb[92].mxu1 }
 0x1c4   : > { %v5625_v5 = vadd.f32 %v5624_v31, %v5623_v24  ;;  %v5626_v61 = vpop.f32.mrb[94].mxu0  ;;  %v5736_v9 = vpop.f32.mrb[93].mxu1 }
 0x1c5   : > { %v5627_v19 = vpop.f32.mrb[95].mxu0  ;;  %v5737_v44 = vadd.f32 %v5736_v9, %v5735_v25  ;;  %v5738_v45 = vpop.f32.mrb[94].mxu1 }
 0x1c6   : > { %v1674_v20 = vadd.f32 %v5625_v5, %v7400_v23  ;;  %v5628_v1 = vadd.f32 %v5627_v19, %v5626_v61  ;;  %v5739_v22 = vpop.f32.mrb[95].mxu1 }
 0x1c7   : > { %v5740_v39 = vadd.f32 %v5739_v22, %v5738_v45 }
 0x1c8   : > { %v1677_v12 = vadd.f32 %v5628_v1, %v7406_v34  ;;  %v7497_v36 = vadd.f32 %v5737_v44, %v1674_v20 }
 0x1ca   : > { %v5629_v37 = vpop.f32.mrb[96].mxu0  ;;  %v7499_v57 = vadd.f32 %v5740_v39, %v1677_v12 }
 0x1cb   : > { %v5630_v15 = vpop.f32.mrb[97].mxu0  ;;  %v5741_v53 = vpop.f32.mrb[96].mxu1 }
 0x1cc   : > { %v5631_v2 = vadd.f32 %v5630_v15, %v5629_v37  ;;  %v5632_v3 = vpop.f32.mrb[98].mxu0  ;;  %v5742_v63 = vpop.f32.mrb[97].mxu1 }
 0x1cd   : > { %v5633_v30 = vpop.f32.mrb[99].mxu0  ;;  %v5743_v42 = vadd.f32 %v5742_v63, %v5741_v53  ;;  %v5744_v43 = vpop.f32.mrb[98].mxu1 }
 0x1ce   : > { %v1682_v23 = vadd.f32 %v5631_v2, %v7408_v55  ;;  %v5634_v47 = vadd.f32 %v5633_v30, %v5632_v3  ;;  %v5745_v48 = vpop.f32.mrb[99].mxu1 }
 0x1cf   : > { %v5746_v60 = vadd.f32 %v5745_v48, %v5744_v43 }
 0x1d0   : > { %v1685_v34 = vadd.f32 %v5634_v47, %v7412_v50  ;;  %v7503_v0 = vadd.f32 %v5743_v42, %v1682_v23 }
 0x1d2   : > { %v5635_v6 = vpop.f32.mrb[100].mxu0  ;;  %v7505_v8 = vadd.f32 %v5746_v60, %v1685_v34 }
 0x1d3   : > { %v5636_v14 = vpop.f32.mrb[101].mxu0  ;;  %v5747_v24 = vpop.f32.mrb[100].mxu1 }
 0x1d4   : > { %v5637_v31 = vadd.f32 %v5636_v14, %v5635_v6  ;;  %v5638_v25 = vpop.f32.mrb[102].mxu0  ;;  %v5748_v5 = vpop.f32.mrb[101].mxu1 }
 0x1d5   : > { %v5639_v61 = vpop.f32.mrb[103].mxu0  ;;  %v5749_v9 = vadd.f32 %v5748_v5, %v5747_v24  ;;  %v5750_v19 = vpop.f32.mrb[102].mxu1 }
 0x1d6   : > { %v1690_v55 = vadd.f32 %v5637_v31, %v7416_v17  ;;  %v5640_v44 = vadd.f32 %v5639_v61, %v5638_v25  ;;  %v5751_v45 = vpop.f32.mrb[103].mxu1 }
 0x1d7   : > { %v5752_v20 = vadd.f32 %v5751_v45, %v5750_v19 }
 0x1d8   : > { %v1693_v50 = vadd.f32 %v5640_v44, %v7420_v38  ;;  %v7509_v1 = vadd.f32 %v5749_v9, %v1690_v55 }
 0x1da   : > { %v5641_v22 = vpop.f32.mrb[104].mxu0  ;;  %v7511_v39 = vadd.f32 %v5752_v20, %v1693_v50 }
 0x1db   : > { %v5642_v12 = vpop.f32.mrb[105].mxu0  ;;  %v5753_v37 = vpop.f32.mrb[104].mxu1 }
 0x1dc   : > { %v5643_v15 = vadd.f32 %v5642_v12, %v5641_v22  ;;  %v5644_v53 = vpop.f32.mrb[106].mxu0  ;;  %v5754_v2 = vpop.f32.mrb[105].mxu1 }
 0x1dd   : > { %v5645_v3 = vpop.f32.mrb[107].mxu0  ;;  %v5755_v63 = vadd.f32 %v5754_v2, %v5753_v37  ;;  %v5756_v30 = vpop.f32.mrb[106].mxu1 }
 0x1de   : > { %v1698_v17 = vadd.f32 %v5643_v15, %v7424_v49  ;;  %v5646_v42 = vadd.f32 %v5645_v3, %v5644_v53  ;;  %v5757_v43 = vpop.f32.mrb[107].mxu1 }
 0x1df   : > { %v5758_v23 = vadd.f32 %v5757_v43, %v5756_v30 }
 0x1e0   : > { %v1701_v38 = vadd.f32 %v5646_v42, %v7428_v11  ;;  %v7515_v47 = vadd.f32 %v5755_v63, %v1698_v17 }
 0x1e2   : > { %v5647_v48 = vpop.f32.mrb[108].mxu0  ;;  %v7517_v60 = vadd.f32 %v5758_v23, %v1701_v38 }
 0x1e3   : > { %v5648_v34 = vpop.f32.mrb[109].mxu0  ;;  %v5759_v6 = vpop.f32.mrb[108].mxu1 }
 0x1e4   : > { %v5649_v14 = vadd.f32 %v5648_v34, %v5647_v48  ;;  %v5650_v24 = vpop.f32.mrb[110].mxu0  ;;  %v5760_v31 = vpop.f32.mrb[109].mxu1 }
 0x1e5   : > { %v5651_v25 = vpop.f32.mrb[111].mxu0  ;;  %v5761_v5 = vadd.f32 %v5760_v31, %v5759_v6  ;;  %v5762_v61 = vpop.f32.mrb[110].mxu1 }
 0x1e6   : > { %v1706_v49 = vadd.f32 %v5649_v14, %v7430_v32  ;;  %v5652_v9 = vadd.f32 %v5651_v25, %v5650_v24  ;;  %v5763_v19 = vpop.f32.mrb[111].mxu1 }
 0x1e7   : > { %v5764_v55 = vadd.f32 %v5763_v19, %v5762_v61 }
 0x1e8   : > { %v1709_v11 = vadd.f32 %v5652_v9, %v7435_v46  ;;  %v7521_v44 = vadd.f32 %v5761_v5, %v1706_v49 }
 0x1ea   : > { %v5653_v45 = vpop.f32.mrb[112].mxu0  ;;  %v7523_v20 = vadd.f32 %v5764_v55, %v1709_v11 }
 0x1eb   : > { %v5654_v50 = vpop.f32.mrb[113].mxu0  ;;  %v5765_v22 = vpop.f32.mrb[112].mxu1 }
 0x1ec   : > { %v5655_v12 = vadd.f32 %v5654_v50, %v5653_v45  ;;  %v5656_v37 = vpop.f32.mrb[114].mxu0  ;;  %v5766_v15 = vpop.f32.mrb[113].mxu1 }
 0x1ed   : > { %v5657_v53 = vpop.f32.mrb[115].mxu0  ;;  %v5767_v2 = vadd.f32 %v5766_v15, %v5765_v22  ;;  %v5768_v3 = vpop.f32.mrb[114].mxu1 }
 0x1ee   : > { %v1714_v32 = vadd.f32 %v5655_v12, %v7437_v29  ;;  %v5658_v63 = vadd.f32 %v5657_v53, %v5656_v37  ;;  %v5769_v30 = vpop.f32.mrb[115].mxu1 }
 0x1ef   : > { %v5770_v17 = vadd.f32 %v5769_v30, %v5768_v3 }
 0x1f0   : > { %v1717_v46 = vadd.f32 %v5658_v63, %v7439_v27  ;;  %v7527_v42 = vadd.f32 %v5767_v2, %v1714_v32 }
 0x1f2   : > { %v5659_v43 = vpop.f32.mrb[116].mxu0  ;;  %v7529_v23 = vadd.f32 %v5770_v17, %v1717_v46 }
 0x1f3   : > { %v5660_v38 = vpop.f32.mrb[117].mxu0  ;;  %v5771_v48 = vpop.f32.mrb[116].mxu1 }
 0x1f4   : > { %v5661_v34 = vadd.f32 %v5660_v38, %v5659_v43  ;;  %v5662_v6 = vpop.f32.mrb[118].mxu0  ;;  %v5772_v14 = vpop.f32.mrb[117].mxu1 }
 0x1f5   : > { %v5663_v24 = vpop.f32.mrb[119].mxu0  ;;  %v5773_v31 = vadd.f32 %v5772_v14, %v5771_v48  ;;  %v5774_v25 = vpop.f32.mrb[118].mxu1 }
 0x1f6   : > { %v1722_v29 = vadd.f32 %v5661_v34, %v7441_v26  ;;  %v5664_v5 = vadd.f32 %v5663_v24, %v5662_v6  ;;  %v5775_v61 = vpop.f32.mrb[119].mxu1 }
 0x1f7   : > { %v5776_v49 = vadd.f32 %v5775_v61, %v5774_v25 }
 0x1f8   : > { %v1725_v27 = vadd.f32 %v5664_v5, %v7443_v56  ;;  %v7533_v9 = vadd.f32 %v5773_v31, %v1722_v29 }
 0x1fa   : > { %v5665_v19 = vpop.f32.mrb[120].mxu0  ;;  %v7535_v55 = vadd.f32 %v5776_v49, %v1725_v27 }
 0x1fb   : > { %v5666_v11 = vpop.f32.mrb[121].mxu0  ;;  %v5777_v45 = vpop.f32.mrb[120].mxu1 }
 0x1fc   : > { %v5667_v50 = vadd.f32 %v5666_v11, %v5665_v19  ;;  %v5668_v22 = vpop.f32.mrb[122].mxu0  ;;  %v5778_v12 = vpop.f32.mrb[121].mxu1 }
 0x1fd   : > { %v5669_v37 = vpop.f32.mrb[123].mxu0  ;;  %v5779_v15 = vadd.f32 %v5778_v12, %v5777_v45  ;;  %v5780_v53 = vpop.f32.mrb[122].mxu1 }
 0x1fe   : > { %v1730_v26 = vadd.f32 %v5667_v50, %v7445_v13  ;;  %v5670_v2 = vadd.f32 %v5669_v37, %v5668_v22  ;;  %v5781_v3 = vpop.f32.mrb[123].mxu1 }
 0x1ff   : > { %v5782_v32 = vadd.f32 %v5781_v3, %v5780_v53 }
 0x200   : > { %v1733_v56 = vadd.f32 %v5670_v2, %v7447_v16  ;;  %v7539_v63 = vadd.f32 %v5779_v15, %v1730_v26 }
 0x202   : > { %v5671_v30 = vpop.f32.mrb[124].mxu0  ;;  %v7541_v17 = vadd.f32 %v5782_v32, %v1733_v56 }
 0x203   : > { %v5672_v46 = vpop.f32.mrb[125].mxu0  ;;  %v5783_v43 = vpop.f32.mrb[124].mxu1 }
 0x204   : > { %v5673_v38 = vadd.f32 %v5672_v46, %v5671_v30  ;;  %v5674_v48 = vpop.f32.mrb[126].mxu0  ;;  %v5784_v34 = vpop.f32.mrb[125].mxu1 }
 0x205   : > { %v5675_v6 = vpop.f32.mrb[127].mxu0  ;;  %v5785_v14 = vadd.f32 %v5784_v34, %v5783_v43  ;;  %v5786_v24 = vpop.f32.mrb[126].mxu1 }
 0x206   : > { %v1738_v13 = vadd.f32 %v5673_v38, %v7449_v41  ;;  %v5676_v31 = vadd.f32 %v5675_v6, %v5674_v48  ;;  %v5787_v25 = vpop.f32.mrb[127].mxu1 }
 0x207   : > { %v5788_v29 = vadd.f32 %v5787_v25, %v5786_v24 }
 0x208   : > { %v1741_v16 = vadd.f32 %v5676_v31, %v7451_v35  ;;  %v7545_v5 = vadd.f32 %v5785_v14, %v1738_v13 }
 0x20a   : > { %v6322_v61 = vpop.f32.mrb[128].mxu0  ;;  %v7547_v49 = vadd.f32 %v5788_v29, %v1741_v16 }
 0x20b   : > { %v7550_v27 = vadd.f32 %v6322_v61, %v7461_v28  ;;  %v1939_v19 = vpop.f32.mrb[129].mxu0 }
 0x20c   : > { %v7553_v11 = vadd.f32 %v1939_v19, %v7455_v18  ;;  %v6323_v45 = vpop.f32.mrb[130].mxu0 }
 0x20d   : > { %v7556_v41 = vadd.f32 %v6323_v45, %v7463_v40  ;;  %v1942_v50 = vpop.f32.mrb[131].mxu0 }
 0x20e   : > { %v7559_v22 = vadd.f32 %v1942_v50, %v7457_v33 }
 0x210   : > { %v2066_v35 = vadd.f32 %v7559_v22, %v7553_v11 }
 0x212   : > { %v2067_v12 = vadd.f32 %v2066_v35, %v7550_v27  ;;  %v6326_v37 = vpop.f32.mrb[132].mxu0 }
 0x213   : > { %v7565_v28 = vadd.f32 %v6326_v37, %v7473_v54  ;;  %v1955_v15 = vpop.f32.mrb[133].mxu0 }
 0x214   : > { %v7568_v18 = vadd.f32 %v1955_v15, %v7467_v59  ;;  %v2068_v40 = vadd.f32 %v2067_v12, %v7556_v41  ;;  %v6327_v53 = vpop.f32.mrb[134].mxu0 }
 0x215   : > { %v7572_v26 = vadd.f32 %v6327_v53, %v7475_v21  ;;  %v1958_v33 = vpop.f32.mrb[135].mxu0 }
 0x216   : > { %v2069_v2 = vadd.f32 %v2068_v40, %v7568_v18  ;;  %v7576_v3 = vadd.f32 %v1958_v33, %v7469_v7 }
 0x218   : > { %v2070_v32 = vadd.f32 %v2069_v2, %v7576_v3 }
 0x21a   : > { %v2071_v54 = vadd.f32 %v2070_v32, %v7565_v28  ;;  %v6330_v56 = vpop.f32.mrb[136].mxu0 }
 0x21b   : > { %v7581_v59 = vadd.f32 %v6330_v56, %v7485_v52  ;;  %v1971_v30 = vpop.f32.mrb[137].mxu0 }
 0x21c   : > { %v7584_v46 = vadd.f32 %v1971_v30, %v7479_v58  ;;  %v2072_v21 = vadd.f32 %v2071_v54, %v7572_v26  ;;  %v6331_v43 = vpop.f32.mrb[138].mxu0 }
 0x21d   : > { %v7588_v38 = vadd.f32 %v6331_v43, %v7487_v62  ;;  %v1974_v7 = vpop.f32.mrb[139].mxu0 }
 0x21e   : > { %v2073_v48 = vadd.f32 %v2072_v21, %v7584_v46  ;;  %v7592_v34 = vadd.f32 %v1974_v7, %v7481_v51 }
 0x220   : > { %v2074_v6 = vadd.f32 %v2073_v48, %v7592_v34 }
 0x222   : > { %v2075_v52 = vadd.f32 %v2074_v6, %v7581_v59  ;;  %v6334_v14 = vpop.f32.mrb[140].mxu0 }
 0x223   : > { %v7597_v58 = vadd.f32 %v6334_v14, %v7497_v36  ;;  %v1987_v24 = vpop.f32.mrb[141].mxu0 }
 0x224   : > { %v7600_v13 = vadd.f32 %v1987_v24, %v7491_v10  ;;  %v2076_v62 = vadd.f32 %v2075_v52, %v7588_v38  ;;  %v6335_v31 = vpop.f32.mrb[142].mxu0 }
 0x225   : > { %v7604_v25 = vadd.f32 %v6335_v31, %v7499_v57  ;;  %v1990_v51 = vpop.f32.mrb[143].mxu0 }
 0x226   : > { %v2077_v29 = vadd.f32 %v2076_v62, %v7600_v13  ;;  %v7608_v16 = vadd.f32 %v1990_v51, %v7493_v4 }
 0x228   : > { %v2078_v61 = vadd.f32 %v2077_v29, %v7608_v16 }
 0x22a   : > { %v2079_v36 = vadd.f32 %v2078_v61, %v7597_v58  ;;  %v6338_v19 = vpop.f32.mrb[144].mxu0 }
 0x22b   : > { %v7613_v10 = vadd.f32 %v6338_v19, %v7509_v1  ;;  %v2003_v45 = vpop.f32.mrb[145].mxu0 }
 0x22c   : > { %v7616_v50 = vadd.f32 %v2003_v45, %v7503_v0  ;;  %v2080_v57 = vadd.f32 %v2079_v36, %v7604_v25  ;;  %v6339_v35 = vpop.f32.mrb[146].mxu0 }
 0x22d   : > { %v7620_v12 = vadd.f32 %v6339_v35, %v7511_v39  ;;  %v2006_v4 = vpop.f32.mrb[147].mxu0 }
 0x22e   : > { %v2081_v37 = vadd.f32 %v2080_v57, %v7616_v50  ;;  %v7624_v15 = vadd.f32 %v2006_v4, %v7505_v8  ;;  %v6595_v57 = vld [vmem:[%s9301_s2 + $0xc0] sm:$0xff]   ;;  %v6583_v4 = vld [vmem:[%s9301_s2 + $0x48] sm:$0xff]  }
 0x22f   : > { %5925 = vmatprep.subr.bf16.mxu0 %v6595_v57 }
 0x230   : > { %v2082_v40 = vadd.f32 %v2081_v37, %v7624_v15  ;;  %v6584_v37 = vld [vmem:[%s9301_s2 + $0x8] sm:$0xff]  }
 0x232   : > { %v2083_v1 = vadd.f32 %v2082_v40, %v7613_v10  ;;  %v6342_v53 = vpop.f32.mrb[148].mxu0  ;;  %v6597_v40 = vld [vmem:[%s9301_s2 + $0xc8] sm:$0xff]  }
 0x233   : > { %v7629_v0 = vadd.f32 %v6342_v53, %v7521_v44  ;;  %v2019_v33 = vpop.f32.mrb[149].mxu0  ;;  %v6598_v53 = vld [vmem:[%s9301_s2 + $0x88] sm:$0xff]  }
 0x234   : > { %v7632_v2 = vadd.f32 %v2019_v33, %v7515_v47  ;;  %v2084_v39 = vadd.f32 %v2083_v1, %v7620_v12  ;;  %v6343_v32 = vpop.f32.mrb[150].mxu0 }
 0x235   : > { %v7636_v54 = vadd.f32 %v6343_v32, %v7523_v20  ;;  %v2022_v8 = vpop.f32.mrb[151].mxu0  ;;  %v6586_v32 = vld [vmem:[%s9301_s2 + $0x10] sm:$0xff]  }
 0x236   : > { %v2085_v56 = vadd.f32 %v2084_v39, %v7632_v2  ;;  %v7640_v30 = vadd.f32 %v2022_v8, %v7517_v60  ;;  %v6585_v39 = vld [vmem:[%s9301_s2 + $0x50] sm:$0xff]  }
 0x237   : > { %v6599_v8 = vld [vmem:[%s9301_s2 + $0xd0] sm:$0xff]  }
 0x238   : > { %v2086_v21 = vadd.f32 %v2085_v56, %v7640_v30 }
 0x23a   : > { %v2087_v44 = vadd.f32 %v2086_v21, %v7629_v0  ;;  %v6346_v43 = vpop.f32.mrb[152].mxu0  ;;  %v6600_v21 = vld [vmem:[%s9301_s2 + $0x90] sm:$0xff]  }
 0x23b   : > { %v7645_v47 = vadd.f32 %v6346_v43, %v7533_v9  ;;  %v2035_v7 = vpop.f32.mrb[153].mxu0  ;;  %v6587_v43 = vld [vmem:[%s9301_s2 + $0x58] sm:$0xff]  }
 0x23c   : > { %v7648_v48 = vadd.f32 %v2035_v7, %v7527_v42  ;;  %v2088_v20 = vadd.f32 %v2087_v44, %v7636_v54  ;;  %v6347_v6 = vpop.f32.mrb[154].mxu0  ;;  %v6588_v7 = vld [vmem:[%s9301_s2 + $0x18] sm:$0xff]  }
 0x23d   : > { %v7652_v52 = vadd.f32 %v6347_v6, %v7535_v55  ;;  %v2038_v60 = vpop.f32.mrb[155].mxu0 }
 0x23e   : > { %v2089_v14 = vadd.f32 %v2088_v20, %v7648_v48  ;;  %v7656_v24 = vadd.f32 %v2038_v60, %v7529_v23  ;;  %v6601_v20 = vld [vmem:[%s9301_s2 + $0xd8] sm:$0xff]  }
 0x23f   : > { %v6602_v60 = vld [vmem:[%s9301_s2 + $0x98] sm:$0xff]  }
 0x240   : > { %v2090_v62 = vadd.f32 %v2089_v14, %v7656_v24 }
 0x242   : > { %v2091_v9 = vadd.f32 %v2090_v62, %v7645_v47  ;;  %v6350_v31 = vpop.f32.mrb[156].mxu0  ;;  %v6589_v62 = vld [vmem:[%s9301_s2 + $0x60] sm:$0xff]  }
 0x243   : > { %v7661_v42 = vadd.f32 %v6350_v31, %v7545_v5  ;;  %v2051_v51 = vpop.f32.mrb[157].mxu0  ;;  %v6581_v5 = vld [vmem:[%s9301_s2 + $0x40] sm:$0xff]  }
 0x244   : > { %v7664_v29 = vadd.f32 %v2051_v51, %v7539_v63  ;;  %v2092_v55 = vadd.f32 %v2091_v9, %v7652_v52  ;;  %v6351_v61 = vpop.f32.mrb[158].mxu0  ;;  %v6582_v63 = vld [vmem:[%s9301_s2] sm:$0xff]   ;;  %5813 = vmatprep.subr.bf16.mxu1 %v6581_v5  ;;  %v6607_v5 = vld [vmem:[%s9301_s2 + $0xe8] sm:$0xff]  }
 0x245   : > { %v7668_v36 = vadd.f32 %v6351_v61, %v7547_v49  ;;  %v2054_v23 = vpop.f32.mrb[159].mxu0  ;;  %5814 = vmatpush3.bf16.msra.mxu1 %v6582_v63  ;;  %v6590_v9 = vld [vmem:[%s9301_s2 + $0x20] sm:$0xff]   ;;  %v6608_v63 = vld [vmem:[%s9301_s2 + $0xa8] sm:$0xff]  }
 0x246   : > { %v2093_v19 = vadd.f32 %v2092_v55, %v7664_v29  ;;  %v7672_v45 = vadd.f32 %v2054_v23, %v7541_v17  ;;  %v6596_v17 = vld [vmem:[%s9301_s2 + $0x80] sm:$0xff]   ;;  %5815 = vmatprep.subr.bf16.mxu1 %v6583_v4  ;;  %v6591_v23 = vld [vmem:[%s9301_s2 + $0x68] sm:$0xff]   ;;  %v6593_v4 = vld [vmem:[%s9301_s2 + $0x70] sm:$0xff]  }
 0x247   : > { %5926 = vmatpush3.bf16.msra.mxu0 %v6596_v17  ;;  %v6605_v31 = vld [vmem:[%s9301_s2 + $0xe0] sm:$0xff]  }
 0x248   : > { %v2094_v49 = vadd.f32 %v2093_v19, %v7672_v45  ;;  %5927 = vmatprep.subr.bf16.mxu0 %v6597_v40  ;;  %v6606_v55 = vld [vmem:[%s9301_s2 + $0xa0] sm:$0xff]   ;;  %v6592_v19 = vld [vmem:[%s9301_s2 + $0x28] sm:$0xff]  }
 0x249   : > { %5816 = vmatpush3.bf16.msra.mxu1 %v6584_v37 }
 0x24a   : > { %v2095_v35 = vadd.f32 %v2094_v49, %v7661_v42  ;;  %5817 = vmatprep.subr.bf16.mxu1 %v6585_v39  ;;  %v6611_v39 = vld [vmem:[%s9301_s2 + $0xf8] sm:$0xff]  }
 0x24b   : > { %5928 = vmatpush3.bf16.msra.mxu0 %v6598_v53  ;;  %v6610_v53 = vld [vmem:[%s9301_s2 + $0xb0] sm:$0xff]  }
 0x24c   : > { %v2096_v1 = vadd.f32 %v2095_v35, %v7668_v36  ;;  %5929 = vmatprep.subr.bf16.mxu0 %v6599_v8 }
 0x24d   : > { %5818 = vmatpush3.bf16.msra.mxu1 %v6586_v32  ;;  %v6613_v32 = vld [vmem:[%s9301_s2 + $0x140] sm:$0xff]  }
 0x24e   : > { %v2097_v33 = vrot.slane %v2096_v1, 4  ;;  %5819 = vmatprep.subr.bf16.mxu1 %v6587_v43 }
 0x24f   : > { %5930 = vmatpush3.bf16.msra.mxu0 %v6600_v21 }
 0x250   : > { %v2098_v56 = vadd.f32 %v2097_v33, %v2096_v1  ;;  %5931 = vmatprep.subr.bf16.mxu0 %v6601_v20  ;;  %v6609_v1 = vld [vmem:[%s9301_s2 + $0xf0] sm:$0xff]   ;;  %v6604_v33 = vld [vmem:[%s9301_s2 + $0x38] sm:$0xff]  }
 0x251   : > { %5820 = vmatpush3.bf16.msra.mxu1 %v6588_v7 }
 0x252   : > { %v2099_v44 = vrot.slane %v2098_v56, 2  ;;  %5821 = vmatprep.subr.bf16.mxu1 %v6589_v62 }
 0x253   : > { %5932 = vmatpush3.bf16.msra.mxu0 %v6602_v60 }
 0x254   : > { %v2100_v6 = vadd.f32 %v2099_v44, %v2098_v56  ;;  %5933 = vmatprep.subr.bf16.mxu0 %v6605_v31 }
 0x255   : > { %5822 = vmatpush3.bf16.msra.mxu1 %v6590_v9 }
 0x256   : > { %v2101_v14 = vrot.slane %v2100_v6, 1  ;;  %5823 = vmatprep.subr.bf16.mxu1 %v6591_v23 }
 0x257   : > { %5934 = vmatpush3.bf16.msra.mxu0 %v6606_v55 }
 0x258   : > { %v2102_v51 = vadd.f32 %v2101_v14, %v2100_v6  ;;  %5935 = vmatprep.subr.bf16.mxu0 %v6607_v5 }
 0x259   : > { %5824 = vmatpush3.bf16.msra.mxu1 %v6592_v19 }
 0x25a   : > { %v7737_v61 = vmul.f32 0.00390625, %v2102_v51  ;;  %5825 = vmatprep.subr.bf16.mxu1 %v6593_v4 }
 0x25b   : > { %5936 = vmatpush3.bf16.msra.mxu0 %v6608_v63 }
 0x25c   : > { %v7753_v57 = vsub.f32 %v7584_v46, %v7737_v61  ;;  %v7757_v49 = vsub.f32 %v7592_v34, %v7737_v61  ;;  %v7761_v17 = vsub.f32 %v7581_v59, %v7737_v61  ;;  %v7765_v35 = vsub.f32 %v7588_v38, %v7737_v61  ;;  %v6594_v46 = vld [vmem:[%s9301_s2 + $0x30] sm:$0xff]   ;;  %v6603_v34 = vld [vmem:[%s9301_s2 + $0x78] sm:$0xff]   ;;  %5937 = vmatprep.subr.bf16.mxu0 %v6609_v1 }
 0x25d   : > { %v7778_v59 = vsub.f32 %v7600_v13, %v7737_v61  ;;  %v7782_v38 = vsub.f32 %v7608_v16, %v7737_v61  ;;  %v7786_v37 = vsub.f32 %v7597_v58, %v7737_v61  ;;  %v7790_v40 = vsub.f32 %v7604_v25, %v7737_v61  ;;  %5826 = vmatpush3.bf16.msra.mxu1 %v6594_v46 }
 0x25e   : > { %v7797_v13 = vsub.f32 %v7616_v50, %v7737_v61  ;;  %v7801_v16 = vsub.f32 %v7624_v15, %v7737_v61  ;;  %v7805_v58 = vsub.f32 %v7613_v10, %v7737_v61  ;;  %v7809_v25 = vsub.f32 %v7620_v12, %v7737_v61  ;;  %5827 = vmatprep.subr.bf16.mxu1 %v6603_v34 }
 0x25f   : > { %v7816_v50 = vsub.f32 %v7632_v2, %v7737_v61  ;;  %v7820_v15 = vsub.f32 %v7640_v30, %v7737_v61  ;;  %v7824_v10 = vsub.f32 %v7629_v0, %v7737_v61  ;;  %v7828_v12 = vsub.f32 %v7636_v54, %v7737_v61  ;;  %5938 = vmatpush3.bf16.msra.mxu0 %v6610_v53 }
 0x260   : > { %v7835_v2 = vsub.f32 %v7648_v48, %v7737_v61  ;;  %v7839_v30 = vsub.f32 %v7656_v24, %v7737_v61  ;;  %v7843_v0 = vsub.f32 %v7645_v47, %v7737_v61  ;;  %v7847_v54 = vsub.f32 %v7652_v52, %v7737_v61  ;;  %5939 = vmatprep.subr.bf16.mxu0 %v6611_v39 }
 0x261   : > { %v7854_v48 = vsub.f32 %v7664_v29, %v7737_v61  ;;  %v7858_v24 = vsub.f32 %v7672_v45, %v7737_v61  ;;  %v7862_v47 = vsub.f32 %v7661_v42, %v7737_v61  ;;  %v7866_v52 = vsub.f32 %v7668_v36, %v7737_v61  ;;  %v6612_v42 = vld [vmem:[%s9301_s2 + $0xb8] sm:$0xff]   ;;  %5828 = vmatpush3.bf16.msra.mxu1 %v6604_v33 }
 0x262   : > { %v7873_v29 = vsub.f32 %v7553_v11, %v7737_v61  ;;  %v7877_v45 = vsub.f32 %v7559_v22, %v7737_v61  ;;  %6037 = vmatprep.subr.bf16.mxu1 %v6613_v32  ;;  %v7884_v36 = vsub.f32 %v7550_v27, %v7737_v61  ;;  %v7892_v22 = vsub.f32 %v7556_v41, %v7737_v61 }
 0x263   : > { %5940 = vmatpush3.bf16.msra.mxu0 %v6612_v42  ;;  %v7896_v56 = vsub.f32 %v7568_v18, %v7737_v61  ;;  %v7902_v44 = vsub.f32 %v7576_v3, %v7737_v61  ;;  %v7908_v41 = vsub.f32 %v7565_v28, %v7737_v61  ;;  %v7914_v6 = vsub.f32 %v7572_v26, %v7737_v61 }
 0x264   : > { %v2137_v11 = vmul.f32 %v7873_v29, %v7873_v29  ;;  %v2138_v8 = vmul.f32 %v7877_v45, %v7877_v45  ;;  %v2139_v21 = vmul.f32 %v7884_v36, %v7884_v36  ;;  %v2140_v43 = vmul.f32 %v7892_v22, %v7892_v22 }
 0x265   : > { %v2141_v18 = vmul.f32 %v7896_v56, %v7896_v56  ;;  %v2142_v3 = vmul.f32 %v7902_v44, %v7902_v44  ;;  %v2143_v14 = vmul.f32 %v7908_v41, %v7908_v41  ;;  %v2144_v28 = vmul.f32 %v7914_v6, %v7914_v6 }
 0x266   : > { %v2169_v27 = vadd.f32 %v2138_v8, %v2137_v11  ;;  %v2145_v31 = vmul.f32 %v7753_v57, %v7753_v57  ;;  %v2146_v26 = vmul.f32 %v7757_v49, %v7757_v49  ;;  %v2147_v61 = vmul.f32 %v7761_v17, %v7761_v17 }
 0x267   : > { %v2148_v19 = vmul.f32 %v7765_v35, %v7765_v35  ;;  %v2149_v63 = vmul.f32 %v7778_v59, %v7778_v59  ;;  %v2150_v46 = vmul.f32 %v7782_v38, %v7782_v38  ;;  %v2151_v1 = vmul.f32 %v7786_v37, %v7786_v37 }
 0x268   : > { %v2170_v7 = vadd.f32 %v2169_v27, %v2139_v21  ;;  %v2152_v33 = vmul.f32 %v7790_v40, %v7790_v40  ;;  %v2153_v32 = vmul.f32 %v7797_v13, %v7797_v13  ;;  %v2154_v11 = vmul.f32 %v7801_v16, %v7801_v16 }
 0x269   : > { %v2155_v21 = vmul.f32 %v7805_v58, %v7805_v58 }
 0x26a   : > { %v2171_v20 = vadd.f32 %v2170_v7, %v2140_v43  ;;  %v2156_v43 = vmul.f32 %v7809_v25, %v7809_v25 }
 0x26c   : > { %v2172_v60 = vadd.f32 %v2171_v20, %v2141_v18  ;;  %v2157_v18 = vmul.f32 %v7816_v50, %v7816_v50 }
 0x26e   : > { %v2173_v62 = vadd.f32 %v2172_v60, %v2142_v3  ;;  %v2158_v3 = vmul.f32 %v7820_v15, %v7820_v15 }
 0x270   : > { %v2174_v9 = vadd.f32 %v2173_v62, %v2143_v14  ;;  %v2159_v14 = vmul.f32 %v7824_v10, %v7824_v10 }
 0x272   : > { %v2175_v51 = vadd.f32 %v2174_v9, %v2144_v28  ;;  %v2160_v28 = vmul.f32 %v7828_v12, %v7828_v12 }
 0x274   : > { %v2176_v55 = vadd.f32 %v2175_v51, %v2145_v31  ;;  %v2161_v31 = vmul.f32 %v7835_v2, %v7835_v2 }
 0x276   : > { %v2177_v23 = vadd.f32 %v2176_v55, %v2146_v26  ;;  %v2162_v26 = vmul.f32 %v7839_v30, %v7839_v30 }
 0x278   : > { %v2178_v5 = vadd.f32 %v2177_v23, %v2147_v61  ;;  %v2163_v61 = vmul.f32 %v7843_v0, %v7843_v0 }
 0x27a   : > { %v2179_v4 = vadd.f32 %v2178_v5, %v2148_v19  ;;  %v2164_v19 = vmul.f32 %v7847_v54, %v7847_v54 }
 0x27c   : > { %v2180_v34 = vadd.f32 %v2179_v4, %v2149_v63  ;;  %v2165_v63 = vmul.f32 %v7854_v48, %v7854_v48 }
 0x27e   : > { %v2181_v53 = vadd.f32 %v2180_v34, %v2150_v46  ;;  %v6622_v46 = vld [vmem:[%s9301_s2 + $0x1c0] sm:$0xff]   ;;  %v2166_v34 = vmul.f32 %v7858_v24, %v7858_v24 }
 0x27f   : > { %6149 = vmatprep.subr.bf16.mxu0 %v6622_v46 }
 0x280   : > { %v2182_v39 = vadd.f32 %v2181_v53, %v2151_v1  ;;  %v2167_v53 = vmul.f32 %v7862_v47, %v7862_v47 }
 0x282   : > { %v2183_v42 = vadd.f32 %v2182_v39, %v2152_v33  ;;  %v2168_v39 = vmul.f32 %v7866_v52, %v7866_v52 }
 0x284   : > { %v2184_v8 = vadd.f32 %v2183_v42, %v2153_v32 }
 0x286   : > { %v2185_v27 = vadd.f32 %v2184_v8, %v2154_v11 }
 0x288   : > { %v2186_v7 = vadd.f32 %v2185_v27, %v2155_v21 }
 0x28a   : > { %v2187_v20 = vadd.f32 %v2186_v7, %v2156_v43 }
 0x28c   : > { %v2188_v60 = vadd.f32 %v2187_v20, %v2157_v18 }
 0x28e   : > { %v2189_v62 = vadd.f32 %v2188_v60, %v2158_v3 }
 0x290   : > { %v2190_v9 = vadd.f32 %v2189_v62, %v2159_v14 }
 0x292   : > { %v2191_v51 = vadd.f32 %v2190_v9, %v2160_v28 }
 0x294   : > { %v2192_v55 = vadd.f32 %v2191_v51, %v2161_v31 }
 0x296   : > { %v2193_v23 = vadd.f32 %v2192_v55, %v2162_v26 }
 0x298   : > { %v2194_v5 = vadd.f32 %v2193_v23, %v2163_v61 }
 0x29a   : > { %v2195_v4 = vadd.f32 %v2194_v5, %v2164_v19 }
 0x29c   : > { %v2196_v1 = vadd.f32 %v2195_v4, %v2165_v63 }
 0x29e   : > { %v2197_v33 = vadd.f32 %v2196_v1, %v2166_v34 }
 0x2a0   : > { %v2198_v32 = vadd.f32 %v2197_v33, %v2167_v53 }
 0x2a2   : > { %v2199_v42 = vadd.f32 %v2198_v32, %v2168_v39 }
 0x2a4   : > { %v2200_v11 = vrot.slane %v2199_v42, 4 }
 0x2a6   : > { %v2201_v8 = vadd.f32 %v2200_v11, %v2199_v42 }
 0x2a8   : > { %v2202_v21 = vrot.slane %v2201_v8, 2 }
 0x2aa   : > { %v2203_v27 = vadd.f32 %v2202_v21, %v2201_v8 }
 0x2ac   : > { %v2204_v43 = vrot.slane %v2203_v27, 1 }
 0x2ae   : > { %v2205_v7 = vadd.f32 %v2204_v43, %v2203_v27 }
 0x2b0   : > { %v2206_v18 = vmul.f32 0.00390625, %v2205_v7 }
 0x2b2   : > { %v2207_v20 = vadd.f32 1e-05, %v2206_v18 }
 0x2b4   : > { %6653 = vrsqrt.f32 %v2207_v20 }
 0x2be   : > { %v6654_v3 = vpop.eup %6653 }
 0x2bf   : > { %v2238_v60 = vmul.f32 %v6654_v3, %v7858_v24  ;;  %v7975_v14 = vmul.f32 %v6654_v3, %v7873_v29  ;;  %v7978_v62 = vmul.f32 %v6654_v3, %v7877_v45  ;;  %v2211_v28 = vmul.f32 %v6654_v3, %v7884_v36 }
 0x2c0   : > { %v2212_v9 = vmul.f32 %v6654_v3, %v7892_v22  ;;  %v7983_v31 = vmul.f32 %v6654_v3, %v7896_v56  ;;  %v7986_v51 = vmul.f32 %v6654_v3, %v7902_v44  ;;  %v7989_v26 = vmul.f32 %v6654_v3, %v7908_v41 }
 0x2c1   : > { %v2270_v24 = vmax.f32 %v2238_v60, 0.0  ;;  %v7992_v29 = vmul.f32 %v6654_v3, %v7914_v6  ;;  %v7995_v45 = vmul.f32 %v6654_v3, %v7753_v57  ;;  %v7998_v36 = vmul.f32 %v6654_v3, %v7757_v49 }
 0x2c2   : > { %v8001_v22 = vmul.f32 %v6654_v3, %v7761_v17  ;;  %v8004_v56 = vmul.f32 %v6654_v3, %v7765_v35  ;;  %v8007_v44 = vmul.f32 %v6654_v3, %v7778_v59  ;;  %v8010_v41 = vmul.f32 %v6654_v3, %v7782_v38 }
 0x2c3   : > { %2303 = vst [vmem:[#allocation2 + $0x171] sm:$0xff] %v2270_v24  ;;  %2310 = vst [vmem:[#allocation2 + $0x1a1] sm:$0xff] %v2270_v24  ;;  %v8013_v57 = vmul.f32 %v6654_v3, %v7786_v37  ;;  %v8016_v49 = vmul.f32 %v6654_v3, %v7790_v40  ;;  %v8019_v17 = vmul.f32 %v6654_v3, %v7797_v13  ;;  %v2243_v55 = vmax.f32 %v2211_v28, 0.0 }
 0x2c4   : > { %v8022_v35 = vmul.f32 %v6654_v3, %v7801_v16  ;;  %v8025_v59 = vmul.f32 %v6654_v3, %v7805_v58  ;;  %v8028_v38 = vmul.f32 %v6654_v3, %v7809_v25  ;;  %v8031_v6 = vmul.f32 %v6654_v3, %v7816_v50 }
 0x2c5   : > { %v8034_v37 = vmul.f32 %v6654_v3, %v7820_v15  ;;  %v8037_v40 = vmul.f32 %v6654_v3, %v7824_v10  ;;  %v8040_v13 = vmul.f32 %v6654_v3, %v7828_v12  ;;  %v8043_v16 = vmul.f32 %v6654_v3, %v7835_v2  ;;  %2276 = vst [vmem:[#allocation2 + $0x31] sm:$0xff] %v2243_v55 }
 0x2c6   : > { %v8046_v58 = vmul.f32 %v6654_v3, %v7839_v30  ;;  %v8049_v25 = vmul.f32 %v6654_v3, %v7843_v0  ;;  %v8052_v50 = vmul.f32 %v6654_v3, %v7847_v54  ;;  %v8055_v15 = vmul.f32 %v6654_v3, %v7854_v48  ;;  %2306 = vst [vmem:[#allocation2 + $0x1] sm:$0xff] %v2243_v55 }
 0x2c7   : > { %v8058_v10 = vmul.f32 %v6654_v3, %v7862_v47  ;;  %v8061_v12 = vmul.f32 %v6654_v3, %v7866_v52  ;;  %v2241_v2 = vmax.f32 %v7975_v14, 0.0  ;;  %v2242_v30 = vmax.f32 %v7978_v62, 0.0  ;;  %v6616_v62 = vld [vmem:[%s9301_s2 + $0x108] sm:$0xff]  }
 0x2c8   : > { %v2244_v61 = vmax.f32 %v2212_v9, 0.0  ;;  %v2245_v0 = vmax.f32 %v7983_v31, 0.0  ;;  %v2246_v54 = vmax.f32 %v7986_v51, 0.0  ;;  %v2247_v23 = vmax.f32 %v7989_v26, 0.0  ;;  %v6639_v31 = vld [vmem:[%s9301_s2 + $0x1e8] sm:$0xff]  }
 0x2c9   : > { %v2248_v48 = vmax.f32 %v7992_v29, 0.0  ;;  %v2249_v47 = vmax.f32 %v7995_v45, 0.0  ;;  %v2250_v19 = vmax.f32 %v7998_v36, 0.0  ;;  %v2251_v52 = vmax.f32 %v8001_v22, 0.0  ;;  %2274 = vst [vmem:[#allocation2 + $0x19] sm:$0xff] %v2241_v2  ;;  %2275 = vst [vmem:[#allocation2 + $0x21] sm:$0xff] %v2242_v30 }
 0x2ca   : > { %v2364_v5 = vld [vmem:[#allocation2 + $0x1a7] sm:$0x1]  ;;  %v2252_v63 = vmax.f32 %v8004_v56, 0.0  ;;  %v2253_v4 = vmax.f32 %v8007_v44, 0.0  ;;  %v2254_v46 = vmax.f32 %v8010_v41, 0.0  ;;  %v2255_v34 = vmax.f32 %v8013_v57, 0.0 }
 0x2cb   : > { %2277 = vst [vmem:[#allocation2 + $0x39] sm:$0xff] %v2244_v61  ;;  %2278 = vst [vmem:[#allocation2 + $0x49] sm:$0xff] %v2245_v0  ;;  %v2256_v1 = vmax.f32 %v8016_v49, 0.0  ;;  %v2257_v53 = vmax.f32 %v8019_v17, 0.0  ;;  %v2258_v33 = vmax.f32 %v8022_v35, 0.0  ;;  %v2259_v39 = vmax.f32 %v8025_v59, 0.0 }
 0x2cc   : > { %2279 = vst [vmem:[#allocation2 + $0x51] sm:$0xff] %v2246_v54  ;;  %2280 = vst [vmem:[#allocation2 + $0x61] sm:$0xff] %v2247_v23  ;;  %v2260_v32 = vmax.f32 %v8028_v38, 0.0  ;;  %v2261_v42 = vmax.f32 %v8031_v6, 0.0  ;;  %v2262_v11 = vmax.f32 %v8034_v37, 0.0  ;;  %v2263_v8 = vmax.f32 %v8037_v40, 0.0 }
 0x2cd   : > { %2307 = vst [vmem:[#allocation2 + $0x9] sm:$0xff] %v2244_v61  ;;  %2382 = vst [vmem:[#allocation2 + $0x1a9] sm:$0x1] %v2364_v5  ;;  %v2264_v21 = vmax.f32 %v8040_v13, 0.0  ;;  %v2265_v27 = vmax.f32 %v8043_v16, 0.0  ;;  %v2266_v43 = vmax.f32 %v8046_v58, 0.0  ;;  %v8116_v28 = vpack.c.bf16 %v2244_v61, %v2243_v55 }
 0x2ce   : > { %2281 = vst [vmem:[#allocation2 + $0x69] sm:$0xff] %v2248_v48  ;;  %2282 = vst [vmem:[#allocation2 + $0x79] sm:$0xff] %v2249_v47  ;;  %v2267_v7 = vmax.f32 %v8049_v25, 0.0  ;;  %v2268_v18 = vmax.f32 %v8052_v50, 0.0  ;;  %v2269_v20 = vmax.f32 %v8055_v15, 0.0  ;;  %v2271_v3 = vmax.f32 %v8058_v10, 0.0 }
 0x2cf   : > { %2283 = vst [vmem:[#allocation2 + $0x81] sm:$0xff] %v2250_v19  ;;  %2284 = vst [vmem:[#allocation2 + $0x91] sm:$0xff] %v2251_v52  ;;  %v2272_v60 = vmax.f32 %v8061_v12, 0.0  ;;  %v2362_v9 = vld [vmem:[#allocation2 + $0x177] sm:$0x1]  ;;  %v8118_v49 = vpack.c.bf16 %v2256_v1, %v2255_v34  ;;  %3424 = vmatprep.mubr.bf16.mxu1 %v8116_v28  ;;  %v8121_v35 = vpack.c.bf16 %v2258_v33, %v2257_v53  ;;  %v6614_v5 = vld [vmem:[%s9301_s2 + $0x100] sm:$0xff]  }
 0x2d0   : > { %2285 = vst [vmem:[#allocation2 + $0x99] sm:$0xff] %v2252_v63  ;;  %2286 = vst [vmem:[#allocation2 + $0xa9] sm:$0xff] %v2253_v4  ;;  %v2311_v24 = vld [vmem:[#allocation2 + $0x2] sm:$0x1]  ;;  %v2312_v57 = vld [vmem:[#allocation2 + $0x1a] sm:$0x1]  ;;  %v8123_v59 = vpack.c.bf16 %v2260_v32, %v2259_v39  ;;  %v8125_v38 = vpack.c.bf16 %v2262_v11, %v2261_v42  ;;  %v8127_v6 = vpack.c.bf16 %v2264_v21, %v2263_v8 }
 0x2d1   : > { %2287 = vst [vmem:[#allocation2 + $0xb1] sm:$0xff] %v2254_v46  ;;  %2288 = vst [vmem:[#allocation2 + $0xc1] sm:$0xff] %v2255_v34  ;;  %v2313_v37 = vld [vmem:[#allocation2 + $0x32] sm:$0x1]  ;;  %v8129_v40 = vpack.c.bf16 %v2266_v43, %v2265_v27  ;;  %v8131_v13 = vpack.c.bf16 %v2268_v18, %v2267_v7  ;;  %v2348_v16 = vld [vmem:[#allocation2 + $0x27] sm:$0x1]  ;;  %v2470_v22 = vpack.c.bf16 %v2254_v46, %v2253_v4 }
 0x2d2   : > { %2289 = vst [vmem:[#allocation2 + $0xc9] sm:$0xff] %v2256_v1  ;;  %2290 = vst [vmem:[#allocation2 + $0xd9] sm:$0xff] %v2257_v53  ;;  %v2314_v58 = vld [vmem:[#allocation2 + $0x4a] sm:$0x1]  ;;  %v2349_v25 = vld [vmem:[#allocation2 + $0x3f] sm:$0x1] }
 0x2d3   : > { %2291 = vst [vmem:[#allocation2 + $0xe1] sm:$0xff] %v2258_v33  ;;  %2292 = vst [vmem:[#allocation2 + $0xf1] sm:$0xff] %v2259_v39  ;;  %v2315_v50 = vld [vmem:[#allocation2 + $0x62] sm:$0x1]  ;;  %v2350_v15 = vld [vmem:[#allocation2 + $0x57] sm:$0x1] }
 0x2d4   : > { %2293 = vst [vmem:[#allocation2 + $0xf9] sm:$0xff] %v2260_v32  ;;  %2294 = vst [vmem:[#allocation2 + $0x109] sm:$0xff] %v2261_v42  ;;  %v2347_v17 = vld [vmem:[#allocation2 + $0xf] sm:$0x1]  ;;  %v2528_v61 = vld [vmem:[#allocation2 + $0x20] sm:$0xff] }
 0x2d5   : > { %2295 = vst [vmem:[#allocation2 + $0x111] sm:$0xff] %v2262_v11  ;;  %2296 = vst [vmem:[#allocation2 + $0x121] sm:$0xff] %v2263_v8  ;;  %v2316_v10 = vld [vmem:[#allocation2 + $0x7a] sm:$0x1]  ;;  %v2351_v12 = vld [vmem:[#allocation2 + $0x6f] sm:$0x1] }
 0x2d6   : > { %2297 = vst [vmem:[#allocation2 + $0x129] sm:$0xff] %v2264_v21  ;;  %2298 = vst [vmem:[#allocation2 + $0x139] sm:$0xff] %v2265_v27  ;;  %v2317_v34 = vld [vmem:[#allocation2 + $0x92] sm:$0x1]  ;;  %v2384_v53 = vld [vmem:[#allocation2 + $0x8] sm:$0xff] }
 0x2d7   : > { %2299 = vst [vmem:[#allocation2 + $0x141] sm:$0xff] %v2266_v43  ;;  %2300 = vst [vmem:[#allocation2 + $0x151] sm:$0xff] %v2267_v7  ;;  %v6615_v39 = vld [vmem:[%s9301_s2 + $0x148] sm:$0xff]   ;;  %v6624_v32 = vld [vmem:[%s9301_s2 + $0x180] sm:$0xff]   ;;  %v2464_v43 = vpack.c.bf16 %v2242_v30, %v2241_v2 }
 0x2d8   : > { %2301 = vst [vmem:[#allocation2 + $0x159] sm:$0xff] %v2268_v18  ;;  %2302 = vst [vmem:[#allocation2 + $0x169] sm:$0xff] %v2269_v20  ;;  %v2479_v8 = vld [vmem:[#allocation2 + $0x2] sm:$0xff]  ;;  %v6617_v2 = vld [vmem:[%s9301_s2 + $0x150] sm:$0xff]  }
 0x2d9   : > { %2304 = vst [vmem:[#allocation2 + $0x181] sm:$0xff] %v2271_v3  ;;  %2305 = vst [vmem:[#allocation2 + $0x189] sm:$0xff] %v2272_v60  ;;  %v2352_v27 = vld [vmem:[#allocation2 + $0x87] sm:$0x1]  ;;  %v2318_v3 = vld [vmem:[#allocation2 + $0xaa] sm:$0x1] }
 0x2da   : > { %2309 = vst [vmem:[#allocation2 + $0x199] sm:$0xff] %v2269_v20  ;;  %2380 = vst [vmem:[#allocation2 + $0x179] sm:$0x1] %v2362_v9  ;;  %v2530_v20 = vld [vmem:[#allocation2 + $0x38] sm:$0xff]  ;;  %v2319_v14 = vld [vmem:[#allocation2 + $0xc2] sm:$0x1] }
 0x2db   : > { %2329 = vst [vmem:[#allocation2] sm:$0x1] %v2311_v24  ;;  %2330 = vst [vmem:[#allocation2 + $0x18] sm:$0x1] %v2312_v57  ;;  %v2353_v9 = vld [vmem:[#allocation2 + $0x9f] sm:$0x1] }
 0x2dc   : > { %2365 = vst [vmem:[#allocation2 + $0x11] sm:$0x1] %v2347_v17  ;;  %2331 = vst [vmem:[#allocation2 + $0x30] sm:$0x1] %v2313_v37  ;;  %v6626_v24 = vld [vmem:[%s9301_s2 + $0x1c8] sm:$0xff]   ;;  %v6643_v29 = vld [vmem:[%s9301_s2 + $0x1f8] sm:$0xff]  }
 0x2dd   : > { %2366 = vst [vmem:[#allocation2 + $0x29] sm:$0x1] %v2348_v16  ;;  %2332 = vst [vmem:[#allocation2 + $0x48] sm:$0x1] %v2314_v58  ;;  %v2354_v30 = vld [vmem:[#allocation2 + $0xb7] sm:$0x1] }
 0x2de   : > { %2367 = vst [vmem:[#allocation2 + $0x41] sm:$0x1] %v2349_v25  ;;  %2333 = vst [vmem:[#allocation2 + $0x60] sm:$0x1] %v2315_v50  ;;  %v6628_v57 = vld [vmem:[%s9301_s2 + $0x188] sm:$0xff]   ;;  %v6630_v16 = vld [vmem:[%s9301_s2 + $0x1d0] sm:$0xff]  }
 0x2df   : > { %2368 = vst [vmem:[#allocation2 + $0x59] sm:$0x1] %v2350_v15  ;;  %2334 = vst [vmem:[#allocation2 + $0x78] sm:$0x1] %v2316_v10  ;;  %v2320_v37 = vld [vmem:[#allocation2 + $0xda] sm:$0x1] }
 0x2e0   : > { %2369 = vst [vmem:[#allocation2 + $0x71] sm:$0x1] %v2351_v12  ;;  %2335 = vst [vmem:[#allocation2 + $0x90] sm:$0x1] %v2317_v34  ;;  %v6618_v25 = vld [vmem:[%s9301_s2 + $0x110] sm:$0xff]   ;;  %v2481_v15 = vld [vmem:[#allocation2 + $0x1a] sm:$0xff] }
 0x2e1   : > { %v2328_v55 = vld [vmem:[#allocation2 + $0x19a] sm:$0x1]  ;;  %2370 = vst [vmem:[#allocation2 + $0x89] sm:$0x1] %v2352_v27  ;;  %2336 = vst [vmem:[#allocation2 + $0xa8] sm:$0x1] %v2318_v3 }
 0x2e2   : > { %2346 = vst [vmem:[#allocation2 + $0x198] sm:$0x1] %v2328_v55  ;;  %v2383_v1 = vld [vmem:[#allocation2] sm:$0xff]  ;;  %v2527_v33 = vld [vmem:[#allocation2 + $0x18] sm:$0xff]  ;;  %2371 = vst [vmem:[#allocation2 + $0xa1] sm:$0x1] %v2353_v9 }
 0x2e3   : > { %v2415_v42 = vpack.c.bf16 %v2384_v53, %v2383_v1  ;;  %v2559_v11 = vpack.c.bf16 %v2528_v61, %v2527_v33  ;;  %v2480_v21 = vld [vmem:[#allocation2 + $0xa] sm:$0xff]  ;;  %2337 = vst [vmem:[#allocation2 + $0xc0] sm:$0x1] %v2319_v14  ;;  %2372 = vst [vmem:[#allocation2 + $0xb9] sm:$0x1] %v2354_v30  ;;  %v6619_v10 = vld [vmem:[%s9301_s2 + $0x158] sm:$0xff]  }
 0x2e4   : > { %v2511_v7 = vpack.c.bf16 %v2480_v21, %v2479_v8  ;;  %v2529_v18 = vld [vmem:[#allocation2 + $0x30] sm:$0xff]  ;;  %v2482_v17 = vld [vmem:[#allocation2 + $0x22] sm:$0xff]  ;;  %2338 = vst [vmem:[#allocation2 + $0xd8] sm:$0x1] %v2320_v37  ;;  %v2355_v50 = vld [vmem:[#allocation2 + $0xcf] sm:$0x1] }
 0x2e5   : > { %3425 = vmatmul.mubr.bf16.vlgmr.msra.gmra.mrb[128].mxu1 %v2415_v42  ;;  %3585 = vmatprep.mubr.bf16.mxu0 %v2559_v11  ;;  %v8146_v60 = vpack.c.bf16 %v2530_v20, %v2529_v18  ;;  %v2531_v58 = vld [vmem:[#allocation2 + $0x48] sm:$0xff]  ;;  %2373 = vst [vmem:[#allocation2 + $0xd1] sm:$0x1] %v2355_v50  ;;  %v2321_v12 = vld [vmem:[#allocation2 + $0xf2] sm:$0x1]  ;;  %v8170_v55 = vpack.c.bf16 %v2482_v17, %v2481_v15  ;;  %v6633_v33 = vld [vmem:[%s9301_s2 + $0x1d8] sm:$0xff]  }
 0x2e6   : > { %3432 = vmatprep.mubr.bf16.mxu1 %v2464_v43  ;;  %3586 = vmatmul.mubr.bf16.vlgmr.msra.gmra.mrb[160].mxu0 %v2511_v7  ;;  %v2532_v61 = vld [vmem:[#allocation2 + $0x50] sm:$0xff]  ;;  %2339 = vst [vmem:[#allocation2 + $0xf0] sm:$0x1] %v2321_v12  ;;  %v2322_v53 = vld [vmem:[#allocation2 + $0x10a] sm:$0x1]  ;;  %v6621_v8 = vld [vmem:[%s9301_s2 + $0x160] sm:$0xff]  }
 0x2e7   : > { %6038 = vmatpush3.bf16.msra.mxu1 %v6614_v5  ;;  %3593 = vmatprep.mubr.bf16.mxu0 %v8146_v60  ;;  %v2356_v5 = vld [vmem:[#allocation2 + $0xe7] sm:$0x1]  ;;  %v6632_v34 = vld [vmem:[%s9301_s2 + $0x190] sm:$0xff]   ;;  %v8175_v1 = vpack.c.bf16 %v2532_v61, %v2531_v58  ;;  %2340 = vst [vmem:[#allocation2 + $0x108] sm:$0x1] %v2322_v53  ;;  %v6634_v21 = vld [vmem:[%s9301_s2 + $0x198] sm:$0xff]   ;;  %v2467_v61 = vpack.c.bf16 %v2248_v48, %v2247_v23 }
 0x2e8   : > { %6039 = vmatprep.subr.bf16.mxu1 %v6615_v39  ;;  %6150 = vmatpush3.bf16.msra.mxu0 %v6624_v32  ;;  %2374 = vst [vmem:[#allocation2 + $0xe9] sm:$0x1] %v2356_v5  ;;  %v2357_v39 = vld [vmem:[#allocation2 + $0xff] sm:$0x1]  ;;  %v2323_v42 = vld [vmem:[#allocation2 + $0x122] sm:$0x1] }
 0x2e9   : > { %6151 = vmatprep.subr.bf16.mxu0 %v6626_v24  ;;  %v6620_v32 = vld [vmem:[%s9301_s2 + $0x118] sm:$0xff]   ;;  %2375 = vst [vmem:[#allocation2 + $0x101] sm:$0x1] %v2357_v39  ;;  %2341 = vst [vmem:[#allocation2 + $0x120] sm:$0x1] %v2323_v42  ;;  %v6637_v7 = vld [vmem:[%s9301_s2 + $0x1e0] sm:$0xff]  }
 0x2ea   : > { %v2484_v27 = vld [vmem:[#allocation2 + $0x3a] sm:$0xff]  ;;  %v2359_v43 = vld [vmem:[#allocation2 + $0x12f] sm:$0x1]  ;;  %v2325_v3 = vld [vmem:[#allocation2 + $0x152] sm:$0x1] }
 0x2eb   : > { %6040 = vmatpush3.bf16.msra.mxu1 %v6616_v62  ;;  %v2533_v18 = vld [vmem:[#allocation2 + $0x60] sm:$0xff]  ;;  %2377 = vst [vmem:[#allocation2 + $0x131] sm:$0x1] %v2359_v43  ;;  %v2483_v9 = vld [vmem:[#allocation2 + $0x32] sm:$0xff]  ;;  %v6625_v24 = vld [vmem:[%s9301_s2 + $0x168] sm:$0xff]   ;;  %v2466_v62 = vpack.c.bf16 %v2246_v54, %v2245_v0 }
 0x2ec   : > { %6041 = vmatprep.subr.bf16.mxu1 %v6617_v2  ;;  %6152 = vmatpush3.bf16.msra.mxu0 %v6628_v57  ;;  %v6623_v20 = vld [vmem:[%s9301_s2 + $0x120] sm:$0xff]   ;;  %2343 = vst [vmem:[#allocation2 + $0x150] sm:$0x1] %v2325_v3  ;;  %v8205_v2 = vpack.c.bf16 %v2484_v27, %v2483_v9  ;;  %v2534_v30 = vld [vmem:[#allocation2 + $0x68] sm:$0xff]  ;;  %v2361_v51 = vld [vmem:[#allocation2 + $0x15f] sm:$0x1] }
 0x2ed   : > { %3433 = vmatmul.mubr.bf16.gmra.mrb[132].mxu1 %v2559_v11  ;;  %6153 = vmatprep.subr.bf16.mxu0 %v6630_v16  ;;  %v2358_v11 = vld [vmem:[#allocation2 + $0x117] sm:$0x1]  ;;  %v2360_v14 = vld [vmem:[#allocation2 + $0x147] sm:$0x1]  ;;  %v2326_v57 = vld [vmem:[#allocation2 + $0x16a] sm:$0x1]  ;;  %v8211_v37 = vpack.c.bf16 %v2534_v30, %v2533_v18 }
 0x2ee   : > { %3440 = vmatprep.mubr.bf16.mxu1 %v8116_v28  ;;  %3594 = vmatmul.mubr.bf16.gmra.mrb[164].mxu0 %v8170_v55  ;;  %2376 = vst [vmem:[#allocation2 + $0x119] sm:$0x1] %v2358_v11  ;;  %v2324_v28 = vld [vmem:[#allocation2 + $0x13a] sm:$0x1]  ;;  %2378 = vst [vmem:[#allocation2 + $0x149] sm:$0x1] %v2360_v14 }
 0x2ef   : > { %3601 = vmatprep.mubr.bf16.mxu0 %v8175_v1  ;;  %6042 = vmatpush3.bf16.msra.mxu1 %v6618_v25  ;;  %2342 = vst [vmem:[#allocation2 + $0x138] sm:$0x1] %v2324_v28  ;;  %v6638_v17 = vld [vmem:[%s9301_s2 + $0x1a0] sm:$0xff]   ;;  %2344 = vst [vmem:[#allocation2 + $0x168] sm:$0x1] %v2326_v57  ;;  %v6627_v0 = vld [vmem:[%s9301_s2 + $0x128] sm:$0xff]  }
 0x2f0   : > { %6043 = vmatprep.subr.bf16.mxu1 %v6619_v10  ;;  %6154 = vmatpush3.bf16.msra.mxu0 %v6632_v34  ;;  %2379 = vst [vmem:[#allocation2 + $0x161] sm:$0x1] %v2361_v51  ;;  %v2327_v54 = vld [vmem:[#allocation2 + $0x182] sm:$0x1]  ;;  %v6629_v16 = vld [vmem:[%s9301_s2 + $0x170] sm:$0xff]   ;;  %v6640_v58 = vld [vmem:[%s9301_s2 + $0x1a8] sm:$0xff]  }
 0x2f1   : > { %6155 = vmatprep.subr.bf16.mxu0 %v6633_v33  ;;  %2345 = vst [vmem:[#allocation2 + $0x180] sm:$0x1] %v2327_v54  ;;  %v8227_v25 = vld [vmem:[#allocation2 + $0x52] sm:$0xff]  ;;  %v8232_v10 = vld [vmem:[#allocation2 + $0x4a] sm:$0xff]  ;;  %v2536_v34 = vld [vmem:[#allocation2 + $0x80] sm:$0xff] }
 0x2f2   : > { %v6641_v50 = vld [vmem:[%s9301_s2 + $0x1f0] sm:$0xff]   ;;  %v2535_v15 = vld [vmem:[#allocation2 + $0x78] sm:$0xff]  ;;  %v2514_v5 = vpack.c.bf16 %v8227_v25, %v8232_v10  ;;  %v8265_v39 = vld [vmem:[%s9301_s2 + $0x200] sm:$0xff]  }
 0x2f3   : > { %6044 = vmatpush3.bf16.msra.mxu1 %v6620_v32  ;;  %v6631_v12 = vld [vmem:[%s9301_s2 + $0x130] sm:$0xff]   ;;  %v6635_v53 = vld [vmem:[%s9301_s2 + $0x178] sm:$0xff]   ;;  %v8250_v26 = vpack.c.bf16 %v2536_v34, %v2535_v15  ;;  %v2487_v11 = vld [vmem:[#allocation2 + $0x62] sm:$0xff] }
 0x2f4   : > { %6045 = vmatprep.subr.bf16.mxu1 %v6621_v8  ;;  %6156 = vmatpush3.bf16.msra.mxu0 %v6634_v21  ;;  %v6642_v33 = vld [vmem:[%s9301_s2 + $0x1b0] sm:$0xff]   ;;  %v6636_v23 = vld [vmem:[%s9301_s2 + $0x138] sm:$0xff]   ;;  %v2468_v8 = vpack.c.bf16 %v2250_v19, %v2249_v47  ;;  %v2363_v43 = vld [vmem:[#allocation2 + $0x18f] sm:$0x1]  ;;  %v2469_v19 = vpack.c.bf16 %v2252_v63, %v2251_v52 }
 0x2f5   : > { %3441 = vmatmul.mubr.bf16.gmra.mrb[136].mxu1 %v8146_v60  ;;  %6157 = vmatprep.subr.bf16.mxu0 %v6637_v7  ;;  %v6644_v48 = vld [vmem:[%s9301_s2 + $0x1b8] sm:$0xff]   ;;  %v2488_v32 = vld [vmem:[#allocation2 + $0x6a] sm:$0xff]  ;;  %v2490_v45 = vld [vmem:[#allocation2 + $0x82] sm:$0xff]  ;;  %2381 = vst [vmem:[#allocation2 + $0x191] sm:$0x1] %v2363_v43 }
 0x2f6   : > { %3448 = vmatprep.mubr.bf16.mxu1 %v2466_v62  ;;  %3602 = vmatmul.mubr.bf16.gmra.mrb[168].mxu0 %v8205_v2  ;;  %v2537_v42 = vld [vmem:[#allocation2 + $0x90] sm:$0xff]  ;;  %v8271_v28 = vpack.c.bf16 %v2488_v32, %v2487_v11  ;;  %v2538_v21 = vld [vmem:[#allocation2 + $0x98] sm:$0xff]  ;;  %v2539_v36 = vld [vmem:[#allocation2 + $0xa8] sm:$0xff] }
 0x2f7   : > { %3609 = vmatprep.mubr.bf16.mxu0 %v8211_v37  ;;  %6046 = vmatpush3.bf16.msra.mxu1 %v6623_v20  ;;  %v8275_v27 = vpack.c.bf16 %v2538_v21, %v2537_v42  ;;  %v2489_v47 = vld [vmem:[#allocation2 + $0x7a] sm:$0xff]  ;;  %v2540_v18 = vld [vmem:[#allocation2 + $0xb0] sm:$0xff]  ;;  %v2542_v52 = vld [vmem:[#allocation2 + $0xc8] sm:$0xff] }
 0x2f8   : > { %6047 = vmatprep.subr.bf16.mxu1 %v6625_v24  ;;  %6158 = vmatpush3.bf16.msra.mxu0 %v6638_v17  ;;  %v8283_v7 = vpack.c.bf16 %v2490_v45, %v2489_v47  ;;  %v8286_v20 = vpack.c.bf16 %v2540_v18, %v2539_v36  ;;  %v2492_v3 = vld [vmem:[#allocation2 + $0x9a] sm:$0xff]  ;;  %v2491_v24 = vld [vmem:[#allocation2 + $0x92] sm:$0xff]  ;;  %v2493_v30 = vld [vmem:[#allocation2 + $0xaa] sm:$0xff] }
 0x2f9   : > { %6159 = vmatprep.subr.bf16.mxu0 %v6639_v31  ;;  %v2541_v9 = vld [vmem:[#allocation2 + $0xc0] sm:$0xff]  ;;  %v8294_v56 = vpack.c.bf16 %v2492_v3, %v2491_v24  ;;  %v2494_v14 = vld [vmem:[#allocation2 + $0xb2] sm:$0xff]  ;;  %v2496_v4 = vld [vmem:[#allocation2 + $0xca] sm:$0xff] }
 0x2fa   : > { %v8297_v63 = vpack.c.bf16 %v2542_v52, %v2541_v9  ;;  %v2543_v62 = vld [vmem:[#allocation2 + $0xd8] sm:$0xff]  ;;  %v8301_v57 = vpack.c.bf16 %v2494_v14, %v2493_v30  ;;  %v2544_v44 = vld [vmem:[#allocation2 + $0xe0] sm:$0xff]  ;;  %v2545_v46 = vld [vmem:[#allocation2 + $0xf0] sm:$0xff] }
 0x2fb   : > { %6048 = vmatpush3.bf16.msra.mxu1 %v6627_v0  ;;  %v8304_v41 = vpack.c.bf16 %v2544_v44, %v2543_v62  ;;  %v2495_v17 = vld [vmem:[#allocation2 + $0xc2] sm:$0xff]  ;;  %v2546_v51 = vld [vmem:[#allocation2 + $0xf8] sm:$0xff]  ;;  %v2553_v42 = vld [vmem:[#allocation2 + $0x150] sm:$0xff] }
 0x2fc   : > { %6049 = vmatprep.subr.bf16.mxu1 %v6629_v16  ;;  %6160 = vmatpush3.bf16.msra.mxu0 %v6640_v58  ;;  %v8309_v31 = vpack.c.bf16 %v2496_v4, %v2495_v17  ;;  %v8312_v0 = vpack.c.bf16 %v2546_v51, %v2545_v46  ;;  %v2547_v54 = vld [vmem:[#allocation2 + $0x108] sm:$0xff]  ;;  %v2497_v16 = vld [vmem:[#allocation2 + $0xda] sm:$0xff]  ;;  %v2462_v3 = vld [vmem:[#allocation2 + $0x171] sm:$0xff] }
 0x2fd   : > { %3449 = vmatmul.mubr.bf16.gmra.mrb[140].mxu1 %v8175_v1  ;;  %6161 = vmatprep.subr.bf16.mxu0 %v6641_v50  ;;  %v2548_v50 = vld [vmem:[#allocation2 + $0x110] sm:$0xff]  ;;  %v2550_v34 = vld [vmem:[#allocation2 + $0x128] sm:$0xff]  ;;  %v2554_v21 = vld [vmem:[#allocation2 + $0x158] sm:$0xff] }
 0x2fe   : > { %3456 = vmatprep.mubr.bf16.mxu1 %v2467_v61  ;;  %3610 = vmatmul.mubr.bf16.gmra.mrb[172].mxu0 %v2514_v5  ;;  %v8320_v15 = vpack.c.bf16 %v2548_v50, %v2547_v54  ;;  %v2499_v61 = vld [vmem:[#allocation2 + $0xf2] sm:$0xff]  ;;  %v2503_v11 = vld [vmem:[#allocation2 + $0x122] sm:$0xff]  ;;  %v8344_v43 = vpack.c.bf16 %v2554_v21, %v2553_v42  ;;  %v2505_v36 = vld [vmem:[#allocation2 + $0x13a] sm:$0xff] }
 0x2ff   : > { %3617 = vmatprep.mubr.bf16.mxu0 %v8250_v26  ;;  %6050 = vmatpush3.bf16.msra.mxu1 %v6631_v12  ;;  %v2549_v12 = vld [vmem:[#allocation2 + $0x120] sm:$0xff]  ;;  %v2555_v45 = vld [vmem:[#allocation2 + $0x168] sm:$0xff]  ;;  %v2720_v44 = vld [vmem:[#allocation2 + $0x31] sm:$0xff] }
 0x300   : > { %6051 = vmatprep.subr.bf16.mxu1 %v6635_v53  ;;  %6162 = vmatpush3.bf16.msra.mxu0 %v6642_v33  ;;  %v8328_v53 = vpack.c.bf16 %v2550_v34, %v2549_v12  ;;  %v2551_v33 = vld [vmem:[#allocation2 + $0x138] sm:$0xff]  ;;  %v2557_v24 = vld [vmem:[#allocation2 + $0x180] sm:$0xff]  ;;  %v2558_v62 = vld [vmem:[#allocation2 + $0x188] sm:$0xff] }
 0x301   : > { %6163 = vmatprep.subr.bf16.mxu0 %v6643_v29  ;;  %v2501_v29 = vld [vmem:[#allocation2 + $0x10a] sm:$0xff]  ;;  %v2508_v9 = vld [vmem:[#allocation2 + $0x15a] sm:$0xff]  ;;  %v8362_v30 = vpack.c.bf16 %v2558_v62, %v2557_v24 }
 0x302   : > { %v2721_v4 = vld [vmem:[#allocation2 + $0x39] sm:$0xff]  ;;  %v2509_v46 = vld [vmem:[#allocation2 + $0x16a] sm:$0xff]  ;;  %v2576_v54 = vld [vmem:[#allocation2 + $0x21] sm:$0xff] }
 0x303   : > { %6052 = vmatpush3.bf16.msra.mxu1 %v6636_v23  ;;  %v2752_v51 = vpack.c.bf16 %v2721_v4, %v2720_v44  ;;  %v2723_v50 = vld [vmem:[#allocation2 + $0x51] sm:$0xff]  ;;  %v6646_v12 = vld [vmem:[%s9301_s2 + $0x208] sm:$0xff]   ;;  %v2729_v21 = vld [vmem:[#allocation2 + $0x99] sm:$0xff] }
 0x304   : > { %6164 = vmatpush3.bf16.msra.mxu0 %v6644_v48  ;;  %6352 = vmatprep.subr.bf16.mxu1 %v8265_v39  ;;  %v2552_v48 = vld [vmem:[#allocation2 + $0x140] sm:$0xff] }
 0x305   : > { %3457 = vmatmul.mubr.bf16.gmra.mrb[144].mxu1 %v8211_v37  ;;  %v8336_v32 = vpack.c.bf16 %v2552_v48, %v2551_v33  ;;  %v2724_v34 = vld [vmem:[#allocation2 + $0x61] sm:$0xff]  ;;  %v2627_v33 = vld [vmem:[#allocation2 + $0x4a] sm:$0xff]  ;;  %v2726_v48 = vld [vmem:[#allocation2 + $0x79] sm:$0xff] }
 0x306   : > { %3464 = vmatprep.mubr.bf16.mxu1 %v2468_v8  ;;  %3618 = vmatmul.mubr.bf16.gmra.mrb[176].mxu0 %v8271_v28 }
 0x307   : > { %3625 = vmatprep.mubr.bf16.mxu0 %v8275_v27 }
 0x30d   : > { %3465 = vmatmul.mubr.bf16.gmra.mrb[148].mxu1 %v8250_v26 }
 0x30e   : > { %3472 = vmatprep.mubr.bf16.mxu1 %v2469_v19  ;;  %3626 = vmatmul.mubr.bf16.gmra.mrb[180].mxu0 %v8283_v7  ;;  %v2556_v19 = vld [vmem:[#allocation2 + $0x170] sm:$0xff] }
 0x30f   : > { %3633 = vmatprep.mubr.bf16.mxu0 %v8286_v20  ;;  %v8352_v18 = vpack.c.bf16 %v2556_v19, %v2555_v45  ;;  %v2732_v19 = vld [vmem:[#allocation2 + $0xc1] sm:$0xff] }
 0x315   : > { %3473 = vmatmul.mubr.bf16.gmra.mrb[152].mxu1 %v8275_v27 }
 0x316   : > { %3480 = vmatprep.mubr.bf16.mxu1 %v2470_v22  ;;  %3634 = vmatmul.mubr.bf16.gmra.mrb[184].mxu0 %v8294_v56  ;;  %v2507_v22 = vld [vmem:[#allocation2 + $0x152] sm:$0xff] }
 0x317   : > { %3641 = vmatprep.mubr.bf16.mxu0 %v8297_v63  ;;  %v8359_v14 = vpack.c.bf16 %v2508_v9, %v2507_v22 }
 0x31d   : > { %3481 = vmatmul.mubr.bf16.gmra.mrb[156].mxu1 %v8286_v20 }
 0x31e   : > { %3488 = vmatprep.mubr.bf16.mxu1 %v8118_v49  ;;  %3642 = vmatmul.mubr.bf16.gmra.mrb[188].mxu0 %v8301_v57  ;;  %v2498_v49 = vld [vmem:[#allocation2 + $0xe2] sm:$0xff] }
 0x31f   : > { %3649 = vmatprep.mubr.bf16.mxu0 %v8304_v41  ;;  %v8317_v58 = vpack.c.bf16 %v2498_v49, %v2497_v16  ;;  %v2575_v49 = vld [vmem:[#allocation2 + $0x19] sm:$0xff]  ;;  %v2722_v16 = vld [vmem:[#allocation2 + $0x49] sm:$0xff] }
 0x325   : > { %3489 = vmatmul.mubr.bf16.gmra.mrb[160].mxu1 %v8297_v63 }
 0x326   : > { %3496 = vmatprep.mubr.bf16.mxu1 %v8121_v35  ;;  %3650 = vmatmul.mubr.bf16.gmra.mrb[192].mxu0 %v8309_v31  ;;  %v2500_v35 = vld [vmem:[#allocation2 + $0xfa] sm:$0xff] }
 0x327   : > { %3657 = vmatprep.mubr.bf16.mxu0 %v8312_v0  ;;  %v8325_v5 = vpack.c.bf16 %v2500_v35, %v2499_v61  ;;  %v2607_v35 = vpack.c.bf16 %v2576_v54, %v2575_v49  ;;  %v2753_v61 = vpack.c.bf16 %v2723_v50, %v2722_v16  ;;  %v2744_v49 = vld [vmem:[#allocation2 + $0x151] sm:$0xff] }
 0x32d   : > { %3497 = vmatmul.mubr.bf16.gmra.mrb[164].mxu1 %v8304_v41 }
 0x32e   : > { %3504 = vmatprep.mubr.bf16.mxu1 %v8123_v59  ;;  %3658 = vmatmul.mubr.bf16.gmra.mrb[196].mxu0 %v8317_v58  ;;  %v2502_v59 = vld [vmem:[#allocation2 + $0x112] sm:$0xff] }
 0x32f   : > { %3665 = vmatprep.mubr.bf16.mxu0 %v8320_v15  ;;  %v8333_v23 = vpack.c.bf16 %v2502_v59, %v2501_v29  ;;  %v2725_v59 = vld [vmem:[#allocation2 + $0x69] sm:$0xff]  ;;  %v2657_v29 = vpack.c.bf16 %v8227_v25, %v2627_v33 }
 0x330   : > { %v6650_v25 = vld [vmem:[%s9301_s2 + $0x228] sm:$0xff]  }
 0x335   : > { %3505 = vmatmul.mubr.bf16.gmra.mrb[168].mxu1 %v8312_v0 }
 0x336   : > { %3512 = vmatprep.mubr.bf16.mxu1 %v8125_v38  ;;  %3666 = vmatmul.mubr.bf16.gmra.mrb[200].mxu0 %v8325_v5  ;;  %v2504_v38 = vld [vmem:[#allocation2 + $0x12a] sm:$0xff] }
 0x337   : > { %3673 = vmatprep.mubr.bf16.mxu0 %v8328_v53  ;;  %v8341_v8 = vpack.c.bf16 %v2504_v38, %v2503_v11  ;;  %v2727_v38 = vld [vmem:[#allocation2 + $0x81] sm:$0xff]  ;;  %v2728_v11 = vld [vmem:[#allocation2 + $0x91] sm:$0xff] }
 0x338   : > { %v2755_v42 = vpack.c.bf16 %v2727_v38, %v2726_v48  ;;  %v2756_v45 = vpack.c.bf16 %v2729_v21, %v2728_v11 }
 0x33d   : > { %3513 = vmatmul.mubr.bf16.gmra.mrb[172].mxu1 %v8320_v15 }
 0x33e   : > { %3520 = vmatprep.mubr.bf16.mxu1 %v8127_v6  ;;  %3674 = vmatmul.mubr.bf16.gmra.mrb[204].mxu0 %v8333_v23  ;;  %v2506_v6 = vld [vmem:[#allocation2 + $0x142] sm:$0xff] }
 0x33f   : > { %3681 = vmatprep.mubr.bf16.mxu0 %v8336_v32  ;;  %v8349_v47 = vpack.c.bf16 %v2506_v6, %v2505_v36  ;;  %v6652_v6 = vld [vmem:[%s9301_s2 + $0x238] sm:$0xff]  }
 0x345   : > { %3521 = vmatmul.mubr.bf16.gmra.mrb[176].mxu1 %v8328_v53 }
 0x346   : > { %3528 = vmatprep.mubr.bf16.mxu1 %v8129_v40  ;;  %3682 = vmatmul.mubr.bf16.gmra.mrb[208].mxu0 %v8341_v8  ;;  %v2461_v40 = vld [vmem:[#allocation2 + $0x169] sm:$0xff] }
 0x347   : > { %3689 = vmatprep.mubr.bf16.mxu0 %v8344_v43  ;;  %v8357_v52 = vpack.c.bf16 %v2462_v3, %v2461_v40  ;;  %v2733_v40 = vld [vmem:[#allocation2 + $0xc9] sm:$0xff] }
 0x348   : > { %v2758_v3 = vpack.c.bf16 %v2733_v40, %v2732_v19 }
 0x34d   : > { %3529 = vmatmul.mubr.bf16.gmra.mrb[180].mxu1 %v8336_v32 }
 0x34e   : > { %3536 = vmatprep.mubr.bf16.mxu1 %v8131_v13  ;;  %3690 = vmatmul.mubr.bf16.gmra.mrb[212].mxu0 %v8349_v47  ;;  %v2510_v13 = vld [vmem:[#allocation2 + $0x172] sm:$0xff] }
 0x34f   : > { %3697 = vmatprep.mubr.bf16.mxu0 %v8352_v18  ;;  %v8367_v17 = vpack.c.bf16 %v2510_v13, %v2509_v46 }
 0x355   : > { %3537 = vmatmul.mubr.bf16.gmra.mrb[184].mxu1 %v8344_v43 }
 0x356   : > { %3544 = vmatprep.mubr.bf16.mxu1 %v8357_v52  ;;  %3698 = vmatmul.mubr.bf16.gmra.mrb[216].mxu0 %v8359_v14 }
 0x357   : > { %3705 = vmatprep.mubr.bf16.mxu0 %v8362_v30 }
 0x35d   : > { %3545 = vmatmul.mubr.bf16.gmra.mrb[188].mxu1 %v8352_v18 }
 0x35e   : > { %3706 = vmatmul.mubr.bf16.gmra.mrb[220].mxu0 %v8367_v17  ;;  %3746 = vmatprep.mubr.bf16.mxu1 %v8170_v55  ;;  %v6647_v55 = vld [vmem:[%s9301_s2 + $0x210] sm:$0xff]  }
 0x35f   : > { %3907 = vmatprep.mubr.bf16.mxu0 %v2752_v51 }
 0x365   : > { %3747 = vmatmul.mubr.bf16.vlgmr.msra.gmra.mrb[192].mxu1 %v2607_v35 }
 0x366   : > { %3754 = vmatprep.mubr.bf16.mxu1 %v8205_v2  ;;  %3908 = vmatmul.mubr.bf16.vlgmr.msra.gmra.mrb[224].mxu0 %v8146_v60  ;;  %v6648_v2 = vld [vmem:[%s9301_s2 + $0x218] sm:$0xff]   ;;  %v2754_v60 = vpack.c.bf16 %v2725_v59, %v2724_v34 }
 0x367   : > { %6353 = vmatpush3.bf16.msra.mxu1 %v8265_v39  ;;  %3915 = vmatprep.mubr.bf16.mxu0 %v2753_v61  ;;  %v6649_v39 = vld [vmem:[%s9301_s2 + $0x220] sm:$0xff]  }
 0x368   : > { %6354 = vmatprep.subr.bf16.mxu1 %v6646_v12 }
 0x36b   : > { %6355 = vmatpush3.bf16.msra.mxu1 %v6646_v12 }
 0x36c   : > { %6356 = vmatprep.subr.bf16.mxu1 %v6647_v55 }
 0x36d   : > { %3755 = vmatmul.mubr.bf16.gmra.mrb[196].mxu1 %v2752_v51 }
 0x36e   : > { %3762 = vmatprep.mubr.bf16.mxu1 %v2657_v29  ;;  %3916 = vmatmul.mubr.bf16.gmra.mrb[228].mxu0 %v8175_v1  ;;  %v6651_v1 = vld [vmem:[%s9301_s2 + $0x230] sm:$0xff]  }
 0x36f   : > { %3923 = vmatprep.mubr.bf16.mxu0 %v2754_v60  ;;  %6357 = vmatpush3.bf16.msra.mxu1 %v6647_v55 }
 0x370   : > { %6358 = vmatprep.subr.bf16.mxu1 %v6648_v2 }
 0x373   : > { %6359 = vmatpush3.bf16.msra.mxu1 %v6648_v2 }
 0x374   : > { %6360 = vmatprep.subr.bf16.mxu1 %v6649_v39 }
 0x375   : > { %3763 = vmatmul.mubr.bf16.gmra.mrb[200].mxu1 %v2753_v61 }
 0x376   : > { %3770 = vmatprep.mubr.bf16.mxu1 %v8271_v28  ;;  %3924 = vmatmul.mubr.bf16.gmra.mrb[232].mxu0 %v8211_v37  ;;  %v2730_v37 = vld [vmem:[#allocation2 + $0xa9] sm:$0xff]  ;;  %v2731_v28 = vld [vmem:[#allocation2 + $0xb1] sm:$0xff] }
 0x377   : > { %3931 = vmatprep.mubr.bf16.mxu0 %v2755_v42  ;;  %6361 = vmatpush3.bf16.msra.mxu1 %v6649_v39  ;;  %v2757_v36 = vpack.c.bf16 %v2731_v28, %v2730_v37  ;;  %v2748_v28 = vld [vmem:[#allocation2 + $0x181] sm:$0xff] }
 0x378   : > { %6362 = vmatprep.subr.bf16.mxu1 %v6650_v25 }
 0x37b   : > { %6363 = vmatpush3.bf16.msra.mxu1 %v6650_v25 }
 0x37c   : > { %6364 = vmatprep.subr.bf16.mxu1 %v6651_v1 }
 0x37d   : > { %3771 = vmatmul.mubr.bf16.gmra.mrb[204].mxu1 %v2754_v60 }
 0x37e   : > { %3778 = vmatprep.mubr.bf16.mxu1 %v8283_v7  ;;  %3932 = vmatmul.mubr.bf16.gmra.mrb[236].mxu0 %v8250_v26  ;;  %v2734_v26 = vld [vmem:[#allocation2 + $0xd9] sm:$0xff]  ;;  %v2735_v7 = vld [vmem:[#allocation2 + $0xe1] sm:$0xff] }
 0x37f   : > { %3939 = vmatprep.mubr.bf16.mxu0 %v2756_v45  ;;  %6365 = vmatpush3.bf16.msra.mxu1 %v6651_v1  ;;  %v2759_v9 = vpack.c.bf16 %v2735_v7, %v2734_v26 }
 0x380   : > { %6366 = vmatprep.subr.bf16.mxu1 %v6652_v6 }
 0x383   : > { %6367 = vmatpush3.bf16.msra.mxu1 %v6652_v6 }
 0x385   : > { %3779 = vmatmul.mubr.bf16.gmra.mrb[208].mxu1 %v2755_v42 }
 0x386   : > { %3786 = vmatprep.mubr.bf16.mxu1 %v8294_v56  ;;  %3940 = vmatmul.mubr.bf16.gmra.mrb[240].mxu0 %v8275_v27  ;;  %v2736_v27 = vld [vmem:[#allocation2 + $0xf1] sm:$0xff]  ;;  %v2737_v56 = vld [vmem:[#allocation2 + $0xf9] sm:$0xff] }
 0x387   : > { %3947 = vmatprep.mubr.bf16.mxu0 %v2757_v36  ;;  %v2760_v24 = vpack.c.bf16 %v2737_v56, %v2736_v27 }
 0x38d   : > { %3787 = vmatmul.mubr.bf16.gmra.mrb[212].mxu1 %v2756_v45 }
 0x38e   : > { %3794 = vmatprep.mubr.bf16.mxu1 %v8301_v57  ;;  %3948 = vmatmul.mubr.bf16.gmra.mrb[244].mxu0 %v8286_v20  ;;  %v2738_v20 = vld [vmem:[#allocation2 + $0x109] sm:$0xff]  ;;  %v2739_v57 = vld [vmem:[#allocation2 + $0x111] sm:$0xff] }
 0x38f   : > { %3955 = vmatprep.mubr.bf16.mxu0 %v2758_v3  ;;  %v2761_v22 = vpack.c.bf16 %v2739_v57, %v2738_v20  ;;  %v2654_v57 = vld [vmem:[#allocation2 + $0x18a] sm:$0xff] }
 0x395   : > { %3795 = vmatmul.mubr.bf16.gmra.mrb[216].mxu1 %v2757_v36  ;;  %v2749_v36 = vld [vmem:[#allocation2 + $0x189] sm:$0xff] }
 0x396   : > { %3802 = vmatprep.mubr.bf16.mxu1 %v8309_v31  ;;  %3956 = vmatmul.mubr.bf16.gmra.mrb[248].mxu0 %v8297_v63  ;;  %v2740_v63 = vld [vmem:[#allocation2 + $0x121] sm:$0xff]  ;;  %v2741_v31 = vld [vmem:[#allocation2 + $0x129] sm:$0xff] }
 0x397   : > { %3963 = vmatprep.mubr.bf16.mxu0 %v2759_v9  ;;  %v2762_v62 = vpack.c.bf16 %v2741_v31, %v2740_v63 }
 0x39d   : > { %3803 = vmatmul.mubr.bf16.gmra.mrb[220].mxu1 %v2758_v3 }
 0x39e   : > { %3810 = vmatprep.mubr.bf16.mxu1 %v8317_v58  ;;  %3964 = vmatmul.mubr.bf16.gmra.mrb[252].mxu0 %v8304_v41  ;;  %v2742_v41 = vld [vmem:[#allocation2 + $0x139] sm:$0xff]  ;;  %v2743_v58 = vld [vmem:[#allocation2 + $0x141] sm:$0xff] }
 0x39f   : > { %3971 = vmatprep.mubr.bf16.mxu0 %v2760_v24  ;;  %v2763_v13 = vpack.c.bf16 %v2743_v58, %v2742_v41  ;;  %v2751_v41 = vld [vmem:[#allocation2 + $0x1a1] sm:$0xff] }
 0x3a5   : > { %3811 = vmatmul.mubr.bf16.gmra.mrb[224].mxu1 %v2759_v9  ;;  %v2766_v9 = vpack.c.bf16 %v2749_v36, %v2748_v28 }
 0x3a6   : > { %3818 = vmatprep.mubr.bf16.mxu1 %v8325_v5  ;;  %3972 = vmatmul.mubr.bf16.gmra.mrb[0].mxu0 %v8312_v0 }
 0x3a7   : > { %3979 = vmatprep.mubr.bf16.mxu0 %v2761_v22 }
 0x3ad   : > { %3819 = vmatmul.mubr.bf16.gmra.mrb[228].mxu1 %v2760_v24 }
 0x3ae   : > { %3826 = vmatprep.mubr.bf16.mxu1 %v8333_v23  ;;  %3980 = vmatmul.mubr.bf16.gmra.mrb[4].mxu0 %v8320_v15  ;;  %v2745_v23 = vld [vmem:[#allocation2 + $0x159] sm:$0xff] }
 0x3af   : > { %3987 = vmatprep.mubr.bf16.mxu0 %v2762_v62 }
 0x3b5   : > { %3827 = vmatmul.mubr.bf16.gmra.mrb[232].mxu1 %v2761_v22 }
 0x3b6   : > { %3834 = vmatprep.mubr.bf16.mxu1 %v8341_v8  ;;  %3988 = vmatmul.mubr.bf16.gmra.mrb[8].mxu0 %v8328_v53  ;;  %v2764_v8 = vpack.c.bf16 %v2745_v23, %v2744_v49 }
 0x3b7   : > { %3995 = vmatprep.mubr.bf16.mxu0 %v2763_v13 }
 0x3b8   : > { %v5829_v0 = vpop.f32.mrb[128].mxu1 }
 0x3b9   : > { %v5830_v5 = vpop.f32.mrb[129].mxu1  ;;  %v5941_v44 = vpop.f32.mrb[160].mxu0 }
 0x3ba   : > { %v5831_v4 = vadd.f32 %v5830_v5, %v5829_v0  ;;  %v5832_v46 = vpop.f32.mrb[130].mxu1  ;;  %v5942_v51 = vpop.f32.mrb[161].mxu0  ;;  %v2653_v5 = vld [vmem:[#allocation2 + $0x182] sm:$0xff] }
 0x3bb   : > { %v5943_v54 = vadd.f32 %v5942_v51, %v5941_v44  ;;  %v5833_v15 = vpop.f32.mrb[131].mxu1  ;;  %v5944_v16 = vpop.f32.mrb[162].mxu0 }
 0x3bc   : > { %v5834_v50 = vadd.f32 %v5833_v15, %v5832_v46  ;;  %v5945_v35 = vpop.f32.mrb[163].mxu0 }
 0x3bd   : > { %v8416_v12 = vadd.f32 %v5943_v54, %v5831_v4  ;;  %v5946_v61 = vadd.f32 %v5945_v35, %v5944_v16  ;;  %3835 = vmatmul.mubr.bf16.gmra.mrb[236].mxu1 %v2762_v62  ;;  %v2750_v62 = vld [vmem:[#allocation2 + $0x199] sm:$0xff]  ;;  %v8435_v4 = vpack.c.bf16 %v2654_v57, %v2653_v5  ;;  %v2775_v57 = vld [vmem:[#allocation2 + $0x82] sm:$0xff] }
 0x3be   : > { %3842 = vmatprep.mubr.bf16.mxu1 %v8349_v47  ;;  %3996 = vmatmul.mubr.bf16.gmra.mrb[12].mxu0 %v8336_v32  ;;  %v2767_v51 = vpack.c.bf16 %v2751_v41, %v2750_v62  ;;  %v2702_v16 = vld [vmem:[#allocation2 + $0x198] sm:$0xff] }
 0x3bf   : > { %v8420_v53 = vadd.f32 %v5946_v61, %v5834_v50  ;;  %4003 = vmatprep.mubr.bf16.mxu0 %v2764_v8  ;;  %v2769_v50 = vld [vmem:[#allocation2 + $0x3a] sm:$0xff] }
 0x3c0   : > { %v5835_v55 = vpop.f32.mrb[132].mxu1 }
 0x3c1   : > { %v5836_v34 = vpop.f32.mrb[133].mxu1  ;;  %v5947_v59 = vpop.f32.mrb[164].mxu0 }
 0x3c2   : > { %v5837_v33 = vadd.f32 %v5836_v34, %v5835_v55  ;;  %v5838_v29 = vpop.f32.mrb[134].mxu1  ;;  %v5948_v2 = vpop.f32.mrb[165].mxu0 }
 0x3c3   : > { %v5949_v60 = vadd.f32 %v5948_v2, %v5947_v59  ;;  %v5839_v39 = vpop.f32.mrb[135].mxu1  ;;  %v5950_v48 = vpop.f32.mrb[166].mxu0 }
 0x3c4   : > { %v5840_v38 = vadd.f32 %v5839_v39, %v5838_v29  ;;  %v5951_v25 = vpop.f32.mrb[167].mxu0 }
 0x3c5   : > { %v8422_v42 = vadd.f32 %v5949_v60, %v5837_v33  ;;  %v5952_v1 = vadd.f32 %v5951_v25, %v5950_v48  ;;  %3843 = vmatmul.mubr.bf16.gmra.mrb[240].mxu1 %v2763_v13  ;;  %v2768_v33 = vld [vmem:[#allocation2 + $0x32] sm:$0xff] }
 0x3c6   : > { %3850 = vmatprep.mubr.bf16.mxu1 %v8359_v14  ;;  %4004 = vmatmul.mubr.bf16.gmra.mrb[16].mxu0 %v8344_v43 }
 0x3c7   : > { %v8426_v32 = vadd.f32 %v5952_v1, %v5840_v38  ;;  %4011 = vmatprep.mubr.bf16.mxu0 %v8357_v52  ;;  %v2771_v1 = vld [vmem:[#allocation2 + $0x52] sm:$0xff] }
 0x3c8   : > { %v5841_v47 = vpop.f32.mrb[136].mxu1 }
 0x3c9   : > { %v5842_v11 = vpop.f32.mrb[137].mxu1  ;;  %v5953_v21 = vpop.f32.mrb[168].mxu0 }
 0x3ca   : > { %v5843_v6 = vadd.f32 %v5842_v11, %v5841_v47  ;;  %v5844_v45 = vpop.f32.mrb[138].mxu1  ;;  %v5954_v37 = vpop.f32.mrb[169].mxu0 }
 0x3cb   : > { %v5955_v19 = vadd.f32 %v5954_v37, %v5953_v21  ;;  %v5845_v40 = vpop.f32.mrb[139].mxu1  ;;  %v5956_v3 = vpop.f32.mrb[170].mxu0  ;;  %v2773_v21 = vld [vmem:[#allocation2 + $0x6a] sm:$0xff] }
 0x3cc   : > { %v5846_v26 = vadd.f32 %v5845_v40, %v5844_v45  ;;  %v5957_v7 = vpop.f32.mrb[171].mxu0  ;;  %v2801_v40 = vpack.c.bf16 %v2771_v1, %v8232_v10  ;;  %v2774_v10 = vld [vmem:[#allocation2 + $0x7a] sm:$0xff] }
 0x3cd   : > { %v8429_v14 = vadd.f32 %v5955_v19, %v5843_v6  ;;  %v5958_v43 = vadd.f32 %v5957_v7, %v5956_v3  ;;  %3851 = vmatmul.mubr.bf16.gmra.mrb[244].mxu1 %v2764_v8  ;;  %v2772_v3 = vld [vmem:[#allocation2 + $0x62] sm:$0xff] }
 0x3ce   : > { %3858 = vmatprep.mubr.bf16.mxu1 %v8367_v17  ;;  %4012 = vmatmul.mubr.bf16.gmra.mrb[20].mxu0 %v8352_v18 }
 0x3cf   : > { %v8433_v27 = vadd.f32 %v5958_v43, %v5846_v26  ;;  %4019 = vmatprep.mubr.bf16.mxu0 %v2766_v9  ;;  %v2802_v43 = vpack.c.bf16 %v2773_v21, %v2772_v3 }
 0x3d0   : > { %v5847_v56 = vpop.f32.mrb[140].mxu1 }
 0x3d1   : > { %v5848_v24 = vpop.f32.mrb[141].mxu1  ;;  %v5959_v20 = vpop.f32.mrb[172].mxu0 }
 0x3d2   : > { %v5849_v22 = vadd.f32 %v5848_v24, %v5847_v56  ;;  %v5850_v63 = vpop.f32.mrb[142].mxu1  ;;  %v5960_v31 = vpop.f32.mrb[173].mxu0 }
 0x3d3   : > { %v5961_v58 = vadd.f32 %v5960_v31, %v5959_v20  ;;  %v5851_v13 = vpop.f32.mrb[143].mxu1  ;;  %v5962_v0 = vpop.f32.mrb[174].mxu0  ;;  %v2777_v31 = vld [vmem:[#allocation2 + $0x9a] sm:$0xff] }
 0x3d4   : > { %v5852_v44 = vadd.f32 %v5851_v13, %v5850_v63  ;;  %v5963_v17 = vpop.f32.mrb[175].mxu0 }
 0x3d5   : > { %v8437_v18 = vadd.f32 %v5961_v58, %v5849_v22  ;;  %v5964_v46 = vadd.f32 %v5963_v17, %v5962_v0  ;;  %3859 = vmatmul.mubr.bf16.gmra.mrb[248].mxu1 %v8357_v52  ;;  %v2703_v52 = vld [vmem:[#allocation2 + $0x1a0] sm:$0xff]  ;;  %v2776_v17 = vld [vmem:[#allocation2 + $0x92] sm:$0xff] }
 0x3d6   : > { %3866 = vmatprep.mubr.bf16.mxu1 %v8435_v4  ;;  %4020 = vmatmul.mubr.bf16.gmra.mrb[24].mxu0 %v8362_v30  ;;  %v2719_v60 = vpack.c.bf16 %v2703_v52, %v2702_v16  ;;  %v2800_v30 = vpack.c.bf16 %v2769_v50, %v2768_v33  ;;  %v2778_v33 = vld [vmem:[#allocation2 + $0xaa] sm:$0xff] }
 0x3d7   : > { %v8442_v49 = vadd.f32 %v5964_v46, %v5852_v44  ;;  %4027 = vmatprep.mubr.bf16.mxu0 %v2767_v51  ;;  %v2803_v44 = vpack.c.bf16 %v2775_v57, %v2774_v10 }
 0x3d8   : > { %v5853_v23 = vpop.f32.mrb[144].mxu1 }
 0x3d9   : > { %v5854_v54 = vpop.f32.mrb[145].mxu1  ;;  %v5965_v15 = vpop.f32.mrb[176].mxu0 }
 0x3da   : > { %v5855_v35 = vadd.f32 %v5854_v54, %v5853_v23  ;;  %v5856_v61 = vpop.f32.mrb[146].mxu1  ;;  %v5966_v8 = vpop.f32.mrb[177].mxu0  ;;  %v2804_v23 = vpack.c.bf16 %v2777_v31, %v2776_v17  ;;  %v2789_v17 = vld [vmem:[#allocation2 + $0x12a] sm:$0xff] }
 0x3db   : > { %v5967_v55 = vadd.f32 %v5966_v8, %v5965_v15  ;;  %v5857_v34 = vpop.f32.mrb[147].mxu1  ;;  %v5968_v59 = vpop.f32.mrb[178].mxu0 }
 0x3dc   : > { %v5858_v29 = vadd.f32 %v5857_v34, %v5856_v61  ;;  %v5969_v2 = vpop.f32.mrb[179].mxu0 }
 0x3dd   : > { %v8444_v39 = vadd.f32 %v5967_v55, %v5855_v35  ;;  %v5970_v48 = vadd.f32 %v5969_v2, %v5968_v59  ;;  %3867 = vmatmul.mubr.bf16.gmra.mrb[252].mxu1 %v2766_v9  ;;  %v2779_v35 = vld [vmem:[#allocation2 + $0xb2] sm:$0xff]  ;;  %v2781_v55 = vld [vmem:[#allocation2 + $0xca] sm:$0xff] }
 0x3de   : > { %4028 = vmatmul.mubr.bf16.gmra.mrb[28].mxu0 %v2719_v60  ;;  %6368 = vmatprep.mubr.bf16.mxu1 %v2800_v30  ;;  %v2805_v30 = vpack.c.bf16 %v2779_v35, %v2778_v33 }
 0x3df   : > { %v8446_v38 = vadd.f32 %v5970_v48, %v5858_v29  ;;  %v2780_v48 = vld [vmem:[#allocation2 + $0xc2] sm:$0xff] }
 0x3e0   : > { %v5859_v25 = vpop.f32.mrb[148].mxu1 }
 0x3e1   : > { %v5860_v47 = vpop.f32.mrb[149].mxu1  ;;  %v5971_v11 = vpop.f32.mrb[180].mxu0 }
 0x3e2   : > { %v5861_v6 = vadd.f32 %v5860_v47, %v5859_v25  ;;  %v5862_v45 = vpop.f32.mrb[150].mxu1  ;;  %v5972_v37 = vpop.f32.mrb[181].mxu0  ;;  %v2806_v47 = vpack.c.bf16 %v2781_v55, %v2780_v48  ;;  %v2788_v55 = vld [vmem:[#allocation2 + $0x122] sm:$0xff] }
 0x3e3   : > { %v5973_v28 = vadd.f32 %v5972_v37, %v5971_v11  ;;  %v5863_v36 = vpop.f32.mrb[151].mxu1  ;;  %v5974_v19 = vpop.f32.mrb[182].mxu0  ;;  %v2783_v37 = vld [vmem:[#allocation2 + $0xe2] sm:$0xff] }
 0x3e4   : > { %v5864_v26 = vadd.f32 %v5863_v36, %v5862_v45  ;;  %v5975_v7 = vpop.f32.mrb[183].mxu0 }
 0x3e5   : > { %v8449_v9 = vadd.f32 %v5973_v28, %v5861_v6  ;;  %v5976_v56 = vadd.f32 %v5975_v7, %v5974_v19  ;;  %6369 = vmatmul.mubr.bf16.vlgmr.msra.gmra.mrb[0].mxu1 %v2801_v40  ;;  %v2785_v19 = vld [vmem:[#allocation2 + $0xfa] sm:$0xff] }
 0x3e6   : > { %6372 = vmatprep.mubr.bf16.mxu1 %v2802_v43  ;;  %v2782_v7 = vld [vmem:[#allocation2 + $0xda] sm:$0xff] }
 0x3e7   : > { %v8451_v24 = vadd.f32 %v5976_v56, %v5864_v26  ;;  %v2807_v57 = vpack.c.bf16 %v2783_v37, %v2782_v7  ;;  %v2790_v37 = vld [vmem:[#allocation2 + $0x13a] sm:$0xff] }
 0x3e8   : > { %v5865_v20 = vpop.f32.mrb[152].mxu1 }
 0x3e9   : > { %v5866_v22 = vpop.f32.mrb[153].mxu1  ;;  %v5977_v63 = vpop.f32.mrb[184].mxu0 }
 0x3ea   : > { %v5867_v62 = vadd.f32 %v5866_v22, %v5865_v20  ;;  %v5868_v41 = vpop.f32.mrb[154].mxu1  ;;  %v5978_v58 = vpop.f32.mrb[185].mxu0  ;;  %v2784_v22 = vld [vmem:[#allocation2 + $0xf2] sm:$0xff] }
 0x3eb   : > { %v5979_v13 = vadd.f32 %v5978_v58, %v5977_v63  ;;  %v5869_v0 = vpop.f32.mrb[155].mxu1  ;;  %v5980_v5 = vpop.f32.mrb[186].mxu0 }
 0x3ec   : > { %v5870_v46 = vadd.f32 %v5869_v0, %v5868_v41  ;;  %v5981_v51 = vpop.f32.mrb[187].mxu0  ;;  %v2787_v0 = vld [vmem:[#allocation2 + $0x112] sm:$0xff] }
 0x3ed   : > { %v8453_v54 = vadd.f32 %v5979_v13, %v5867_v62  ;;  %v5982_v15 = vadd.f32 %v5981_v51, %v5980_v5  ;;  %6373 = vmatmul.mubr.bf16.gmra.mrb[4].mxu1 %v2803_v44  ;;  %v2808_v62 = vpack.c.bf16 %v2785_v19, %v2784_v22 }
 0x3ee   : > { %6376 = vmatprep.mubr.bf16.mxu1 %v2804_v23 }
 0x3ef   : > { %v8455_v16 = vadd.f32 %v5982_v15, %v5870_v46  ;;  %v2786_v15 = vld [vmem:[#allocation2 + $0x10a] sm:$0xff] }
 0x3f0   : > { %v5871_v50 = vpop.f32.mrb[156].mxu1 }
 0x3f1   : > { %v5872_v61 = vpop.f32.mrb[157].mxu1  ;;  %v5983_v8 = vpop.f32.mrb[188].mxu0 }
 0x3f2   : > { %v5873_v34 = vadd.f32 %v5872_v61, %v5871_v50  ;;  %v5874_v59 = vpop.f32.mrb[158].mxu1  ;;  %v5984_v52 = vpop.f32.mrb[189].mxu0 }
 0x3f3   : > { %v5985_v29 = vadd.f32 %v5984_v52, %v5983_v8  ;;  %v5875_v2 = vpop.f32.mrb[159].mxu1  ;;  %v5986_v60 = vpop.f32.mrb[190].mxu0  ;;  %v2809_v8 = vpack.c.bf16 %v2787_v0, %v2786_v15  ;;  %v2810_v52 = vpack.c.bf16 %v2789_v17, %v2788_v55  ;;  %v2799_v55 = vld [vmem:[#allocation2 + $0x1a2] sm:$0xff] }
 0x3f4   : > { %v5876_v25 = vadd.f32 %v5875_v2, %v5874_v59  ;;  %v5987_v1 = vpop.f32.mrb[191].mxu0 }
 0x3f5   : > { %v8457_v11 = vadd.f32 %v5985_v29, %v5873_v34  ;;  %v5988_v21 = vadd.f32 %v5987_v1, %v5986_v60  ;;  %6377 = vmatmul.mubr.bf16.gmra.mrb[8].mxu1 %v2805_v30  ;;  %v2791_v30 = vld [vmem:[#allocation2 + $0x142] sm:$0xff]  ;;  %v2793_v1 = vld [vmem:[#allocation2 + $0x15a] sm:$0xff] }
 0x3f6   : > { %6380 = vmatprep.mubr.bf16.mxu1 %v2806_v47 }
 0x3f7   : > { %v8459_v6 = vadd.f32 %v5988_v21, %v5876_v25 }
 0x3f8   : > { %v5877_v45 = vpop.f32.mrb[160].mxu1 }
 0x3f9   : > { %v5878_v28 = vpop.f32.mrb[161].mxu1  ;;  %v5989_v36 = vpop.f32.mrb[192].mxu0 }
 0x3fa   : > { %v5879_v40 = vadd.f32 %v5878_v28, %v5877_v45  ;;  %v5880_v3 = vpop.f32.mrb[162].mxu1  ;;  %v5990_v26 = vpop.f32.mrb[193].mxu0 }
 0x3fb   : > { %v5991_v43 = vadd.f32 %v5990_v26, %v5989_v36  ;;  %v5881_v56 = vpop.f32.mrb[163].mxu1  ;;  %v5992_v20 = vpop.f32.mrb[194].mxu0 }
 0x3fc   : > { %v5882_v63 = vadd.f32 %v5881_v56, %v5880_v3  ;;  %v5993_v31 = vpop.f32.mrb[195].mxu0  ;;  %v2792_v3 = vld [vmem:[#allocation2 + $0x152] sm:$0xff] }
 0x3fd   : > { %v8461_v41 = vadd.f32 %v5991_v43, %v5879_v40  ;;  %v5994_v58 = vadd.f32 %v5993_v31, %v5992_v20  ;;  %6381 = vmatmul.mubr.bf16.gmra.mrb[12].mxu1 %v2807_v57  ;;  %v2811_v40 = vpack.c.bf16 %v2791_v30, %v2790_v37  ;;  %v2812_v43 = vpack.c.bf16 %v2793_v1, %v2792_v3  ;;  %v2798_v30 = vld [vmem:[#allocation2 + $0x19a] sm:$0xff] }
 0x3fe   : > { %6384 = vmatprep.mubr.bf16.mxu1 %v2808_v62 }
 0x3ff   : > { %v8463_v10 = vadd.f32 %v5994_v58, %v5882_v63  ;;  %v2795_v63 = vld [vmem:[#allocation2 + $0x172] sm:$0xff] }
 0x400   : > { %v5883_v13 = vpop.f32.mrb[164].mxu1 }
 0x401   : > { %v5884_v5 = vpop.f32.mrb[165].mxu1  ;;  %v5995_v44 = vpop.f32.mrb[196].mxu0 }
 0x402   : > { %v5885_v46 = vadd.f32 %v5884_v5, %v5883_v13  ;;  %v5886_v51 = vpop.f32.mrb[166].mxu1  ;;  %v5996_v23 = vpop.f32.mrb[197].mxu0  ;;  %v2794_v5 = vld [vmem:[#allocation2 + $0x16a] sm:$0xff] }
 0x403   : > { %v5997_v50 = vadd.f32 %v5996_v23, %v5995_v44  ;;  %v5887_v35 = vpop.f32.mrb[167].mxu1  ;;  %v5998_v61 = vpop.f32.mrb[198].mxu0 }
 0x404   : > { %v5888_v34 = vadd.f32 %v5887_v35, %v5886_v51  ;;  %v5999_v59 = vpop.f32.mrb[199].mxu0  ;;  %v2813_v51 = vpack.c.bf16 %v2795_v63, %v2794_v5 }
 0x405   : > { %v8465_v33 = vadd.f32 %v5997_v50, %v5885_v46  ;;  %v6000_v29 = vadd.f32 %v5999_v59, %v5998_v61  ;;  %6385 = vmatmul.mubr.bf16.gmra.mrb[16].mxu1 %v2809_v8 }
 0x406   : > { %6388 = vmatprep.mubr.bf16.mxu1 %v2810_v52 }
 0x407   : > { %v8467_v2 = vadd.f32 %v6000_v29, %v5888_v34 }
 0x408   : > { %v5889_v60 = vpop.f32.mrb[168].mxu1 }
 0x409   : > { %v5890_v48 = vpop.f32.mrb[169].mxu1  ;;  %v6001_v25 = vpop.f32.mrb[200].mxu0 }
 0x40a   : > { %v5891_v47 = vadd.f32 %v5890_v48, %v5889_v60  ;;  %v5892_v21 = vpop.f32.mrb[170].mxu1  ;;  %v6002_v45 = vpop.f32.mrb[201].mxu0 }
 0x40b   : > { %v6003_v28 = vadd.f32 %v6002_v45, %v6001_v25  ;;  %v5893_v36 = vpop.f32.mrb[171].mxu1  ;;  %v6004_v19 = vpop.f32.mrb[202].mxu0 }
 0x40c   : > { %v5894_v26 = vadd.f32 %v5893_v36, %v5892_v21  ;;  %v6005_v7 = vpop.f32.mrb[203].mxu0 }
 0x40d   : > { %v8469_v56 = vadd.f32 %v6003_v28, %v5891_v47  ;;  %v6006_v20 = vadd.f32 %v6005_v7, %v6004_v19  ;;  %6389 = vmatmul.mubr.bf16.gmra.mrb[20].mxu1 %v2811_v40  ;;  %v2815_v47 = vpack.c.bf16 %v2799_v55, %v2798_v30 }
 0x40e   : > { %6392 = vmatprep.mubr.bf16.mxu1 %v2812_v43 }
 0x40f   : > { %v8471_v57 = vadd.f32 %v6006_v20, %v5894_v26 }
 0x410   : > { %v5895_v22 = vpop.f32.mrb[172].mxu1 }
 0x411   : > { %v5896_v31 = vpop.f32.mrb[173].mxu1  ;;  %v6007_v62 = vpop.f32.mrb[204].mxu0 }
 0x412   : > { %v5897_v58 = vadd.f32 %v5896_v31, %v5895_v22  ;;  %v5898_v13 = vpop.f32.mrb[174].mxu1  ;;  %v6008_v0 = vpop.f32.mrb[205].mxu0 }
 0x413   : > { %v6009_v44 = vadd.f32 %v6008_v0, %v6007_v62  ;;  %v5899_v17 = vpop.f32.mrb[175].mxu1  ;;  %v6010_v46 = vpop.f32.mrb[206].mxu0 }
 0x414   : > { %v5900_v23 = vadd.f32 %v5899_v17, %v5898_v13  ;;  %v6011_v15 = vpop.f32.mrb[207].mxu0 }
 0x415   : > { %v8473_v50 = vadd.f32 %v6009_v44, %v5897_v58  ;;  %v6012_v35 = vadd.f32 %v6011_v15, %v6010_v46  ;;  %6393 = vmatmul.mubr.bf16.gmra.mrb[24].mxu1 %v2813_v51 }
 0x416   : > { %6396 = vmatprep.mubr.bf16.mxu1 %v8435_v4 }
 0x417   : > { %v8476_v61 = vadd.f32 %v6012_v35, %v5900_v23 }
 0x418   : > { %v5901_v8 = vpop.f32.mrb[176].mxu1 }
 0x419   : > { %v5902_v34 = vpop.f32.mrb[177].mxu1  ;;  %v6013_v59 = vpop.f32.mrb[208].mxu0 }
 0x41a   : > { %v5903_v52 = vadd.f32 %v5902_v34, %v5901_v8  ;;  %v5904_v29 = vpop.f32.mrb[178].mxu1  ;;  %v6014_v60 = vpop.f32.mrb[209].mxu0 }
 0x41b   : > { %v6015_v48 = vadd.f32 %v6014_v60, %v6013_v59  ;;  %v5905_v25 = vpop.f32.mrb[179].mxu1  ;;  %v6016_v1 = vpop.f32.mrb[210].mxu0 }
 0x41c   : > { %v5906_v21 = vadd.f32 %v5905_v25, %v5904_v29  ;;  %v6017_v45 = vpop.f32.mrb[211].mxu0 }
 0x41d   : > { %v8478_v37 = vadd.f32 %v6015_v48, %v5903_v52  ;;  %v6018_v28 = vadd.f32 %v6017_v45, %v6016_v1  ;;  %6397 = vmatmul.mubr.bf16.gmra.mrb[28].mxu1 %v2815_v47 }
 0x41f   : > { %v8480_v4 = vadd.f32 %v6018_v28, %v5906_v21 }
 0x420   : > { %v5907_v36 = vpop.f32.mrb[180].mxu1 }
 0x421   : > { %v5908_v19 = vpop.f32.mrb[181].mxu1  ;;  %v6019_v40 = vpop.f32.mrb[212].mxu0 }
 0x422   : > { %v5909_v3 = vadd.f32 %v5908_v19, %v5907_v36  ;;  %v5910_v26 = vpop.f32.mrb[182].mxu1  ;;  %v6020_v7 = vpop.f32.mrb[213].mxu0 }
 0x423   : > { %v6021_v43 = vadd.f32 %v6020_v7, %v6019_v40  ;;  %v5911_v20 = vpop.f32.mrb[183].mxu1  ;;  %v6022_v22 = vpop.f32.mrb[214].mxu0 }
 0x424   : > { %v5912_v63 = vadd.f32 %v5911_v20, %v5910_v26  ;;  %v6023_v31 = vpop.f32.mrb[215].mxu0 }
 0x425   : > { %v8482_v62 = vadd.f32 %v6021_v43, %v5909_v3  ;;  %v6024_v58 = vadd.f32 %v6023_v31, %v6022_v22 }
 0x427   : > { %v8484_v13 = vadd.f32 %v6024_v58, %v5912_v63 }
 0x428   : > { %v5913_v0 = vpop.f32.mrb[184].mxu1 }
 0x429   : > { %v5914_v5 = vpop.f32.mrb[185].mxu1  ;;  %v6025_v44 = vpop.f32.mrb[216].mxu0 }
 0x42a   : > { %v5915_v17 = vadd.f32 %v5914_v5, %v5913_v0  ;;  %v5916_v46 = vpop.f32.mrb[186].mxu1  ;;  %v6026_v51 = vpop.f32.mrb[217].mxu0 }
 0x42b   : > { %v6027_v23 = vadd.f32 %v6026_v51, %v6025_v44  ;;  %v5917_v15 = vpop.f32.mrb[187].mxu1  ;;  %v6028_v35 = vpop.f32.mrb[218].mxu0 }
 0x42c   : > { %v5918_v8 = vadd.f32 %v5917_v15, %v5916_v46  ;;  %v6029_v55 = vpop.f32.mrb[219].mxu0 }
 0x42d   : > { %v8486_v34 = vadd.f32 %v6027_v23, %v5915_v17  ;;  %v6030_v59 = vadd.f32 %v6029_v55, %v6028_v35 }
 0x42f   : > { %v8488_v52 = vadd.f32 %v6030_v59, %v5918_v8 }
 0x430   : > { %v5919_v29 = vpop.f32.mrb[188].mxu1 }
 0x431   : > { %v5920_v60 = vpop.f32.mrb[189].mxu1  ;;  %v6031_v30 = vpop.f32.mrb[220].mxu0 }
 0x432   : > { %v5921_v48 = vadd.f32 %v5920_v60, %v5919_v29  ;;  %v5922_v25 = vpop.f32.mrb[190].mxu1  ;;  %v6032_v1 = vpop.f32.mrb[221].mxu0 }
 0x433   : > { %v6033_v47 = vadd.f32 %v6032_v1, %v6031_v30  ;;  %v5923_v21 = vpop.f32.mrb[191].mxu1  ;;  %v6034_v45 = vpop.f32.mrb[222].mxu0 }
 0x434   : > { %v5924_v28 = vadd.f32 %v5923_v21, %v5922_v25  ;;  %v6035_v36 = vpop.f32.mrb[223].mxu0 }
 0x435   : > { %v8490_v19 = vadd.f32 %v6033_v47, %v5921_v48  ;;  %v6036_v40 = vadd.f32 %v6035_v36, %v6034_v45 }
 0x437   : > { %v8492_v3 = vadd.f32 %v6036_v40, %v5924_v28 }
 0x438   : > { %v6053_v26 = vpop.f32.mrb[192].mxu1 }
 0x439   : > { %v6054_v7 = vpop.f32.mrb[193].mxu1  ;;  %v6165_v43 = vpop.f32.mrb[224].mxu0 }
 0x43a   : > { %v6055_v20 = vadd.f32 %v6054_v7, %v6053_v26  ;;  %v6056_v22 = vpop.f32.mrb[194].mxu1  ;;  %v6166_v63 = vpop.f32.mrb[225].mxu0 }
 0x43b   : > { %v6167_v31 = vadd.f32 %v6166_v63, %v6165_v43  ;;  %v6057_v58 = vpop.f32.mrb[195].mxu1  ;;  %v6168_v0 = vpop.f32.mrb[226].mxu0 }
 0x43c   : > { %v3749_v5 = vadd.f32 %v6055_v20, %v8416_v12  ;;  %v6058_v44 = vadd.f32 %v6057_v58, %v6056_v22  ;;  %v6169_v17 = vpop.f32.mrb[227].mxu0 }
 0x43d   : > { %v6170_v46 = vadd.f32 %v6169_v17, %v6168_v0 }
 0x43e   : > { %v3752_v51 = vadd.f32 %v6058_v44, %v8420_v53  ;;  %v8496_v23 = vadd.f32 %v6167_v31, %v3749_v5 }
 0x440   : > { %v6059_v15 = vpop.f32.mrb[196].mxu1  ;;  %v8498_v35 = vadd.f32 %v6170_v46, %v3752_v51 }
 0x441   : > { %v6060_v8 = vpop.f32.mrb[197].mxu1  ;;  %v6171_v55 = vpop.f32.mrb[228].mxu0 }
 0x442   : > { %v6061_v59 = vadd.f32 %v6060_v8, %v6059_v15  ;;  %v6062_v29 = vpop.f32.mrb[198].mxu1  ;;  %v6172_v60 = vpop.f32.mrb[229].mxu0 }
 0x443   : > { %v6173_v30 = vadd.f32 %v6172_v60, %v6171_v55  ;;  %v6063_v48 = vpop.f32.mrb[199].mxu1  ;;  %v6174_v25 = vpop.f32.mrb[230].mxu0 }
 0x444   : > { %v3757_v12 = vadd.f32 %v6061_v59, %v8422_v42  ;;  %v6064_v1 = vadd.f32 %v6063_v48, %v6062_v29  ;;  %v6175_v47 = vpop.f32.mrb[231].mxu0 }
 0x445   : > { %v6176_v21 = vadd.f32 %v6175_v47, %v6174_v25 }
 0x446   : > { %v3760_v53 = vadd.f32 %v6064_v1, %v8426_v32  ;;  %v8502_v45 = vadd.f32 %v6173_v30, %v3757_v12 }
 0x448   : > { %v6065_v28 = vpop.f32.mrb[200].mxu1  ;;  %v8504_v36 = vadd.f32 %v6176_v21, %v3760_v53 }
 0x449   : > { %v6066_v40 = vpop.f32.mrb[201].mxu1  ;;  %v6177_v26 = vpop.f32.mrb[232].mxu0 }
 0x44a   : > { %v6067_v7 = vadd.f32 %v6066_v40, %v6065_v28  ;;  %v6068_v43 = vpop.f32.mrb[202].mxu1  ;;  %v6178_v20 = vpop.f32.mrb[233].mxu0 }
 0x44b   : > { %v6179_v22 = vadd.f32 %v6178_v20, %v6177_v26  ;;  %v6069_v63 = vpop.f32.mrb[203].mxu1  ;;  %v6180_v31 = vpop.f32.mrb[234].mxu0 }
 0x44c   : > { %v3765_v42 = vadd.f32 %v6067_v7, %v8429_v14  ;;  %v6070_v58 = vadd.f32 %v6069_v63, %v6068_v43  ;;  %v6181_v0 = vpop.f32.mrb[235].mxu0 }
 0x44d   : > { %v6182_v5 = vadd.f32 %v6181_v0, %v6180_v31 }
 0x44e   : > { %v3768_v32 = vadd.f32 %v6070_v58, %v8433_v27  ;;  %v8508_v44 = vadd.f32 %v6179_v22, %v3765_v42 }
 0x450   : > { %v6071_v17 = vpop.f32.mrb[204].mxu1  ;;  %v8510_v46 = vadd.f32 %v6182_v5, %v3768_v32 }
 0x451   : > { %v6072_v51 = vpop.f32.mrb[205].mxu1  ;;  %v6183_v15 = vpop.f32.mrb[236].mxu0 }
 0x452   : > { %v6073_v8 = vadd.f32 %v6072_v51, %v6071_v17  ;;  %v6074_v55 = vpop.f32.mrb[206].mxu1  ;;  %v6184_v59 = vpop.f32.mrb[237].mxu0 }
 0x453   : > { %v6185_v29 = vadd.f32 %v6184_v59, %v6183_v15  ;;  %v6075_v60 = vpop.f32.mrb[207].mxu1  ;;  %v6186_v30 = vpop.f32.mrb[238].mxu0 }
 0x454   : > { %v3773_v14 = vadd.f32 %v6073_v8, %v8437_v18  ;;  %v6076_v48 = vadd.f32 %v6075_v60, %v6074_v55  ;;  %v6187_v25 = vpop.f32.mrb[239].mxu0 }
 0x455   : > { %v6188_v12 = vadd.f32 %v6187_v25, %v6186_v30 }
 0x456   : > { %v3776_v27 = vadd.f32 %v6076_v48, %v8442_v49  ;;  %v8514_v1 = vadd.f32 %v6185_v29, %v3773_v14 }
 0x458   : > { %v6077_v47 = vpop.f32.mrb[208].mxu1  ;;  %v8516_v21 = vadd.f32 %v6188_v12, %v3776_v27 }
 0x459   : > { %v6078_v53 = vpop.f32.mrb[209].mxu1  ;;  %v6189_v28 = vpop.f32.mrb[240].mxu0 }
 0x45a   : > { %v6079_v40 = vadd.f32 %v6078_v53, %v6077_v47  ;;  %v6080_v26 = vpop.f32.mrb[210].mxu1  ;;  %v6190_v7 = vpop.f32.mrb[241].mxu0 }
 0x45b   : > { %v6191_v43 = vadd.f32 %v6190_v7, %v6189_v28  ;;  %v6081_v20 = vpop.f32.mrb[211].mxu1  ;;  %v6192_v22 = vpop.f32.mrb[242].mxu0 }
 0x45c   : > { %v3781_v18 = vadd.f32 %v6079_v40, %v8444_v39  ;;  %v6082_v63 = vadd.f32 %v6081_v20, %v6080_v26  ;;  %v6193_v31 = vpop.f32.mrb[243].mxu0 }
 0x45d   : > { %v6194_v42 = vadd.f32 %v6193_v31, %v6192_v22 }
 0x45e   : > { %v3784_v49 = vadd.f32 %v6082_v63, %v8446_v38  ;;  %v8520_v58 = vadd.f32 %v6191_v43, %v3781_v18 }
 0x460   : > { %v6083_v0 = vpop.f32.mrb[212].mxu1  ;;  %v8522_v5 = vadd.f32 %v6194_v42, %v3784_v49 }
 0x461   : > { %v6084_v32 = vpop.f32.mrb[213].mxu1  ;;  %v6195_v17 = vpop.f32.mrb[244].mxu0 }
 0x462   : > { %v6085_v51 = vadd.f32 %v6084_v32, %v6083_v0  ;;  %v6086_v15 = vpop.f32.mrb[214].mxu1  ;;  %v6196_v8 = vpop.f32.mrb[245].mxu0 }
 0x463   : > { %v6197_v55 = vadd.f32 %v6196_v8, %v6195_v17  ;;  %v6087_v59 = vpop.f32.mrb[215].mxu1  ;;  %v6198_v29 = vpop.f32.mrb[246].mxu0 }
 0x464   : > { %v3789_v39 = vadd.f32 %v6085_v51, %v8449_v9  ;;  %v6088_v60 = vadd.f32 %v6087_v59, %v6086_v15  ;;  %v6199_v30 = vpop.f32.mrb[247].mxu0 }
 0x465   : > { %v6200_v14 = vadd.f32 %v6199_v30, %v6198_v29 }
 0x466   : > { %v3792_v38 = vadd.f32 %v6088_v60, %v8451_v24  ;;  %v8526_v48 = vadd.f32 %v6197_v55, %v3789_v39 }
 0x468   : > { %v6089_v25 = vpop.f32.mrb[216].mxu1  ;;  %v8528_v12 = vadd.f32 %v6200_v14, %v3792_v38 }
 0x469   : > { %v6090_v27 = vpop.f32.mrb[217].mxu1  ;;  %v6201_v47 = vpop.f32.mrb[248].mxu0 }
 0x46a   : > { %v6091_v53 = vadd.f32 %v6090_v27, %v6089_v25  ;;  %v6092_v28 = vpop.f32.mrb[218].mxu1  ;;  %v6202_v40 = vpop.f32.mrb[249].mxu0 }
 0x46b   : > { %v6203_v26 = vadd.f32 %v6202_v40, %v6201_v47  ;;  %v6093_v7 = vpop.f32.mrb[219].mxu1  ;;  %v6204_v43 = vpop.f32.mrb[250].mxu0 }
 0x46c   : > { %v3797_v9 = vadd.f32 %v6091_v53, %v8453_v54  ;;  %v6094_v20 = vadd.f32 %v6093_v7, %v6092_v28  ;;  %v6205_v22 = vpop.f32.mrb[251].mxu0 }
 0x46d   : > { %v6206_v18 = vadd.f32 %v6205_v22, %v6204_v43 }
 0x46e   : > { %v3800_v24 = vadd.f32 %v6094_v20, %v8455_v16  ;;  %v8532_v63 = vadd.f32 %v6203_v26, %v3797_v9 }
 0x470   : > { %v6095_v31 = vpop.f32.mrb[220].mxu1  ;;  %v8534_v42 = vadd.f32 %v6206_v18, %v3800_v24 }
 0x471   : > { %v6096_v49 = vpop.f32.mrb[221].mxu1  ;;  %v6207_v0 = vpop.f32.mrb[252].mxu0 }
 0x472   : > { %v6097_v32 = vadd.f32 %v6096_v49, %v6095_v31  ;;  %v6098_v17 = vpop.f32.mrb[222].mxu1  ;;  %v6208_v51 = vpop.f32.mrb[253].mxu0 }
 0x473   : > { %v6209_v15 = vadd.f32 %v6208_v51, %v6207_v0  ;;  %v6099_v8 = vpop.f32.mrb[223].mxu1  ;;  %v6210_v55 = vpop.f32.mrb[254].mxu0 }
 0x474   : > { %v3805_v54 = vadd.f32 %v6097_v32, %v8457_v11  ;;  %v6100_v59 = vadd.f32 %v6099_v8, %v6098_v17  ;;  %v6211_v29 = vpop.f32.mrb[255].mxu0 }
 0x475   : > { %v6212_v39 = vadd.f32 %v6211_v29, %v6210_v55 }
 0x476   : > { %v3808_v16 = vadd.f32 %v6100_v59, %v8459_v6  ;;  %v8538_v60 = vadd.f32 %v6209_v15, %v3805_v54 }
 0x478   : > { %v6101_v30 = vpop.f32.mrb[224].mxu1  ;;  %v8540_v14 = vadd.f32 %v6212_v39, %v3808_v16 }
 0x479   : > { %v6102_v38 = vpop.f32.mrb[225].mxu1  ;;  %v6213_v25 = vpop.f32.mrb[0].mxu0 }
 0x47a   : > { %v6103_v27 = vadd.f32 %v6102_v38, %v6101_v30  ;;  %v6104_v47 = vpop.f32.mrb[226].mxu1  ;;  %v6214_v53 = vpop.f32.mrb[1].mxu0 }
 0x47b   : > { %v6215_v28 = vadd.f32 %v6214_v53, %v6213_v25  ;;  %v6105_v40 = vpop.f32.mrb[227].mxu1  ;;  %v6216_v26 = vpop.f32.mrb[2].mxu0 }
 0x47c   : > { %v3813_v11 = vadd.f32 %v6103_v27, %v8461_v41  ;;  %v6106_v7 = vadd.f32 %v6105_v40, %v6104_v47  ;;  %v6217_v43 = vpop.f32.mrb[3].mxu0 }
 0x47d   : > { %v6218_v9 = vadd.f32 %v6217_v43, %v6216_v26 }
 0x47e   : > { %v3816_v6 = vadd.f32 %v6106_v7, %v8463_v10  ;;  %v8544_v20 = vadd.f32 %v6215_v28, %v3813_v11 }
 0x480   : > { %v6107_v22 = vpop.f32.mrb[228].mxu1  ;;  %v8546_v18 = vadd.f32 %v6218_v9, %v3816_v6 }
 0x481   : > { %v6108_v24 = vpop.f32.mrb[229].mxu1  ;;  %v6219_v31 = vpop.f32.mrb[4].mxu0 }
 0x482   : > { %v6109_v49 = vadd.f32 %v6108_v24, %v6107_v22  ;;  %v6110_v0 = vpop.f32.mrb[230].mxu1  ;;  %v6220_v32 = vpop.f32.mrb[5].mxu0 }
 0x483   : > { %v6221_v17 = vadd.f32 %v6220_v32, %v6219_v31  ;;  %v6111_v51 = vpop.f32.mrb[231].mxu1  ;;  %v6222_v15 = vpop.f32.mrb[6].mxu0 }
 0x484   : > { %v3821_v41 = vadd.f32 %v6109_v49, %v8465_v33  ;;  %v6112_v8 = vadd.f32 %v6111_v51, %v6110_v0  ;;  %v6223_v55 = vpop.f32.mrb[7].mxu0 }
 0x485   : > { %v6224_v54 = vadd.f32 %v6223_v55, %v6222_v15 }
 0x486   : > { %v3824_v10 = vadd.f32 %v6112_v8, %v8467_v2  ;;  %v8550_v59 = vadd.f32 %v6221_v17, %v3821_v41 }
 0x488   : > { %v6113_v29 = vpop.f32.mrb[232].mxu1  ;;  %v8552_v39 = vadd.f32 %v6224_v54, %v3824_v10 }
 0x489   : > { %v6114_v16 = vpop.f32.mrb[233].mxu1  ;;  %v6225_v30 = vpop.f32.mrb[8].mxu0 }
 0x48a   : > { %v6115_v38 = vadd.f32 %v6114_v16, %v6113_v29  ;;  %v6116_v25 = vpop.f32.mrb[234].mxu1  ;;  %v6226_v27 = vpop.f32.mrb[9].mxu0 }
 0x48b   : > { %v6227_v47 = vadd.f32 %v6226_v27, %v6225_v30  ;;  %v6117_v53 = vpop.f32.mrb[235].mxu1  ;;  %v6228_v28 = vpop.f32.mrb[10].mxu0 }
 0x48c   : > { %v3829_v33 = vadd.f32 %v6115_v38, %v8469_v56  ;;  %v6118_v40 = vadd.f32 %v6117_v53, %v6116_v25  ;;  %v6229_v26 = vpop.f32.mrb[11].mxu0 }
 0x48d   : > { %v6230_v11 = vadd.f32 %v6229_v26, %v6228_v28 }
 0x48e   : > { %v3832_v2 = vadd.f32 %v6118_v40, %v8471_v57  ;;  %v8556_v7 = vadd.f32 %v6227_v47, %v3829_v33 }
 0x490   : > { %v6119_v43 = vpop.f32.mrb[236].mxu1  ;;  %v8558_v9 = vadd.f32 %v6230_v11, %v3832_v2 }
 0x491   : > { %v6120_v6 = vpop.f32.mrb[237].mxu1  ;;  %v6231_v22 = vpop.f32.mrb[12].mxu0 }
 0x492   : > { %v6121_v24 = vadd.f32 %v6120_v6, %v6119_v43  ;;  %v6122_v31 = vpop.f32.mrb[238].mxu1  ;;  %v6232_v49 = vpop.f32.mrb[13].mxu0 }
 0x493   : > { %v6233_v0 = vadd.f32 %v6232_v49, %v6231_v22  ;;  %v6123_v32 = vpop.f32.mrb[239].mxu1  ;;  %v6234_v17 = vpop.f32.mrb[14].mxu0 }
 0x494   : > { %v3837_v56 = vadd.f32 %v6121_v24, %v8473_v50  ;;  %v6124_v51 = vadd.f32 %v6123_v32, %v6122_v31  ;;  %v6235_v15 = vpop.f32.mrb[15].mxu0 }
 0x495   : > { %v6236_v41 = vadd.f32 %v6235_v15, %v6234_v17 }
 0x496   : > { %v3840_v57 = vadd.f32 %v6124_v51, %v8476_v61  ;;  %v8562_v8 = vadd.f32 %v6233_v0, %v3837_v56 }
 0x498   : > { %v6125_v55 = vpop.f32.mrb[240].mxu1  ;;  %v8564_v54 = vadd.f32 %v6236_v41, %v3840_v57 }
 0x499   : > { %v6126_v10 = vpop.f32.mrb[241].mxu1  ;;  %v6237_v29 = vpop.f32.mrb[16].mxu0 }
 0x49a   : > { %v6127_v16 = vadd.f32 %v6126_v10, %v6125_v55  ;;  %v6128_v30 = vpop.f32.mrb[242].mxu1  ;;  %v6238_v38 = vpop.f32.mrb[17].mxu0 }
 0x49b   : > { %v6239_v25 = vadd.f32 %v6238_v38, %v6237_v29  ;;  %v6129_v27 = vpop.f32.mrb[243].mxu1  ;;  %v6240_v47 = vpop.f32.mrb[18].mxu0 }
 0x49c   : > { %v3845_v50 = vadd.f32 %v6127_v16, %v8478_v37  ;;  %v6130_v53 = vadd.f32 %v6129_v27, %v6128_v30  ;;  %v6241_v28 = vpop.f32.mrb[19].mxu0 }
 0x49d   : > { %v6242_v33 = vadd.f32 %v6241_v28, %v6240_v47 }
 0x49e   : > { %v3848_v61 = vadd.f32 %v6130_v53, %v8480_v4  ;;  %v8568_v40 = vadd.f32 %v6239_v25, %v3845_v50 }
 0x4a0   : > { %v6131_v26 = vpop.f32.mrb[244].mxu1  ;;  %v8570_v11 = vadd.f32 %v6242_v33, %v3848_v61 }
 0x4a1   : > { %v6132_v2 = vpop.f32.mrb[245].mxu1  ;;  %v6243_v43 = vpop.f32.mrb[20].mxu0 }
 0x4a2   : > { %v6133_v6 = vadd.f32 %v6132_v2, %v6131_v26  ;;  %v6134_v22 = vpop.f32.mrb[246].mxu1  ;;  %v6244_v24 = vpop.f32.mrb[21].mxu0 }
 0x4a3   : > { %v6245_v31 = vadd.f32 %v6244_v24, %v6243_v43  ;;  %v6135_v49 = vpop.f32.mrb[247].mxu1  ;;  %v6246_v0 = vpop.f32.mrb[22].mxu0 }
 0x4a4   : > { %v3853_v37 = vadd.f32 %v6133_v6, %v8482_v62  ;;  %v6136_v32 = vadd.f32 %v6135_v49, %v6134_v22  ;;  %v6247_v17 = vpop.f32.mrb[23].mxu0 }
 0x4a5   : > { %v6248_v56 = vadd.f32 %v6247_v17, %v6246_v0 }
 0x4a6   : > { %v3856_v4 = vadd.f32 %v6136_v32, %v8484_v13  ;;  %v8574_v51 = vadd.f32 %v6245_v31, %v3853_v37 }
 0x4a8   : > { %v6137_v15 = vpop.f32.mrb[248].mxu1  ;;  %v8576_v41 = vadd.f32 %v6248_v56, %v3856_v4 }
 0x4a9   : > { %v6138_v57 = vpop.f32.mrb[249].mxu1  ;;  %v6249_v55 = vpop.f32.mrb[24].mxu0 }
 0x4aa   : > { %v6139_v10 = vadd.f32 %v6138_v57, %v6137_v15  ;;  %v6140_v29 = vpop.f32.mrb[250].mxu1  ;;  %v6250_v16 = vpop.f32.mrb[25].mxu0 }
 0x4ab   : > { %v6251_v30 = vadd.f32 %v6250_v16, %v6249_v55  ;;  %v6141_v38 = vpop.f32.mrb[251].mxu1  ;;  %v6252_v25 = vpop.f32.mrb[26].mxu0 }
 0x4ac   : > { %v3861_v62 = vadd.f32 %v6139_v10, %v8486_v34  ;;  %v6142_v27 = vadd.f32 %v6141_v38, %v6140_v29  ;;  %v6253_v47 = vpop.f32.mrb[27].mxu0 }
 0x4ad   : > { %v6254_v50 = vadd.f32 %v6253_v47, %v6252_v25 }
 0x4ae   : > { %v3864_v13 = vadd.f32 %v6142_v27, %v8488_v52  ;;  %v8580_v53 = vadd.f32 %v6251_v30, %v3861_v62 }
 0x4b0   : > { %v6143_v28 = vpop.f32.mrb[252].mxu1  ;;  %v8582_v33 = vadd.f32 %v6254_v50, %v3864_v13 }
 0x4b1   : > { %v6144_v61 = vpop.f32.mrb[253].mxu1  ;;  %v6255_v26 = vpop.f32.mrb[28].mxu0 }
 0x4b2   : > { %v6145_v2 = vadd.f32 %v6144_v61, %v6143_v28  ;;  %v6146_v43 = vpop.f32.mrb[254].mxu1  ;;  %v6256_v6 = vpop.f32.mrb[29].mxu0 }
 0x4b3   : > { %v6257_v22 = vadd.f32 %v6256_v6, %v6255_v26  ;;  %v6147_v24 = vpop.f32.mrb[255].mxu1  ;;  %v6258_v31 = vpop.f32.mrb[30].mxu0 }
 0x4b4   : > { %v3869_v34 = vadd.f32 %v6145_v2, %v8490_v19  ;;  %v6148_v49 = vadd.f32 %v6147_v24, %v6146_v43  ;;  %v6259_v0 = vpop.f32.mrb[31].mxu0 }
 0x4b5   : > { %v6260_v37 = vadd.f32 %v6259_v0, %v6258_v31 }
 0x4b6   : > { %v3872_v52 = vadd.f32 %v6148_v49, %v8492_v3  ;;  %v8586_v32 = vadd.f32 %v6257_v22, %v3869_v34 }
 0x4b8   : > { %v6370_v17 = vpop.f32.mrb[0].mxu1  ;;  %v8588_v56 = vadd.f32 %v6260_v37, %v3872_v52 }
 0x4b9   : > { %v8591_v4 = vadd.f32 %v6370_v17, %v8502_v45  ;;  %v4070_v15 = vpop.f32.mrb[1].mxu1 }
 0x4ba   : > { %v8594_v57 = vadd.f32 %v4070_v15, %v8496_v23  ;;  %v6371_v55 = vpop.f32.mrb[2].mxu1 }
 0x4bb   : > { %v8597_v19 = vadd.f32 %v6371_v55, %v8504_v36  ;;  %v4073_v10 = vpop.f32.mrb[3].mxu1 }
 0x4bc   : > { %v8600_v29 = vadd.f32 %v4073_v10, %v8498_v35 }
 0x4be   : > { %v4197_v3 = vadd.f32 %v8600_v29, %v8594_v57 }
 0x4c0   : > { %v4198_v16 = vadd.f32 %v4197_v3, %v8591_v4  ;;  %v6374_v30 = vpop.f32.mrb[4].mxu1 }
 0x4c1   : > { %v8606_v45 = vadd.f32 %v6374_v30, %v8514_v1  ;;  %v4086_v38 = vpop.f32.mrb[5].mxu1 }
 0x4c2   : > { %v8609_v23 = vadd.f32 %v4086_v38, %v8508_v44  ;;  %v4199_v36 = vadd.f32 %v4198_v16, %v8597_v19  ;;  %v6375_v25 = vpop.f32.mrb[6].mxu1 }
 0x4c3   : > { %v8613_v62 = vadd.f32 %v6375_v25, %v8516_v21  ;;  %v4089_v35 = vpop.f32.mrb[7].mxu1 }
 0x4c4   : > { %v4200_v27 = vadd.f32 %v4199_v36, %v8609_v23  ;;  %v8617_v47 = vadd.f32 %v4089_v35, %v8510_v46 }
 0x4c6   : > { %v4201_v50 = vadd.f32 %v4200_v27, %v8617_v47 }
 0x4c8   : > { %v4202_v1 = vadd.f32 %v4201_v50, %v8606_v45  ;;  %v6378_v13 = vpop.f32.mrb[8].mxu1 }
 0x4c9   : > { %v8622_v44 = vadd.f32 %v6378_v13, %v8526_v48  ;;  %v4102_v28 = vpop.f32.mrb[9].mxu1 }
 0x4ca   : > { %v8625_v61 = vadd.f32 %v4102_v28, %v8520_v58  ;;  %v4203_v21 = vadd.f32 %v4202_v1, %v8613_v62  ;;  %v6379_v26 = vpop.f32.mrb[10].mxu1 }
 0x4cb   : > { %v8629_v2 = vadd.f32 %v6379_v26, %v8528_v12  ;;  %v4105_v46 = vpop.f32.mrb[11].mxu1 }
 0x4cc   : > { %v4204_v43 = vadd.f32 %v4203_v21, %v8625_v61  ;;  %v8633_v6 = vadd.f32 %v4105_v46, %v8522_v5 }
 0x4ce   : > { %v4205_v22 = vadd.f32 %v4204_v43, %v8633_v6 }
 0x4d0   : > { %v4206_v48 = vadd.f32 %v4205_v22, %v8622_v44  ;;  %v6382_v24 = vpop.f32.mrb[12].mxu1 }
 0x4d1   : > { %v8638_v58 = vadd.f32 %v6382_v24, %v8538_v60  ;;  %v4118_v31 = vpop.f32.mrb[13].mxu1 }
 0x4d2   : > { %v8641_v34 = vadd.f32 %v4118_v31, %v8532_v63  ;;  %v4207_v12 = vadd.f32 %v4206_v48, %v8629_v2  ;;  %v6383_v49 = vpop.f32.mrb[14].mxu1 }
 0x4d3   : > { %v8645_v0 = vadd.f32 %v6383_v49, %v8540_v14  ;;  %v4121_v5 = vpop.f32.mrb[15].mxu1 }
 0x4d4   : > { %v4208_v37 = vadd.f32 %v4207_v12, %v8641_v34  ;;  %v8649_v52 = vadd.f32 %v4121_v5, %v8534_v42 }
 0x4d6   : > { %v4209_v17 = vadd.f32 %v4208_v37, %v8649_v52 }
 0x4d8   : > { %v4210_v60 = vadd.f32 %v4209_v17, %v8638_v58  ;;  %v6386_v15 = vpop.f32.mrb[16].mxu1 }
 0x4d9   : > { %v8654_v63 = vadd.f32 %v6386_v15, %v8550_v59  ;;  %v4134_v55 = vpop.f32.mrb[17].mxu1 }
 0x4da   : > { %v4135_v10 = vadd.f32 %v4134_v55, %v8544_v20  ;;  %v4211_v14 = vadd.f32 %v4210_v60, %v8645_v0  ;;  %v6387_v3 = vpop.f32.mrb[18].mxu1 }
 0x4db   : > { %v4146_v16 = vadd.f32 %v6387_v3, %v8552_v39  ;;  %v4137_v30 = vpop.f32.mrb[19].mxu1 }
 0x4dc   : > { %v4212_v38 = vadd.f32 %v4211_v14, %v4135_v10  ;;  %v4138_v42 = vadd.f32 %v4137_v30, %v8546_v18 }
 0x4de   : > { %v4213_v36 = vadd.f32 %v4212_v38, %v4138_v42 }
 0x4e0   : > { %v4214_v25 = vadd.f32 %v4213_v36, %v8654_v63  ;;  %v6390_v35 = vpop.f32.mrb[20].mxu1 }
 0x4e1   : > { %v4159_v27 = vadd.f32 %v6390_v35, %v8562_v8  ;;  %v4150_v59 = vpop.f32.mrb[21].mxu1 }
 0x4e2   : > { %v4151_v50 = vadd.f32 %v4150_v59, %v8556_v7  ;;  %v4215_v1 = vadd.f32 %v4214_v25, %v4146_v16  ;;  %v6391_v20 = vpop.f32.mrb[22].mxu1 }
 0x4e3   : > { %v4162_v13 = vadd.f32 %v6391_v20, %v8564_v54  ;;  %v4153_v28 = vpop.f32.mrb[23].mxu1 }
 0x4e4   : > { %v4216_v21 = vadd.f32 %v4215_v1, %v4151_v50  ;;  %v4154_v39 = vadd.f32 %v4153_v28, %v8558_v9 }
 0x4e6   : > { %v4217_v26 = vadd.f32 %v4216_v21, %v4154_v39 }
 0x4e8   : > { %v4218_v46 = vadd.f32 %v4217_v26, %v4159_v27  ;;  %v6394_v18 = vpop.f32.mrb[24].mxu1 }
 0x4e9   : > { %v4175_v43 = vadd.f32 %v6394_v18, %v8574_v51  ;;  %v4166_v22 = vpop.f32.mrb[25].mxu1 }
 0x4ea   : > { %v4167_v48 = vadd.f32 %v4166_v22, %v8568_v40  ;;  %v4219_v8 = vadd.f32 %v4218_v46, %v4162_v13  ;;  %v6395_v24 = vpop.f32.mrb[26].mxu1 }
 0x4eb   : > { %v4178_v7 = vadd.f32 %v6395_v24, %v8576_v41  ;;  %v4169_v31 = vpop.f32.mrb[27].mxu1 }
 0x4ec   : > { %v4220_v12 = vadd.f32 %v4219_v8, %v4167_v48  ;;  %v4170_v54 = vadd.f32 %v4169_v31, %v8570_v11 }
 0x4ee   : > { %v4221_v49 = vadd.f32 %v4220_v12, %v4170_v54 }
 0x4f0   : > { %v4222_v5 = vadd.f32 %v4221_v49, %v4175_v43  ;;  %v6398_v37 = vpop.f32.mrb[28].mxu1 }
 0x4f1   : > { %v4191_v9 = vadd.f32 %v6398_v37, %v8586_v32  ;;  %v4182_v17 = vpop.f32.mrb[29].mxu1 }
 0x4f2   : > { %v4183_v60 = vadd.f32 %v4182_v17, %v8580_v53  ;;  %v4223_v51 = vadd.f32 %v4222_v5, %v4178_v7  ;;  %v6399_v15 = vpop.f32.mrb[30].mxu1 }
 0x4f3   : > { %v4194_v40 = vadd.f32 %v6399_v15, %v8588_v56  ;;  %v4185_v55 = vpop.f32.mrb[31].mxu1 }
 0x4f4   : > { %v4224_v14 = vadd.f32 %v4223_v51, %v4183_v60  ;;  %v4186_v41 = vadd.f32 %v4185_v55, %v8582_v33 }
 0x4f6   : > { %v4225_v3 = vadd.f32 %v4224_v14, %v4186_v41 }
 0x4f8   : > { %v4226_v30 = vadd.f32 %v4225_v3, %v4191_v9 }
 0x4fa   : > { %v4227_v38 = vadd.f32 %v4226_v30, %v4194_v40 }
 0x4fc   : > { %v4228_v11 = vrot.slane %v4227_v38, 4 }
 0x4fe   : > { %v4229_v36 = vadd.f32 %v4228_v11, %v4227_v38 }
 0x500   : > { %v4230_v25 = vrot.slane %v4229_v36, 2 }
 0x502   : > { %v4231_v35 = vadd.f32 %v4230_v25, %v4229_v36 }
 0x504   : > { %v4232_v59 = vrot.slane %v4231_v35, 1 }
 0x506   : > { %v4233_v32 = vadd.f32 %v4232_v59, %v4231_v35 }
 0x508   : > { %v4234_v1 = vmul.f32 0.00390625, %v4233_v32 }
 0x50a   : > { %v8674_v53 = vsub.f32 %v8625_v61, %v4234_v1  ;;  %v8677_v20 = vsub.f32 %v8633_v6, %v4234_v1  ;;  %v8680_v56 = vsub.f32 %v8622_v44, %v4234_v1  ;;  %v8683_v33 = vsub.f32 %v8629_v2, %v4234_v1 }
 0x50b   : > { %v8686_v28 = vsub.f32 %v8641_v34, %v4234_v1  ;;  %v8689_v21 = vsub.f32 %v8649_v52, %v4234_v1  ;;  %v8692_v26 = vsub.f32 %v8638_v58, %v4234_v1  ;;  %v8695_v61 = vsub.f32 %v8645_v0, %v4234_v1 }
 0x50c   : > { %v8697_v6 = vsub.f32 %v4135_v10, %v4234_v1  ;;  %v8699_v46 = vsub.f32 %v4138_v42, %v4234_v1  ;;  %v8702_v44 = vsub.f32 %v8654_v63, %v4234_v1  ;;  %v8704_v2 = vsub.f32 %v4146_v16, %v4234_v1 }
 0x50d   : > { %v8706_v34 = vsub.f32 %v4151_v50, %v4234_v1  ;;  %v8708_v18 = vsub.f32 %v4154_v39, %v4234_v1  ;;  %v8710_v52 = vsub.f32 %v4159_v27, %v4234_v1  ;;  %v8712_v58 = vsub.f32 %v4162_v13, %v4234_v1 }
 0x50e   : > { %v8714_v22 = vsub.f32 %v4167_v48, %v4234_v1  ;;  %v8716_v0 = vsub.f32 %v4170_v54, %v4234_v1  ;;  %v8718_v10 = vsub.f32 %v4175_v43, %v4234_v1  ;;  %v8720_v42 = vsub.f32 %v4178_v7, %v4234_v1 }
 0x50f   : > { %v8722_v63 = vsub.f32 %v4183_v60, %v4234_v1  ;;  %v8724_v16 = vsub.f32 %v4186_v41, %v4234_v1  ;;  %v8726_v50 = vsub.f32 %v4191_v9, %v4234_v1  ;;  %v8728_v39 = vsub.f32 %v4194_v40, %v4234_v1 }
 0x510   : > { %v8731_v27 = vsub.f32 %v8594_v57, %v4234_v1  ;;  %v8734_v13 = vsub.f32 %v8600_v29, %v4234_v1  ;;  %v8737_v48 = vsub.f32 %v8591_v4, %v4234_v1  ;;  %v8744_v24 = vsub.f32 %v8597_v19, %v4234_v1 }
 0x511   : > { %v8747_v7 = vsub.f32 %v8609_v23, %v4234_v1  ;;  %v8752_v31 = vsub.f32 %v8617_v47, %v4234_v1  ;;  %v8757_v54 = vsub.f32 %v8606_v45, %v4234_v1  ;;  %v8762_v23 = vsub.f32 %v8613_v62, %v4234_v1 }
 0x512   : > { %v4267_v43 = vmul.f32 %v8731_v27, %v8731_v27  ;;  %v4268_v8 = vmul.f32 %v8734_v13, %v8734_v13  ;;  %v4269_v57 = vmul.f32 %v8737_v48, %v8737_v48  ;;  %v4270_v4 = vmul.f32 %v8744_v24, %v8744_v24 }
 0x513   : > { %v4271_v19 = vmul.f32 %v8747_v7, %v8747_v7  ;;  %v4272_v5 = vmul.f32 %v8752_v31, %v8752_v31  ;;  %v4273_v47 = vmul.f32 %v8757_v54, %v8757_v54  ;;  %v4274_v17 = vmul.f32 %v8762_v23, %v8762_v23 }
 0x514   : > { %v4299_v29 = vadd.f32 %v4268_v8, %v4267_v43  ;;  %v4275_v60 = vmul.f32 %v8674_v53, %v8674_v53  ;;  %v4276_v62 = vmul.f32 %v8677_v20, %v8677_v20  ;;  %v4277_v40 = vmul.f32 %v8680_v56, %v8680_v56 }
 0x515   : > { %v4278_v14 = vmul.f32 %v8683_v33, %v8683_v33  ;;  %v4279_v3 = vmul.f32 %v8686_v28, %v8686_v28  ;;  %v4280_v38 = vmul.f32 %v8689_v21, %v8689_v21  ;;  %v4281_v36 = vmul.f32 %v8692_v26, %v8692_v26 }
 0x516   : > { %v4300_v12 = vadd.f32 %v4299_v29, %v4269_v57  ;;  %v4282_v35 = vmul.f32 %v8695_v61, %v8695_v61  ;;  %v4283_v32 = vmul.f32 %v8697_v6, %v8697_v6  ;;  %v4284_v43 = vmul.f32 %v8699_v46, %v8699_v46 }
 0x517   : > { %v4285_v57 = vmul.f32 %v8702_v44, %v8702_v44 }
 0x518   : > { %v4301_v49 = vadd.f32 %v4300_v12, %v4270_v4  ;;  %v4286_v4 = vmul.f32 %v8704_v2, %v8704_v2 }
 0x51a   : > { %v4302_v37 = vadd.f32 %v4301_v49, %v4271_v19  ;;  %v4287_v19 = vmul.f32 %v8706_v34, %v8706_v34 }
 0x51c   : > { %v4303_v9 = vadd.f32 %v4302_v37, %v4272_v5  ;;  %v4288_v5 = vmul.f32 %v8708_v18, %v8708_v18 }
 0x51e   : > { %v4304_v45 = vadd.f32 %v4303_v9, %v4273_v47  ;;  %v4289_v47 = vmul.f32 %v8710_v52, %v8710_v52 }
 0x520   : > { %v4305_v51 = vadd.f32 %v4304_v45, %v4274_v17  ;;  %v4290_v17 = vmul.f32 %v8712_v58, %v8712_v58 }
 0x522   : > { %v4306_v15 = vadd.f32 %v4305_v51, %v4275_v60  ;;  %v4291_v60 = vmul.f32 %v8714_v22, %v8714_v22 }
 0x524   : > { %v4307_v55 = vadd.f32 %v4306_v15, %v4276_v62  ;;  %v4292_v62 = vmul.f32 %v8716_v0, %v8716_v0 }
 0x526   : > { %v4308_v41 = vadd.f32 %v4307_v55, %v4277_v40  ;;  %v4293_v40 = vmul.f32 %v8718_v10, %v8718_v10 }
 0x528   : > { %v4309_v30 = vadd.f32 %v4308_v41, %v4278_v14  ;;  %v4504_v14 = vld [vmem:[%s9303_s4] sm:$0xff]  ;;  %v4505_v41 = vld [vmem:[%s9303_s4 + $0x8] sm:$0xff] }
 0x52a   : > { %v4310_v11 = vadd.f32 %v4309_v30, %v4279_v3  ;;  %v4294_v3 = vmul.f32 %v8720_v42, %v8720_v42 }
 0x52c   : > { %v4311_v25 = vadd.f32 %v4310_v11, %v4280_v38  ;;  %v6725_v38 = vmov 0.0|0.0   ;;  %v6441_v11 = vpack.c.bf16 %v4505_v41, %v4504_v14  ;;  %v4515_v14 = vld [vmem:[%s9303_s4 + $0x58] sm:$0xff] }
 0x52d   : > { %6440 = vmatprep.subr.bf16.mxu0 %v6725_v38 }
 0x52e   : > { %v4312_v59 = vadd.f32 %v4311_v25, %v4281_v36  ;;  %v4506_v36 = vld [vmem:[%s9303_s4 + $0x10] sm:$0xff]  ;;  %v4507_v25 = vld [vmem:[%s9303_s4 + $0x18] sm:$0xff]  ;;  %6442 = vmatpush3.bf16.msra.mxu0 %v6441_v11  ;;  %v4516_v11 = vld [vmem:[%s9303_s4 + $0x60] sm:$0xff] }
 0x52f   : > { %6443 = vmatprep.subr.bf16.mxu0 %v6725_v38 }
 0x530   : > { %v4313_v1 = vadd.f32 %v4312_v59, %v4282_v35  ;;  %v6727_v35 = vmov 0.0   ;;  %v4295_v59 = vmul.f32 %v8722_v63, %v8722_v63 }
 0x531   : > { %6432 = vmatprep.mubr.msk.f32.mxu0 %vm6726_vm0, %v6727_v35  ;;  %6435 = vmatprep.subr.mxu1 %v6727_v35 }
 0x532   : > { %v4314_v8 = vadd.f32 %v4313_v1, %v4283_v32  ;;  %6437 = vmatprep.mubr.msk.f32.mxu1 %vm6726_vm0, %v6727_v35  ;;  %v6444_v1 = vpack.c.bf16 %v4507_v25, %v4506_v36  ;;  %v4517_v36 = vld [vmem:[%s9303_s4 + $0x68] sm:$0xff] }
 0x534   : > { %v4315_v29 = vadd.f32 %v4314_v8, %v4284_v43  ;;  %v4508_v43 = vld [vmem:[%s9303_s4 + $0x20] sm:$0xff]  ;;  %v4509_v8 = vld [vmem:[%s9303_s4 + $0x28] sm:$0xff]  ;;  %6445 = vmatpush3.bf16.msra.mxu0 %v6444_v1  ;;  %v4519_v1 = vld [vmem:[%s9303_s4 + $0x78] sm:$0xff] }
 0x535   : > { %6446 = vmatprep.subr.bf16.mxu0 %v6725_v38 }
 0x536   : > { %v4316_v12 = vadd.f32 %v4315_v29, %v4285_v57  ;;  %v4296_v57 = vmul.f32 %v8724_v16, %v8724_v16 }
 0x538   : > { %v4317_v49 = vadd.f32 %v4316_v12, %v4286_v4  ;;  %v4591_v4 = vld [vmem:[%s9304_s5] sm:$0xff]  ;;  %v4297_v12 = vmul.f32 %v8726_v50, %v8726_v50 }
 0x539   : > { %6436 = vmatpush3.msra.mxu1 %v4591_v4  ;;  %v5263_v4 = vld [vmem:[%s9302_s3] sm:$0xff]  }
 0x53a   : > { %v4318_v37 = vadd.f32 %v4317_v49, %v4287_v19  ;;  %v6447_v49 = vpack.c.bf16 %v4509_v8, %v4508_v43 }
 0x53c   : > { %v4319_v9 = vadd.f32 %v4318_v37, %v4288_v5  ;;  %v4510_v5 = vld [vmem:[%s9303_s4 + $0x30] sm:$0xff]  ;;  %v4511_v37 = vld [vmem:[%s9303_s4 + $0x38] sm:$0xff]  ;;  %6448 = vmatpush3.bf16.msra.mxu0 %v6447_v49 }
 0x53d   : > { %6449 = vmatprep.subr.bf16.mxu0 %v6725_v38 }
 0x53e   : > { %v4320_v45 = vadd.f32 %v4319_v9, %v4289_v47  ;;  %v4298_v47 = vmul.f32 %v8728_v39, %v8728_v39 }
 0x540   : > { %v4321_v51 = vadd.f32 %v4320_v45, %v4290_v17  ;;  %v6450_v45 = vpack.c.bf16 %v4511_v37, %v4510_v5 }
 0x542   : > { %v4322_v15 = vadd.f32 %v4321_v51, %v4291_v60  ;;  %v4512_v60 = vld [vmem:[%s9303_s4 + $0x40] sm:$0xff]  ;;  %v4513_v51 = vld [vmem:[%s9303_s4 + $0x48] sm:$0xff]  ;;  %6451 = vmatpush3.bf16.msra.mxu0 %v6450_v45 }
 0x543   : > { %6452 = vmatprep.subr.bf16.mxu0 %v6725_v38 }
 0x544   : > { %v4323_v55 = vadd.f32 %v4322_v15, %v4292_v62 }
 0x546   : > { %v4324_v30 = vadd.f32 %v4323_v55, %v4293_v40  ;;  %v6453_v40 = vpack.c.bf16 %v4513_v51, %v4512_v60  ;;  %v4514_v55 = vld [vmem:[%s9303_s4 + $0x50] sm:$0xff] }
 0x548   : > { %v4325_v32 = vadd.f32 %v4324_v30, %v4294_v3  ;;  %6454 = vmatpush3.bf16.msra.mxu0 %v6453_v40  ;;  %v6456_v30 = vpack.c.bf16 %v4515_v14, %v4514_v55 }
 0x549   : > { %6455 = vmatprep.subr.bf16.mxu0 %v6725_v38 }
 0x54a   : > { %v4326_v29 = vadd.f32 %v4325_v32, %v4295_v59  ;;  %v6459_v59 = vpack.c.bf16 %v4517_v36, %v4516_v11  ;;  %v4518_v32 = vld [vmem:[%s9303_s4 + $0x70] sm:$0xff]  ;;  %v5329_v11 = vld [vmem:[%s9302_s3 + $0x20] sm:$0xff]  }
 0x54b   : > { %v6462_v8 = vpack.c.bf16 %v4519_v1, %v4518_v32 }
 0x54c   : > { %v4327_v19 = vadd.f32 %v4326_v29, %v4296_v57  ;;  %6457 = vmatpush3.bf16.msra.mxu0 %v6456_v30 }
 0x54d   : > { %6458 = vmatprep.subr.bf16.mxu0 %v6725_v38 }
 0x54e   : > { %v4328_v9 = vadd.f32 %v4327_v19, %v4297_v12  ;;  %v5264_v12 = vunpack.c.l.bf16 %v5263_v4  ;;  %v5265_v19 = vunpack.c.h.bf16 %v5263_v4 }
 0x550   : > { %v4329_v17 = vadd.f32 %v4328_v9, %v4298_v47  ;;  %6460 = vmatpush3.bf16.msra.mxu0 %v6459_v59  ;;  %v5280_v59 = vunpack.c.l.bf16 %v5329_v11 }
 0x551   : > { %6461 = vmatprep.subr.bf16.mxu0 %v6725_v38  ;;  %v5326_v38 = vld [vmem:[%s9302_s3 + $0x8] sm:$0xff]  }
 0x552   : > { %v4330_v62 = vrot.slane %v4329_v17, 4  ;;  %v5268_v37 = vunpack.c.l.bf16 %v5326_v38  ;;  %v5269_v45 = vunpack.c.h.bf16 %v5326_v38 }
 0x554   : > { %v4331_v15 = vadd.f32 %v4330_v62, %v4329_v17  ;;  %6463 = vmatpush3.bf16.msra.mxu0 %v6462_v8  ;;  %v5281_v8 = vunpack.c.h.bf16 %v5329_v11 }
 0x556   : > { %v4332_v41 = vrot.slane %v4331_v15, 2 }
 0x558   : > { %v4333_v3 = vadd.f32 %v4332_v41, %v4331_v15  ;;  %v5328_v15 = vld [vmem:[%s9302_s3 + $0x18] sm:$0xff]  }
 0x559   : > { %v5276_v41 = vunpack.c.l.bf16 %v5328_v15  ;;  %v5277_v36 = vunpack.c.h.bf16 %v5328_v15 }
 0x55a   : > { %v4334_v25 = vrot.slane %v4333_v3, 1 }
 0x55c   : > { %v4335_v35 = vadd.f32 %v4334_v25, %v4333_v3 }
 0x55e   : > { %v4336_v43 = vmul.f32 0.00390625, %v4335_v35 }
 0x560   : > { %v4337_v57 = vadd.f32 1e-05, %v4336_v43  ;;  %v5330_v43 = vld [vmem:[%s9302_s3 + $0x28] sm:$0xff]  }
 0x562   : > { %6655 = vrsqrt.f32 %v4337_v57 }
 0x56c   : > { %v8869_v29 = vpop.eup %6655 }
 0x56d   : > { %v8876_v49 = vmul.f32 %v8869_v29, %v8731_v27  ;;  %v8880_v5 = vmul.f32 %v8869_v29, %v8734_v13  ;;  %v8887_v47 = vmul.f32 %v8869_v29, %v8737_v48  ;;  %v5327_v27 = vld [vmem:[%s9302_s3 + $0x10] sm:$0xff]   ;;  %v8896_v13 = vmul.f32 %v8869_v29, %v8744_v24 }
 0x56e   : > { %v5272_v60 = vunpack.c.l.bf16 %v5327_v27  ;;  %v8900_v51 = vmul.f32 %v8869_v29, %v8747_v7  ;;  %v5273_v40 = vunpack.c.h.bf16 %v5327_v27  ;;  %v8908_v55 = vmul.f32 %v8869_v29, %v8752_v31 }
 0x56f   : > { %v4435_v9 = vmul.f32 %v5264_v12, %v8876_v49  ;;  %v4436_v17 = vmul.f32 %v5265_v19, %v8880_v5  ;;  %v4437_v48 = vmul.f32 %v5268_v37, %v8887_v47  ;;  %v4438_v24 = vmul.f32 %v5269_v45, %v8896_v13  ;;  %v5331_v37 = vld [vmem:[%s9302_s3 + $0x30] sm:$0xff]  }
 0x570   : > { %v8913_v7 = vmul.f32 %v8869_v29, %v8757_v54  ;;  %v4439_v3 = vmul.f32 %v5272_v60, %v8900_v51  ;;  %v8921_v31 = vmul.f32 %v8869_v29, %v8762_v23  ;;  %v4440_v25 = vmul.f32 %v5273_v40, %v8908_v55 }
 0x571   : > { %v4467_v62 = vadd.f32 %v4436_v17, %v4435_v9  ;;  %v8926_v54 = vmul.f32 %v8869_v29, %v8674_v53  ;;  %v8934_v23 = vmul.f32 %v8869_v29, %v8677_v20  ;;  %v5284_v12 = vunpack.c.l.bf16 %v5330_v43 }
 0x572   : > { %v4441_v32 = vmul.f32 %v5276_v41, %v8913_v7  ;;  %v4442_v57 = vmul.f32 %v5277_v36, %v8921_v31  ;;  %v8939_v53 = vmul.f32 %v8869_v29, %v8680_v56  ;;  %v5285_v9 = vunpack.c.h.bf16 %v5330_v43 }
 0x573   : > { %v4468_v14 = vadd.f32 %v4467_v62, %v4437_v48  ;;  %v4443_v19 = vmul.f32 %v5280_v59, %v8926_v54  ;;  %v8947_v20 = vmul.f32 %v8869_v29, %v8683_v33  ;;  %v4444_v17 = vmul.f32 %v5281_v8, %v8934_v23  ;;  %v5332_v62 = vld [vmem:[%s9302_s3 + $0x38] sm:$0xff]  }
 0x574   : > { %v5288_v45 = vunpack.c.l.bf16 %v5331_v37  ;;  %v8952_v56 = vmul.f32 %v8869_v29, %v8686_v28  ;;  %v4445_v60 = vmul.f32 %v5284_v12, %v8939_v53  ;;  %v5289_v15 = vunpack.c.h.bf16 %v5331_v37 }
 0x575   : > { %v4469_v30 = vadd.f32 %v4468_v14, %v4438_v24  ;;  %v8960_v33 = vmul.f32 %v8869_v29, %v8689_v21  ;;  %v4446_v40 = vmul.f32 %v5285_v9, %v8947_v20  ;;  %v5292_v14 = vunpack.c.l.bf16 %v5332_v62 }
 0x576   : > { %v8965_v28 = vmul.f32 %v8869_v29, %v8692_v26  ;;  %v4447_v41 = vmul.f32 %v5288_v45, %v8952_v56  ;;  %v5293_v11 = vunpack.c.h.bf16 %v5332_v62  ;;  %v8973_v21 = vmul.f32 %v8869_v29, %v8695_v61 }
 0x577   : > { %v4470_v35 = vadd.f32 %v4469_v30, %v4439_v3  ;;  %v5333_v30 = vld [vmem:[%s9302_s3 + $0x40] sm:$0xff]   ;;  %v4448_v36 = vmul.f32 %v5289_v15, %v8960_v33  ;;  %v8978_v26 = vmul.f32 %v8869_v29, %v8697_v6  ;;  %v8986_v61 = vmul.f32 %v8869_v29, %v8699_v46 }
 0x578   : > { %v4449_v59 = vmul.f32 %v5292_v14, %v8965_v28  ;;  %v5297_v43 = vunpack.c.h.bf16 %v5333_v30  ;;  %v4450_v8 = vmul.f32 %v5293_v11, %v8973_v21  ;;  %v8991_v6 = vmul.f32 %v8869_v29, %v8702_v44 }
 0x579   : > { %v4471_v1 = vadd.f32 %v4470_v35, %v4440_v25  ;;  %v5296_v35 = vunpack.c.l.bf16 %v5333_v30  ;;  %v8999_v46 = vmul.f32 %v8869_v29, %v8704_v2  ;;  %v9004_v44 = vmul.f32 %v8869_v29, %v8706_v34 }
 0x57a   : > { %v4452_v9 = vmul.f32 %v5297_v43, %v8986_v61  ;;  %v9012_v2 = vmul.f32 %v8869_v29, %v8708_v18  ;;  %v9017_v34 = vmul.f32 %v8869_v29, %v8710_v52  ;;  %v9025_v18 = vmul.f32 %v8869_v29, %v8712_v58 }
 0x57b   : > { %v4472_v4 = vadd.f32 %v4471_v1, %v4441_v32  ;;  %v5334_v1 = vld [vmem:[%s9302_s3 + $0x48] sm:$0xff]   ;;  %v4451_v12 = vmul.f32 %v5296_v35, %v8978_v26  ;;  %v9030_v52 = vmul.f32 %v8869_v29, %v8714_v22  ;;  %v9038_v58 = vmul.f32 %v8869_v29, %v8716_v0 }
 0x57c   : > { %v5301_v37 = vunpack.c.h.bf16 %v5334_v1  ;;  %v9043_v22 = vmul.f32 %v8869_v29, %v8718_v10  ;;  %v9051_v0 = vmul.f32 %v8869_v29, %v8720_v42  ;;  %v9056_v10 = vmul.f32 %v8869_v29, %v8722_v63 }
 0x57d   : > { %v4473_v38 = vadd.f32 %v4472_v4, %v4442_v57  ;;  %v5300_v4 = vunpack.c.l.bf16 %v5334_v1  ;;  %v9069_v63 = vmul.f32 %v8869_v29, %v8726_v50 }
 0x57e   : > { %v4454_v15 = vmul.f32 %v5301_v37, %v8999_v46 }
 0x57f   : > { %v4474_v27 = vadd.f32 %v4473_v38, %v4443_v19  ;;  %v5335_v38 = vld [vmem:[%s9302_s3 + $0x50] sm:$0xff]   ;;  %v4453_v45 = vmul.f32 %v5300_v4, %v8991_v6 }
 0x580   : > { %v5305_v62 = vunpack.c.h.bf16 %v5335_v38 }
 0x581   : > { %v4475_v48 = vadd.f32 %v4474_v27, %v4444_v17  ;;  %v5304_v27 = vunpack.c.l.bf16 %v5335_v38 }
 0x582   : > { %v4456_v11 = vmul.f32 %v5305_v62, %v9012_v2 }
 0x583   : > { %v4476_v24 = vadd.f32 %v4475_v48, %v4445_v60  ;;  %v5336_v48 = vld [vmem:[%s9302_s3 + $0x58] sm:$0xff]   ;;  %v4455_v14 = vmul.f32 %v5304_v27, %v9004_v44 }
 0x584   : > { %v5309_v30 = vunpack.c.h.bf16 %v5336_v48 }
 0x585   : > { %v4477_v3 = vadd.f32 %v4476_v24, %v4446_v40  ;;  %v5308_v24 = vunpack.c.l.bf16 %v5336_v48  ;;  %v9064_v48 = vmul.f32 %v8869_v29, %v8724_v16 }
 0x586   : > { %v4458_v43 = vmul.f32 %v5309_v30, %v9025_v18 }
 0x587   : > { %v4478_v25 = vadd.f32 %v4477_v3, %v4447_v41  ;;  %v5337_v3 = vld [vmem:[%s9302_s3 + $0x60] sm:$0xff]   ;;  %v4457_v35 = vmul.f32 %v5308_v24, %v9017_v34 }
 0x588   : > { %v5313_v1 = vunpack.c.h.bf16 %v5337_v3 }
 0x589   : > { %v4479_v32 = vadd.f32 %v4478_v25, %v4448_v36  ;;  %v5312_v25 = vunpack.c.l.bf16 %v5337_v3  ;;  %v9074_v3 = vmul.f32 %v8869_v29, %v8728_v39 }
 0x58a   : > { %v4460_v37 = vmul.f32 %v5313_v1, %v9038_v58 }
 0x58b   : > { %v4480_v57 = vadd.f32 %v4479_v32, %v4449_v59  ;;  %v5338_v32 = vld [vmem:[%s9302_s3 + $0x68] sm:$0xff]   ;;  %v4459_v4 = vmul.f32 %v5312_v25, %v9030_v52 }
 0x58c   : > { %v5317_v38 = vunpack.c.h.bf16 %v5338_v32 }
 0x58d   : > { %v4481_v19 = vadd.f32 %v4480_v57, %v4450_v8  ;;  %v5316_v57 = vunpack.c.l.bf16 %v5338_v32 }
 0x58e   : > { %v4462_v62 = vmul.f32 %v5317_v38, %v9051_v0 }
 0x58f   : > { %v4482_v17 = vadd.f32 %v4481_v19, %v4451_v12  ;;  %v5339_v19 = vld [vmem:[%s9302_s3 + $0x70] sm:$0xff]   ;;  %v4461_v27 = vmul.f32 %v5316_v57, %v9043_v22 }
 0x590   : > { %v5321_v42 = vunpack.c.h.bf16 %v5339_v19 }
 0x591   : > { %v4483_v60 = vadd.f32 %v4482_v17, %v4452_v9  ;;  %v5320_v17 = vunpack.c.l.bf16 %v5339_v19 }
 0x592   : > { %v4464_v16 = vmul.f32 %v5321_v42, %v9064_v48 }
 0x593   : > { %v4484_v40 = vadd.f32 %v4483_v60, %v4453_v45  ;;  %v5340_v60 = vld [vmem:[%s9302_s3 + $0x78] sm:$0xff]   ;;  %v4463_v24 = vmul.f32 %v5320_v17, %v9056_v10  ;;  %v4704_v17 = vlaneseq }
 0x595   : > { %v4485_v41 = vadd.f32 %v4484_v40, %v4454_v15  ;;  %v5324_v40 = vunpack.c.l.bf16 %v5340_v60 }
 0x597   : > { %v4486_v36 = vadd.f32 %v4485_v41, %v4455_v14  ;;  %v5325_v41 = vunpack.c.h.bf16 %v5340_v60 }
 0x599   : > { %v4487_v59 = vadd.f32 %v4486_v36, %v4456_v11  ;;  %v4465_v11 = vmul.f32 %v5324_v40, %v9069_v63  ;;  %v4466_v25 = vmul.f32 %v5325_v41, %v9074_v3 }
 0x59b   : > { %v4488_v8 = vadd.f32 %v4487_v59, %v4457_v35 }
 0x59d   : > { %v4489_v12 = vadd.f32 %v4488_v8, %v4458_v43 }
 0x59f   : > { %v4490_v9 = vadd.f32 %v4489_v12, %v4459_v4 }
 0x5a1   : > { %v4491_v45 = vadd.f32 %v4490_v9, %v4460_v37 }
 0x5a3   : > { %v4492_v15 = vadd.f32 %v4491_v45, %v4461_v27  ;;  %v4705_v27 = vshrl.u32 %v4704_v17, 7  ;;  %v5246_v17 = vld [vmem:[%s6909_s13 + $0x121] sm:$0xff] }
 0x5a5   : > { %v4493_v14 = vadd.f32 %v4492_v15, %v4462_v62  ;;  %v4706_v45 = vsub.s32 0, %v4705_v27  ;;  %v5247_v27 = vld [vmem:[%s6909_s13 + $0x129] sm:$0xff] }
 0x5a7   : > { %v4494_v30 = vadd.f32 %v4493_v14, %v4463_v24 }
 0x5a9   : > { %v4495_v36 = vadd.f32 %v4494_v30, %v4464_v16 }
 0x5ab   : > { %v4496_v35 = vadd.f32 %v4495_v36, %v4465_v11  ;;  %v5224_v11 = vld [vmem:[%s6909_s13 + $0x19] sm:$0xff]  ;;  %v5225_v36 = vld [vmem:[%s6909_s13 + $0x21] sm:$0xff] }
 0x5ad   : > { %v4497_v59 = vadd.f32 %v4496_v35, %v4466_v25  ;;  %v5231_v25 = vld [vmem:[%s6909_s13 + $0x69] sm:$0xff] }
 0x5af   : > { %v4498_v50 = vrot.slane %v4497_v59, 4 }
 0x5b1   : > { %v4499_v32 = vadd.f32 %v4498_v50, %v4497_v59  ;;  %v5234_v59 = vld [vmem:[%s6909_s13 + $0x91] sm:$0xff]  ;;  %v5232_v50 = vld [vmem:[%s6909_s13 + $0x79] sm:$0xff] }
 0x5b3   : > { %v4500_v1 = vrot.slane %v4499_v32, 2 }
 0x5b5   : > { %v4501_v43 = vadd.f32 %v4500_v1, %v4499_v32  ;;  %v5235_v32 = vld [vmem:[%s6909_s13 + $0x99] sm:$0xff] }
 0x5b7   : > { %v4502_v8 = vrot.slane %v4501_v43, 1 }
 0x5b9   : > { %v4503_v57 = vadd.f32 %v4502_v8, %v4501_v43  ;;  %v5238_v43 = vld [vmem:[%s6909_s13 + $0xc1] sm:$0xff]  ;;  %v5236_v8 = vld [vmem:[%s6909_s13 + $0xa9] sm:$0xff] }
 0x5bb   : > { %6433 = vmatmul.mubr.f32.vlgmr.msra.gmra.mrb[32].mxu0 %v4503_v57 }
 0x68e   : > { %v4586_v4 = vpop.f32.mrb[32].mxu0 }
 0x68f   : > { %v4590_v39 = vmax.f32 %v4586_v4, 0.0  ;;  %v6434_v29 = vpop.f32.mrb[33].mxu0  ;;  %v5237_v4 = vld [vmem:[%s6909_s13 + $0xb1] sm:$0xff] }
 0x691   : > { %6438 = vmatmul.mubr.msk.f32.vlgmr.msra.gmra.mrb[32].mxu1 %vm4592_vm1, %v4590_v39  ;;  %v5242_v39 = vld [vmem:[%s6909_s13 + $0xf1] sm:$0xff] }
 0x764   : > { %v4662_v12 = vpop.f32.mrb[32].mxu1 }
 0x765   : > { %v5223_v19 = vmul.f32 -1.442695, %v4662_v12  ;;  %v6439_v38 = vpop.f32.mrb[33].mxu1  ;;  %v5243_v12 = vld [vmem:[%s6909_s13 + $0xf9] sm:$0xff] }
 0x767   : > { %6657 = vpow2.f32 %v5223_v19  ;;  %v5241_v19 = vld [vmem:[%s6909_s13 + $0xe1] sm:$0xff] }
 0x771   : > { %v6658_v37 = vpop.eup %6657 }
 0x772   : > { %v4669_v9 = vadd.f32 1.0, %v6658_v37 }
 0x774   : > { %6659 = vrcp.f32 %v4669_v9 }
 0x77e   : > { %v6660_v60 = vpop.eup %6659 }
 0x77f   : > { %v4707_v42 = vrot.slane %v6660_v60, %v4706_v45 }
 0x781   : > { %v4708_v62 = vmul.f32 %v4707_v42, %v8876_v49  ;;  %v4709_v15 = vmul.f32 %v4707_v42, %v8880_v5  ;;  %v4710_v40 = vmul.f32 %v4707_v42, %v8887_v47  ;;  %v4711_v24 = vmul.f32 %v4707_v42, %v8896_v13 }
 0x782   : > { %v4712_v14 = vmul.f32 %v4707_v42, %v8900_v51  ;;  %v4713_v41 = vmul.f32 %v4707_v42, %v8908_v55  ;;  %v4714_v16 = vmul.f32 %v4707_v42, %v8913_v7  ;;  %v4715_v30 = vmul.f32 %v4707_v42, %v8921_v31  ;;  %v5226_v51 = vld [vmem:[%s6909_s13 + $0x31] sm:$0xff]  ;;  %v5227_v55 = vld [vmem:[%s6909_s13 + $0x39] sm:$0xff] }
 0x783   : > { %v4716_v49 = vmul.f32 %v4707_v42, %v8926_v54  ;;  %v4717_v5 = vmul.f32 %v4707_v42, %v8934_v23  ;;  %v4718_v47 = vmul.f32 %v4707_v42, %v8939_v53  ;;  %v4719_v13 = vmul.f32 %v4707_v42, %v8947_v20  ;;  %v5230_v53 = vld [vmem:[%s6909_s13 + $0x61] sm:$0xff]  ;;  %v5228_v20 = vld [vmem:[%s6909_s13 + $0x49] sm:$0xff] }
 0x784   : > { %v9097_v7 = vmul.f32 %v4707_v42, %v8952_v56  ;;  %v9100_v31 = vmul.f32 %v4707_v42, %v8960_v33  ;;  %v9103_v54 = vmul.f32 %v4707_v42, %v8965_v28  ;;  %v9106_v23 = vmul.f32 %v4707_v42, %v8973_v21  ;;  %v5229_v56 = vld [vmem:[%s6909_s13 + $0x51] sm:$0xff] }
 0x785   : > { %v9117_v35 = vmul.f32 %v4707_v42, %v8978_v26  ;;  %v9120_v33 = vmul.f32 %v4707_v42, %v8986_v61  ;;  %v9123_v28 = vmul.f32 %v4707_v42, %v8991_v6  ;;  %v9126_v21 = vmul.f32 %v4707_v42, %v8999_v46  ;;  %v5233_v46 = vld [vmem:[%s6909_s13 + $0x81] sm:$0xff] }
 0x786   : > { %v9132_v1 = vmul.f32 %v4707_v42, %v9004_v44  ;;  %v9135_v26 = vmul.f32 %v4707_v42, %v9012_v2  ;;  %v9138_v61 = vmul.f32 %v4707_v42, %v9017_v34  ;;  %v9141_v6 = vmul.f32 %v4707_v42, %v9025_v18  ;;  %v5239_v18 = vld [vmem:[%s6909_s13 + $0xc9] sm:$0xff] }
 0x787   : > { %v9147_v57 = vmul.f32 %v4707_v42, %v9030_v52  ;;  %v9150_v44 = vmul.f32 %v4707_v42, %v9038_v58  ;;  %v9153_v2 = vmul.f32 %v4707_v42, %v9043_v22  ;;  %v9156_v34 = vmul.f32 %v4707_v42, %v9051_v0  ;;  %v5240_v0 = vld [vmem:[%s6909_s13 + $0xd9] sm:$0xff] }
 0x788   : > { %v9162_v29 = vmul.f32 %v4707_v42, %v9056_v10  ;;  %v9165_v52 = vmul.f32 %v4707_v42, %v9064_v48  ;;  %v9168_v58 = vmul.f32 %v4707_v42, %v9069_v63  ;;  %v9171_v22 = vmul.f32 %v4707_v42, %v9074_v3  ;;  %v5244_v48 = vld [vmem:[%s6909_s13 + $0x109] sm:$0xff]  ;;  %v5245_v42 = vld [vmem:[%s6909_s13 + $0x111] sm:$0xff] }
 0x789   : > { %v4740_v38 = vadd.f32 %v5224_v11, %v4708_v62  ;;  %v4741_v37 = vadd.f32 %v5225_v36, %v4709_v15  ;;  %v4742_v9 = vadd.f32 %v5226_v51, %v4710_v40  ;;  %v4743_v10 = vadd.f32 %v5227_v55, %v4711_v24  ;;  %v5251_v40 = vld [vmem:[%s6909_s13 + $0x159] sm:$0xff]  ;;  %v5249_v24 = vld [vmem:[%s6909_s13 + $0x141] sm:$0xff] }
 0x78a   : > { %9308 = vst [vmem:[#allocation6_spill] sm:$0xff] %v9162_v29  ;;  %9309 = vst [vmem:[#allocation7_spill] sm:$0xff] %v9165_v52  ;;  %v4744_v45 = vadd.f32 %v5228_v20, %v4712_v14  ;;  %v4745_v63 = vadd.f32 %v5229_v56, %v4713_v41  ;;  %v4746_v60 = vadd.f32 %v5230_v53, %v4714_v16  ;;  %v5254_v14 = vld [vmem:[%s6909_s13 + $0x181] sm:$0xff] }
 0x78b   : > { %9310 = vst [vmem:[#allocation8_spill] sm:$0xff] %v9168_v58  ;;  %9311 = vst [vmem:[#allocation9_spill] sm:$0xff] %v9171_v22  ;;  %v4747_v3 = vadd.f32 %v5231_v25, %v4715_v30  ;;  %v5250_v22 = vld [vmem:[%s6909_s13 + $0x151] sm:$0xff]  ;;  %v5248_v58 = vld [vmem:[%s6909_s13 + $0x139] sm:$0xff]  ;;  %v4748_v52 = vadd.f32 %v5232_v50, %v4716_v49  ;;  %v4749_v29 = vadd.f32 %v5233_v46, %v4717_v5 }
 0x78c   : > { %v4750_v62 = vadd.f32 %v5234_v59, %v4718_v47  ;;  %v4751_v15 = vadd.f32 %v5235_v32, %v4719_v13  ;;  %4772 = vst [vmem:[%s9183_s16] sm:$0xff] %v4740_v38  ;;  %4773 = vst [vmem:[%s9183_s16 + $0x8] sm:$0xff] %v4741_v37  ;;  %v4752_v41 = vadd.f32 %v5236_v8, %v9097_v7  ;;  %v5252_v5 = vld [vmem:[%s6909_s13 + $0x169] sm:$0xff]  ;;  %v5253_v13 = vld [vmem:[%s6909_s13 + $0x171] sm:$0xff] }
 0x78d   : > { %4774 = vst [vmem:[%s9183_s16 + $0x10] sm:$0xff] %v4742_v9  ;;  %4775 = vst [vmem:[%s9183_s16 + $0x18] sm:$0xff] %v4743_v10  ;;  %v4753_v16 = vadd.f32 %v5237_v4, %v9100_v31  ;;  %v4754_v30 = vadd.f32 %v5238_v43, %v9103_v54  ;;  %v4755_v49 = vadd.f32 %v5239_v18, %v9106_v23  ;;  %v5255_v47 = vld [vmem:[%s6909_s13 + $0x189] sm:$0xff] }
 0x78e   : > { %4776 = vst [vmem:[%s9183_s16 + $0x20] sm:$0xff] %v4744_v45  ;;  %4777 = vst [vmem:[%s9183_s16 + $0x28] sm:$0xff] %v4745_v63  ;;  %v4756_v51 = vadd.f32 %v5240_v0, %v9117_v35  ;;  %v4757_v11 = vadd.f32 %v5241_v19, %v9120_v33  ;;  %v4758_v55 = vadd.f32 %v5242_v39, %v9123_v28 }
 0x78f   : > { %4778 = vst [vmem:[%s9183_s16 + $0x30] sm:$0xff] %v4746_v60  ;;  %4779 = vst [vmem:[%s9183_s16 + $0x38] sm:$0xff] %v4747_v3  ;;  %v4759_v36 = vadd.f32 %v5243_v12, %v9126_v21  ;;  %v4760_v7 = vadd.f32 %v5244_v48, %v9132_v1  ;;  %v4761_v31 = vadd.f32 %v5245_v42, %v9135_v26 }
 0x790   : > { %4780 = vst [vmem:[%s9183_s16 + $0x40] sm:$0xff] %v4748_v52  ;;  %4781 = vst [vmem:[%s9183_s16 + $0x48] sm:$0xff] %v4749_v29  ;;  %v4762_v54 = vadd.f32 %v5246_v17, %v9138_v61  ;;  %v4763_v23 = vadd.f32 %v5247_v27, %v9141_v6  ;;  %v4764_v53 = vadd.f32 %v5248_v58, %v9147_v57 }
 0x791   : > { %4782 = vst [vmem:[%s9183_s16 + $0x50] sm:$0xff] %v4750_v62  ;;  %4783 = vst [vmem:[%s9183_s16 + $0x58] sm:$0xff] %v4751_v15  ;;  %v4765_v20 = vadd.f32 %v5249_v24, %v9150_v44  ;;  %v4766_v25 = vadd.f32 %v5250_v22, %v9153_v2  ;;  %v4767_v56 = vadd.f32 %v5251_v40, %v9156_v34  ;;  %v9312_v35 = vld [vmem:[#allocation6_spill] sm:$0xff]  ;;  %v9313_v28 = vld [vmem:[#allocation7_spill] sm:$0xff] }
 0x792   : > { %4784 = vst [vmem:[%s9183_s16 + $0x60] sm:$0xff] %v4752_v41  ;;  %4785 = vst [vmem:[%s9183_s16 + $0x68] sm:$0xff] %v4753_v16  ;;  %v4768_v33 = vadd.f32 %v5252_v5, %v9312_v35  ;;  %v4769_v21 = vadd.f32 %v5253_v13, %v9313_v28  ;;  %v9314_v59 = vld [vmem:[#allocation8_spill] sm:$0xff]  ;;  %v9315_v32 = vld [vmem:[#allocation9_spill] sm:$0xff] }
 0x793   : > { %4786 = vst [vmem:[%s9183_s16 + $0x70] sm:$0xff] %v4754_v30  ;;  %4787 = vst [vmem:[%s9183_s16 + $0x78] sm:$0xff] %v4755_v49  ;;  %v4770_v50 = vadd.f32 %v5254_v14, %v9314_v59  ;;  %v4771_v1 = vadd.f32 %v5255_v47, %v9315_v32 }
 0x794   : > { %4788 = vst [vmem:[%s9183_s16 + $0x80] sm:$0xff] %v4756_v51  ;;  %4789 = vst [vmem:[%s9183_s16 + $0x88] sm:$0xff] %v4757_v11 }
 0x795   : > { %4790 = vst [vmem:[%s9183_s16 + $0x90] sm:$0xff] %v4758_v55  ;;  %4791 = vst [vmem:[%s9183_s16 + $0x98] sm:$0xff] %v4759_v36 }
 0x796   : > { %4792 = vst [vmem:[%s9183_s16 + $0xa0] sm:$0xff] %v4760_v7  ;;  %4793 = vst [vmem:[%s9183_s16 + $0xa8] sm:$0xff] %v4761_v31 }
 0x797   : > { %4794 = vst [vmem:[%s9183_s16 + $0xb0] sm:$0xff] %v4762_v54  ;;  %4795 = vst [vmem:[%s9183_s16 + $0xb8] sm:$0xff] %v4763_v23 }
 0x798   : > { %4796 = vst [vmem:[%s9183_s16 + $0xc0] sm:$0xff] %v4764_v53  ;;  %4797 = vst [vmem:[%s9183_s16 + $0xc8] sm:$0xff] %v4765_v20 }
 0x799   : > { %4798 = vst [vmem:[%s9183_s16 + $0xd0] sm:$0xff] %v4766_v25  ;;  %4799 = vst [vmem:[%s9183_s16 + $0xd8] sm:$0xff] %v4767_v56 }
 0x79a   : > { %4800 = vst [vmem:[%s9183_s16 + $0xe0] sm:$0xff] %v4768_v33  ;;  %4801 = vst [vmem:[%s9183_s16 + $0xe8] sm:$0xff] %v4769_v21 }
 0x79b   : > { %4802 = vst [vmem:[%s9183_s16 + $0xf0] sm:$0xff] %v4770_v50  ;;  %4803 = vst [vmem:[%s9183_s16 + $0xf8] sm:$0xff] %v4771_v1 }
 0x79c   : > { %6674 = shalt.err (!%p6671_p3)
}
 0x79d   : > { %s6675_s11 = scalar_lea.hbm %s9234_s20, 4096  ;;  %s6679_s14 = scalar_lea.hbm %s9305_s6, 8192 }
 0x79e   : > { %p6676_p4 = scmp.ne.s32.totalorder %s9234_s20, %s6675_s11  ;;  %p6680_p9 = scmp.lt.u32.totalorder %s9234_s20, %s9305_s6 }
 0x79f   : > { %p6681_p10 = scmp.lt.u32.totalorder %s6679_s14, %s6675_s11  ;;  %p6683_p12 = scmp.lt.u32.totalorder %s6675_s11, %s9234_s20 }
 0x7a0   : > { %p6677_p7 = pnand %p6676_p4, %p6804_p5 }
 0x7a1   : > { %p6682_p11 = por %p6681_p10, %p6680_p9 }
 0x7a2   : > { %p6678_p8 = pneg %p6677_p7 }
 0x7a3   : > { %p6684_p13 = por %p6683_p12, %p6682_p11 }
 0x7a5   : > { %p6685_p0 = pnand %p6684_p13, %p6678_p8 }
 0x7a7   : > { %6688 = shalt.err (!%p6685_p0)
}
 0x7a8   : > { %s6729_s18 = smov 128   ;;  %s6730_s13 = smov 8  }
 0x7a9   : > { %6465 = dma.vmem_to_hbm [thread:$0]  (%p6804_p5), %s9238_s17, 4096, %s9234_s20, %s9258_s25, %s6729_s18, %s6729_s18, %s6730_s13  }
 0x7aa PF: > { %p6471_p1 = scmp.ge.s32.totalorder %s6723_s24, 2  ;;  %s4833_s19 = sand.u32 1, %s6711_s21  }
 0x7ab   : > { %s4834_s26 = scalar_lea.sflag [#allocation4], %s4833_s19 }
 0x7ac   : > { %p6468_p2 = pnand %p6471_p1, %p6808_p6 }
 0x7ae   : > { %6706 = dma.done.wait (!%p6468_p2), %s4834_s26, 4096  }
 0x7af   : > { %6708 = vsyncadd (!%p6468_p2), %s4834_s26, 4294963200  ;;  %p16_p3 = scmp.ge.s32.totalorder %s6791_s27, 4   ;;  %s9316_s21 = smov %s6715_s22 }
 0x7b0   : > { %s9317_s22 = smov %s6719_s23  ;;  %s9318_s23 = smov %s6802_s30 }
 0x7b1   : > { %s9319_s24 = smov %s6791_s27  ;;  %18 = sbr.rel (!%p16_p3) target bundleno = 3 (0x3), region = 84 }
 0x7b8   :  { %4839 = vsyncpa [#allocation4], 1 }
 0x7b9   :  { %4841 = vsyncpa [#allocation4 + $0x1], 1 }

</bundles_post_ra>
